<compile_context>
chip_gen: v7x
topology: tpu7x:2x2x1
jax: 0.10.0
libtpu: 0.0.40
codegen_flags: <defaults>
</compile_context>

<pallas_src>
import functools

import jax
import jax.numpy as jnp
from jax.experimental import pallas as pl
from jax.experimental.pallas import tpu as pltpu

_VMEM = pltpu.MemorySpace.VMEM


# ----------------------------------------------------------------------------
# Pallas kernel 1: fused  out = act(a @ w + b)  (single VMEM block, no grid)
# ----------------------------------------------------------------------------
def _linear_kernel(a_ref, w_ref, b_ref, o_ref, *, activation=None):
    out = (jnp.dot(a_ref[...], w_ref[...], preferred_element_type=jnp.float32)
           + b_ref[...])
    if activation is not None:
        out = activation(out)
    o_ref[...] = out


def pallas_linear(a, w, b, activation=None, transcendental=False):
    """a:(M,K) @ w:(K,N) + b:(N,) -> (M,N) float32 (optionally activated)."""
    a = a.astype(jnp.float32)
    w = w.astype(jnp.float32)
    M, K = a.shape
    N = w.shape[1]
    b2 = jnp.asarray(b, jnp.float32).reshape(1, N)
    ce = pl.CostEstimate(
        flops=int(2 * M * K * N),
        transcendentals=int(M * N) if transcendental else 0,
        bytes_accessed=int(4 * (M * K + K * N + N + M * N)))
    return pl.pallas_call(
        functools.partial(_linear_kernel, activation=activation),
        out_shape=jax.ShapeDtypeStruct((M, N), jnp.float32),
        in_specs=[pl.BlockSpec(memory_space=_VMEM)] * 3,
        out_specs=pl.BlockSpec(memory_space=_VMEM),
        cost_estimate=ce,
    )(a, w, b2)


# ----------------------------------------------------------------------------
# Pallas kernel 2: bidirectional GRU recurrence (both directions per step).
#   xp_ref : (T, N, 6H)  precomputed input projections, gate-interleaved
#            columns [r_f r_b | z_f z_b | n_f n_b]; backward cols already
#            time-flipped.
#   whh_ref: (2H, 6H)    block-diagonal recurrent weight (fwd rows 0:H,
#                        bwd rows H:2H), same column layout.
#   out_ref: (T, N, 2H)  combined hidden state [h_f | h_b] per step.
# ----------------------------------------------------------------------------
def _bigru_kernel(xp_ref, whh_ref, bhh_ref, out_ref, h_ref):
    T = xp_ref.shape[0]
    Hc = whh_ref.shape[0]                      # combined hidden width = 2*H
    h_ref[...] = jnp.zeros_like(h_ref)
    whh = whh_ref[...]                         # resident in VMEM for all steps
    bhh = bhh_ref[...]

    def step(t, carry):
        h = h_ref[...]                                         # (N, 2H)
        hp = jnp.dot(h, whh, preferred_element_type=jnp.float32) + bhh
        x_t = xp_ref[t]                                        # (N, 6H)
        r = jax.nn.sigmoid(x_t[:, :Hc] + hp[:, :Hc])
        z = jax.nn.sigmoid(x_t[:, Hc:2 * Hc] + hp[:, Hc:2 * Hc])
        n = jnp.tanh(x_t[:, 2 * Hc:] + r * hp[:, 2 * Hc:])
        h_new = (1.0 - z) * n + z * h
        h_ref[...] = h_new
        out_ref[t] = h_new
        return carry

    jax.lax.fori_loop(0, T, step, 0, unroll=True)


def bigru(x_seq, pf, pb):
    """x_seq: (N, T, In); pf/pb: fwd/bwd GRU params (PyTorch r,z,n layout).
    Returns (N, T, 2H) = concat(forward hidden, backward hidden)."""
    N, T, In = x_seq.shape
    H = pf["w_hh"].shape[1]
    Hc = 2 * H

    # --- single fused input projection for both directions ----------------
    # column layout: [r_f r_b | z_f z_b | n_f n_b], each block H wide
    blocks = []
    bias_blocks = []
    for g in range(3):
        blocks.append(pf["w_ih"][g * H:(g + 1) * H].T)     # (In, H)
        blocks.append(pb["w_ih"][g * H:(g + 1) * H].T)
        bias_blocks.append(pf["b_ih"][g * H:(g + 1) * H])
        bias_blocks.append(pb["b_ih"][g * H:(g + 1) * H])
    w_ih_cat = jnp.concatenate(blocks, axis=1)             # (In, 6H)
    b_ih_cat = jnp.concatenate(bias_blocks)                # (6H,)

    xp = pallas_linear(x_seq.reshape(N * T, In), w_ih_cat, b_ih_cat)
    xp = xp.reshape(N, T, 3, 2, H)                         # (gate, dir, H)
    xp_f = xp[:, :, :, 0, :]
    xp_b = xp[:, :, :, 1, :][:, ::-1]                      # time-flip backward
    xp_steps = jnp.stack([xp_f, xp_b], axis=3).reshape(N, T, 6 * H)
    xp_steps = jnp.transpose(xp_steps, (1, 0, 2))          # (T, N, 6H)

    # --- block-diagonal recurrent weights / biases -------------------------
    whh = jnp.zeros((Hc, 6 * H), jnp.float32)
    bhh_blocks = []
    for g in range(3):
        whh = whh.at[0:H, g * Hc:g * Hc + H].set(pf["w_hh"][g * H:(g + 1) * H].T)
        whh = whh.at[H:Hc, g * Hc + H:(g + 1) * Hc].set(pb["w_hh"][g * H:(g + 1) * H].T)
        bhh_blocks.append(pf["b_hh"][g * H:(g + 1) * H])
        bhh_blocks.append(pb["b_hh"][g * H:(g + 1) * H])
    bhh = jnp.concatenate(bhh_blocks).reshape(1, 6 * H)

    ce = pl.CostEstimate(
        flops=int(2 * T * N * Hc * 6 * H),
        transcendentals=int(3 * T * N * Hc),
        bytes_accessed=int(4 * (T * N * 6 * H + Hc * 6 * H + 6 * H + T * N * Hc)))
    out = pl.pallas_call(
        _bigru_kernel,
        out_shape=jax.ShapeDtypeStruct((T, N, Hc), jnp.float32),
        in_specs=[pl.BlockSpec(memory_space=_VMEM)] * 3,
        out_specs=pl.BlockSpec(memory_space=_VMEM),
        scratch_shapes=[pltpu.VMEM((N, Hc), jnp.float32)],
        cost_estimate=ce,
    )(xp_steps, whh, bhh)

    h_f = jnp.transpose(out[:, :, :H], (1, 0, 2))          # (N, T, H)
    h_b = jnp.transpose(out[::-1, :, H:], (1, 0, 2))       # (N, T, H)
    return jnp.concatenate([h_f, h_b], axis=-1)


# ----------------------------------------------------------------------------
# Pallas kernel 3: attention scores  s = sum(tanh(h @ W + b) * u, -1)
#   (tanh fused on the EUP; u-projection done as a lane reduction, not an
#    N=1 matmul). softmax / weighted-sum stay in the jnp wrapper (tiny).
# ----------------------------------------------------------------------------
def _attn_score_kernel(h_ref, w_ref, b_ref, u_ref, s_ref):
    v = jnp.tanh(jnp.dot(h_ref[...], w_ref[...],
                         preferred_element_type=jnp.float32) + b_ref[...])
    s_ref[...] = jnp.sum(v * u_ref[...], axis=-1, keepdims=True)


def attention_pool(h, p):
    """h: (N, T, D) -> (N, D) additive-attention pooling over T."""
    N, T, D = h.shape
    att = p["W"].shape[1]
    ce = pl.CostEstimate(
        flops=int(2 * N * T * D * att),
        transcendentals=int(N * T * att),
        bytes_accessed=int(4 * (N * T * D + D * att + 2 * att + N * T)))
    scores = pl.pallas_call(
        _attn_score_kernel,
        out_shape=jax.ShapeDtypeStruct((N * T, 1), jnp.float32),
        in_specs=[pl.BlockSpec(memory_space=_VMEM)] * 4,
        out_specs=pl.BlockSpec(memory_space=_VMEM),
        cost_estimate=ce,
    )(h.reshape(N * T, D), p["W"], p["b"].reshape(1, att), p["u"].reshape(1, att))
    alphas = jax.nn.softmax(scores.reshape(N, T), axis=1)
    return jnp.sum(h * alphas[..., None], axis=1)


# ----------------------------------------------------------------------------
# Pallas kernel 4: fused CEM concept bottleneck + classifier.
#   One wide matmul produces all candidate concepts (layers 0..n_concept,
#   reproducing the PyTorch "c_minus = layer[i+1]" indexing), scores via VPU
#   multiply + lane reduction, single full-width stores, classifier fed from
#   local values (no read-back of the output ref).
# ----------------------------------------------------------------------------
def _cem_clf_kernel(n_concept, concept_dim,
                    x_ref, wcat_ref, bcat_ref, wsp_ref, wsm_ref, bs_ref,
                    wclf_ref, bclf_ref,
                    emb_ref, act_ref, y_ref):
    x = x_ref[...]                                          # (M, H)
    cc = (jnp.dot(x, wcat_ref[...], preferred_element_type=jnp.float32)
          + bcat_ref[...])                                  # (M, (nC+1)*Cd)
    cc = jnp.where(cc >= 0.0, cc, 0.01 * cc)                # LeakyReLU(0.01)

    wsp = wsp_ref[...]                                      # (1, Cd)
    wsm = wsm_ref[...]                                      # (1, Cd)
    bs = bs_ref[...]                                        # (1, 1)

    concepts, scores = [], []
    for i in range(n_concept):                              # unrolled at trace
        cp = cc[:, i * concept_dim:(i + 1) * concept_dim]
        cm = cc[:, (i + 1) * concept_dim:(i + 2) * concept_dim]
        # score_function: Linear(2*Cd, 1) + Sigmoid, done as a lane reduction
        s = jax.nn.sigmoid(
            jnp.sum(cp * wsp + cm * wsm, axis=-1, keepdims=True) + bs)
        concepts.append(s * cp + (1.0 - s) * cm)
        scores.append(s)

    emb = jnp.concatenate(concepts, axis=-1)                # (M, nC*Cd)
    act = jnp.concatenate(scores, axis=-1)                  # (M, nC)
    emb_ref[...] = emb
    act_ref[...] = act
    y_ref[...] = (jnp.dot(emb, wclf_ref[...], preferred_element_type=jnp.float32)
                  + bclf_ref[...])


def cem_clf_pallas(x, wc, bc, ws, bs, wclf, bclf, n_concept, concept_dim):
    x = x.astype(jnp.float32)
    M, H = x.shape
    n_classes = wclf.shape[1]
    nc1 = n_concept + 1
    # fused concept weight: layers 0..n_concept concatenated along the output
    # axis (layer i -> c_plus_i, layer i+1 -> c_minus_i, as in the torch code)
    wcat = jnp.concatenate([wc[i] for i in range(nc1)], axis=1)       # (H, nc1*Cd)
    bcat = jnp.concatenate([bc[i] for i in range(nc1)]).reshape(1, nc1 * concept_dim)
    wsp = ws[:concept_dim].reshape(1, concept_dim).astype(jnp.float32)
    wsm = ws[concept_dim:].reshape(1, concept_dim).astype(jnp.float32)
    bs2 = bs.reshape(1, 1).astype(jnp.float32)
    bclf2 = bclf.reshape(1, n_classes).astype(jnp.float32)

    ce = pl.CostEstimate(
        flops=int(2 * M * H * nc1 * concept_dim
                  + 2 * M * n_concept * concept_dim * n_classes),
        transcendentals=int(M * n_concept),
        bytes_accessed=int(4 * (M * H + H * nc1 * concept_dim
                                + M * (nc1 + n_concept) * concept_dim
                                + n_concept * concept_dim * n_classes
                                + M * (n_concept + n_classes))))
    kernel = functools.partial(_cem_clf_kernel, n_concept, concept_dim)
    emb, act, y = pl.pallas_call(
        kernel,
        out_shape=(
            jax.ShapeDtypeStruct((M, n_concept * concept_dim), jnp.float32),
            jax.ShapeDtypeStruct((M, n_concept), jnp.float32),
            jax.ShapeDtypeStruct((M, n_classes), jnp.float32),
        ),
        in_specs=[pl.BlockSpec(memory_space=_VMEM)] * 8,
        out_specs=(pl.BlockSpec(memory_space=_VMEM),
                   pl.BlockSpec(memory_space=_VMEM),
                   pl.BlockSpec(memory_space=_VMEM)),
        cost_estimate=ce,
    )(x, wcat.astype(jnp.float32), bcat.astype(jnp.float32),
      wsp, wsm, bs2, wclf.astype(jnp.float32), bclf2)
    return emb, act, y


# ----------------------------------------------------------------------------
# Filterbank: sigmoid-gated learnable filterbank, all channels in ONE matmul
# via a block-diagonal weight.
# ----------------------------------------------------------------------------
def filterbank_features(x, fb_W, fb_S, D):
    N, nchan, T, F = x.shape
    Wfb = jax.nn.sigmoid(fb_W) * fb_S                       # (nchan, F, D)
    Wblk = jnp.zeros((nchan * F, nchan * D), jnp.float32)
    for c in range(nchan):
        Wblk = Wblk.at[c * F:(c + 1) * F, c * D:(c + 1) * D].set(Wfb[c])
    xt = jnp.transpose(x, (0, 2, 1, 3)).reshape(N * T, nchan * F)
    feats = pallas_linear(xt, Wblk, jnp.zeros((nchan * D,), jnp.float32))
    return feats.reshape(N, T, nchan * D)


def tri_filterbank(F, D):
    """Deterministic triangular filterbank (F, D)."""
    pts = jnp.linspace(0.0, F - 1.0, D + 2)
    freqs = jnp.arange(F, dtype=jnp.float32)
    cols = []
    for i in range(D):
        left, center, right = pts[i], pts[i + 1], pts[i + 2]
        up = (freqs - left) / (center - left)
        down = (right - freqs) / (right - center)
        cols.append(jnp.clip(jnp.minimum(up, down), 0.0, 1.0))
    return jnp.stack(cols, axis=1).astype(jnp.float32)


# ----------------------------------------------------------------------------
# Parameters (deterministic, synthetic)
# ----------------------------------------------------------------------------
def _lin_init(key, shape, fan_in):
    return jax.random.normal(key, shape, jnp.float32) / jnp.sqrt(float(fan_in))


def _gru_params(key, in_dim, hidden):
    k1, k2, k3, k4 = jax.random.split(key, 4)
    return {
        "w_ih": _lin_init(k1, (3 * hidden, in_dim), in_dim),
        "w_hh": _lin_init(k2, (3 * hidden, hidden), hidden),
        "b_ih": _lin_init(k3, (3 * hidden,), hidden),
        "b_hh": _lin_init(k4, (3 * hidden,), hidden),
    }


def init_net_params(key, cfg):
    keys = jax.random.split(key, 16)
    ki = iter(keys)
    nchan, F, D = cfg["in_channels"], cfg["F"], cfg["D"]
    H1, H2 = cfg["seqnhidden1"], cfg["seqnhidden2"]
    att = cfg["attentionsize1"]
    nC, Cd = cfg["n_concept"], cfg["concept_dim"]
    ncls = cfg["n_classes"]
    cem_in = 2 * H2

    return {
        "fb_W": _lin_init(next(ki), (nchan, F, D), F),
        "fb_S": jnp.broadcast_to(tri_filterbank(F, D), (nchan, F, D)),
        "g1f": _gru_params(next(ki), nchan * D, H1),
        "g1b": _gru_params(next(ki), nchan * D, H1),
        "att": {
            "W": _lin_init(next(ki), (2 * H1, att), 2 * H1),
            "b": _lin_init(next(ki), (att,), 2 * H1),
            "u": _lin_init(next(ki), (att,), att),
        },
        "g2f": _gru_params(next(ki), 2 * H1, H2),
        "g2b": _gru_params(next(ki), 2 * H1, H2),
        # CEM: 2*n_concept candidate-concept layers (only 0..n_concept used,
        # matching the PyTorch indexing), one score head, one classifier.
        "cem_wc": _lin_init(next(ki), (2 * nC, cem_in, Cd), cem_in),
        "cem_bc": _lin_init(next(ki), (2 * nC, Cd), cem_in),
        "cem_ws": _lin_init(next(ki), (2 * Cd,), 2 * Cd),
        "cem_bs": _lin_init(next(ki), (1,), 2 * Cd),
        "clf_w": _lin_init(next(ki), (nC * Cd, ncls), nC * Cd),
        "clf_b": _lin_init(next(ki), (ncls,), nC * Cd),
    }


# ----------------------------------------------------------------------------
# Net.forward
# ----------------------------------------------------------------------------
def net_forward(params, x, cfg):
    batch, L, nchan, T, F = x.shape
    N = batch * L
    x = x.reshape(N, nchan, T, F).astype(jnp.float32)

    # --- EpochEncoder: filterbank + BiGRU over T + attention pooling ---
    xf = filterbank_features(x, params["fb_W"], params["fb_S"], cfg["D"])
    h1 = bigru(xf, params["g1f"], params["g1b"])            # (N, T, 2*H1)
    epoch_feat = attention_pool(h1, params["att"]).reshape(batch, L, -1)

    # --- SequenceEncoder: BiGRU over L ---
    epoch_emb = bigru(epoch_feat, params["g2f"], params["g2b"])   # (batch, L, 2*H2)

    # --- CEM + classifier (fused Pallas kernel) ---
    xc = epoch_emb.reshape(batch * L, -1)
    _, act, y = cem_clf_pallas(
        xc, params["cem_wc"], params["cem_bc"], params["cem_ws"],
        params["cem_bs"], params["clf_w"], params["clf_b"],
        cfg["n_concept"], cfg["concept_dim"])

    concept_act = act.reshape(batch, L, cfg["n_concept"], 1)   # torch.stack(..., 2)
    y = y.reshape(batch, L, cfg["n_classes"])
    # Net.forward returns (concept_act, y)
    return concept_act, y


# ----------------------------------------------------------------------------
if __name__ == "__main__":
    cfg = dict(
        in_channels=1, T=16, F=32, D=8,
        seqnhidden1=8, seqnlayer1=1, attentionsize1=16,
        seqnhidden2=8, seqnlayer2=1,
        n_classes=5, n_concept=4, concept_dim=8,
    )
    batch, L = 2, 4

    key = jax.random.PRNGKey(0)
    kp, kx = jax.random.split(key)
    params = init_net_params(kp, cfg)
    x = jax.random.normal(
        kx, (batch, L, cfg["in_channels"], cfg["T"], cfg["F"]), jnp.float32)

    fwd = jax.jit(functools.partial(net_forward, cfg=cfg))
    concept_act, y = fwd(params, x)
    jax.block_until_ready((concept_act, y))

    assert concept_act.shape == (batch, L, cfg["n_concept"], 1)
    assert y.shape == (batch, L, cfg["n_classes"])
    assert jnp.all(jnp.isfinite(concept_act)) and jnp.all(jnp.isfinite(y))
    print("KERNEL_OK")
</pallas_src>

<mosaic_0001>
module attributes {stable_mosaic.version = 11 : i64} {
  func.func @_linear_kernel(%arg0: memref<128x8xf32, #tpu.memory_space<vmem>>, %arg1: memref<8x48xf32, #tpu.memory_space<vmem>>, %arg2: memref<1x48xf32, #tpu.memory_space<vmem>>, %arg3: memref<128x48xf32, #tpu.memory_space<vmem>>) attributes {dimension_semantics = [], scalar_prefetch = 0 : i64, scratch_operands = 0 : i64, tpu.core_type = #tpu.core_type<tc>} {
    %c0 = arith.constant 0 : index
    %c0_0 = arith.constant 0 : index
    %0 = vector.load %arg0[%c0, %c0_0] : memref<128x8xf32, #tpu.memory_space<vmem>>, vector<128x8xf32>
    %c0_1 = arith.constant 0 : index
    %c0_2 = arith.constant 0 : index
    %1 = vector.load %arg1[%c0_1, %c0_2] : memref<8x48xf32, #tpu.memory_space<vmem>>, vector<8x48xf32>
    %cst = arith.constant dense<0.000000e+00> : vector<128x48xf32>
    %2 = tpu.matmul %0, %1, %cst {dimension_numbers = #tpu.dot_dimension_numbers<[1], [0], [0], [1], [0, 0, 1, 1], [], []>} : vector<128x8xf32>, vector<8x48xf32>, vector<128x48xf32> -> vector<128x48xf32>
    %c0_3 = arith.constant 0 : index
    %c0_4 = arith.constant 0 : index
    %3 = vector.load %arg2[%c0_3, %c0_4] : memref<1x48xf32, #tpu.memory_space<vmem>>, vector<1x48xf32>
    %4 = vector.broadcast %3 : vector<1x48xf32> to vector<128x48xf32>
    %5 = arith.addf %2, %4 : vector<128x48xf32>
    %c0_5 = arith.constant 0 : index
    %c0_6 = arith.constant 0 : index
    %6 = vector.load %arg3[%c0_5, %c0_6] : memref<128x48xf32, #tpu.memory_space<vmem>>, vector<128x48xf32>
    tpu.vector_store %arg3[%c0_5, %c0_6], %5 {strides = array<i32>} : memref<128x48xf32, #tpu.memory_space<vmem>>, vector<128x48xf32>,
    return
  }
}

module attributes {stable_mosaic.version = 11 : i64} {
  func.func @_linear_kernel(%arg0: memref<128x32xf32, #tpu.memory_space<vmem>>, %arg1: memref<32x8xf32, #tpu.memory_space<vmem>>, %arg2: memref<1x8xf32, #tpu.memory_space<vmem>>, %arg3: memref<128x8xf32, #tpu.memory_space<vmem>>) attributes {dimension_semantics = [], scalar_prefetch = 0 : i64, scratch_operands = 0 : i64, tpu.core_type = #tpu.core_type<tc>} {
    %c0 = arith.constant 0 : index
    %c0_0 = arith.constant 0 : index
    %0 = vector.load %arg0[%c0, %c0_0] : memref<128x32xf32, #tpu.memory_space<vmem>>, vector<128x32xf32>
    %c0_1 = arith.constant 0 : index
    %c0_2 = arith.constant 0 : index
    %1 = vector.load %arg1[%c0_1, %c0_2] : memref<32x8xf32, #tpu.memory_space<vmem>>, vector<32x8xf32>
    %cst = arith.constant dense<0.000000e+00> : vector<128x8xf32>
    %2 = tpu.matmul %0, %1, %cst {dimension_numbers = #tpu.dot_dimension_numbers<[1], [0], [0], [1], [0, 0, 1, 1], [], []>} : vector<128x32xf32>, vector<32x8xf32>, vector<128x8xf32> -> vector<128x8xf32>
    %c0_3 = arith.constant 0 : index
    %c0_4 = arith.constant 0 : index
    %3 = vector.load %arg2[%c0_3, %c0_4] : memref<1x8xf32, #tpu.memory_space<vmem>>, vector<1x8xf32>
    %4 = vector.broadcast %3 : vector<1x8xf32> to vector<128x8xf32>
    %5 = arith.addf %2, %4 : vector<128x8xf32>
    %c0_5 = arith.constant 0 : index
    %c0_6 = arith.constant 0 : index
    %6 = vector.load %arg3[%c0_5, %c0_6] : memref<128x8xf32, #tpu.memory_space<vmem>>, vector<128x8xf32>
    tpu.vector_store %arg3[%c0_5, %c0_6], %5 {strides = array<i32>} : memref<128x8xf32, #tpu.memory_space<vmem>>, vector<128x8xf32>,
    return
  }
}

module attributes {stable_mosaic.version = 11 : i64} {
  func.func @_bigru_kernel(%arg0: memref<16x8x48xf32, #tpu.memory_space<vmem>>, %arg1: memref<16x48xf32, #tpu.memory_space<vmem>>, %arg2: memref<1x48xf32, #tpu.memory_space<vmem>>, %arg3: memref<16x8x16xf32, #tpu.memory_space<vmem>>, %arg4: memref<8x16xf32, #tpu.memory_space<vmem>>) attributes {dimension_semantics = [], scalar_prefetch = 0 : i64, scratch_operands = 1 : i64, tpu.core_type = #tpu.core_type<tc>} {
    %cst = arith.constant 0.000000e+00 : f32
    %0 = vector.broadcast %cst : f32 to vector<8x16xf32>
    %c0 = arith.constant 0 : index
    %c0_0 = arith.constant 0 : index
    %1 = vector.load %arg4[%c0, %c0_0] : memref<8x16xf32, #tpu.memory_space<vmem>>, vector<8x16xf32>
    tpu.vector_store %arg4[%c0, %c0_0], %0 {strides = array<i32>} : memref<8x16xf32, #tpu.memory_space<vmem>>, vector<8x16xf32>,
    %c0_1 = arith.constant 0 : index
    %c0_2 = arith.constant 0 : index
    %2 = vector.load %arg1[%c0_1, %c0_2] : memref<16x48xf32, #tpu.memory_space<vmem>>, vector<16x48xf32>
    %c0_3 = arith.constant 0 : index
    %c0_4 = arith.constant 0 : index
    %3 = vector.load %arg2[%c0_3, %c0_4] : memref<1x48xf32, #tpu.memory_space<vmem>>, vector<1x48xf32>
    %c0_i32 = arith.constant 0 : i32
    %c0_5 = arith.constant 0 : index
    %c0_6 = arith.constant 0 : index
    %4 = vector.load %arg4[%c0_5, %c0_6] : memref<8x16xf32, #tpu.memory_space<vmem>>, vector<8x16xf32>
    %cst_7 = arith.constant dense<0.000000e+00> : vector<8x48xf32>
    %5 = tpu.matmul %4, %2, %cst_7 {dimension_numbers = #tpu.dot_dimension_numbers<[1], [0], [0], [1], [0, 0, 1, 1], [], []>} : vector<8x16xf32>, vector<16x48xf32>, vector<8x48xf32> -> vector<8x48xf32>
    %6 = vector.broadcast %3 : vector<1x48xf32> to vector<8x48xf32>
    %7 = arith.addf %5, %6 : vector<8x48xf32>
    %8 = arith.index_cast %c0_i32 : i32 to index
    %c0_8 = arith.constant 0 : index
    %c0_9 = arith.constant 0 : index
    %9 = vector.load %arg0[%8, %c0_8, %c0_9] : memref<16x8x48xf32, #tpu.memory_space<vmem>>, vector<1x8x48xf32>
    %10 = vector.shape_cast %9 : vector<1x8x48xf32> to vector<8x48xf32>
    %11 = vector.extract_strided_slice %10 {offsets = [0, 0], sizes = [8, 16], strides = [1, 1]} : vector<8x48xf32> to vector<8x16xf32>
    %12 = vector.extract_strided_slice %7 {offsets = [0, 0], sizes = [8, 16], strides = [1, 1]} : vector<8x48xf32> to vector<8x16xf32>
    %13 = arith.addf %11, %12 : vector<8x16xf32>
    %14 = arith.negf %13 : vector<8x16xf32>
    %15 = math.exp %14 : vector<8x16xf32>
    %cst_10 = arith.constant 1.000000e+00 : f32
    %16 = vector.broadcast %cst_10 : f32 to vector<8x16xf32>
    %17 = arith.addf %16, %15 : vector<8x16xf32>
    %18 = arith.divf %16, %17 : vector<8x16xf32>
    %19 = vector.extract_strided_slice %10 {offsets = [0, 16], sizes = [8, 16], strides = [1, 1]} : vector<8x48xf32> to vector<8x16xf32>
    %20 = vector.extract_strided_slice %7 {offsets = [0, 16], sizes = [8, 16], strides = [1, 1]} : vector<8x48xf32> to vector<8x16xf32>
    %21 = arith.addf %19, %20 : vector<8x16xf32>
    %22 = arith.negf %21 : vector<8x16xf32>
    %23 = math.exp %22 : vector<8x16xf32>
    %cst_11 = arith.constant 1.000000e+00 : f32
    %24 = vector.broadcast %cst_11 : f32 to vector<8x16xf32>
    %25 = arith.addf %24, %23 : vector<8x16xf32>
    %26 = arith.divf %24, %25 : vector<8x16xf32>
    %27 = vector.extract_strided_slice %10 {offsets = [0, 32], sizes = [8, 16], strides = [1, 1]} : vector<8x48xf32> to vector<8x16xf32>
    %28 = vector.extract_strided_slice %7 {offsets = [0, 32], sizes = [8, 16], strides = [1, 1]} : vector<8x48xf32> to vector<8x16xf32>
    %29 = arith.mulf %18, %28 : vector<8x16xf32>
    %30 = arith.addf %27, %29 : vector<8x16xf32>
    %31 = math.tanh %30 : vector<8x16xf32>
    %cst_12 = arith.constant 1.000000e+00 : f32
    %32 = vector.broadcast %cst_12 : f32 to vector<8x16xf32>
    %33 = arith.subf %32, %26 : vector<8x16xf32>
    %34 = arith.mulf %33, %31 : vector<8x16xf32>
    %35 = arith.mulf %26, %4 : vector<8x16xf32>
    %36 = arith.addf %34, %35 : vector<8x16xf32>
    %c0_13 = arith.constant 0 : index
    %c0_14 = arith.constant 0 : index
    %37 = vector.load %arg4[%c0_13, %c0_14] : memref<8x16xf32, #tpu.memory_space<vmem>>, vector<8x16xf32>
    tpu.vector_store %arg4[%c0_13, %c0_14], %36 {strides = array<i32>} : memref<8x16xf32, #tpu.memory_space<vmem>>, vector<8x16xf32>,
    %38 = arith.index_cast %c0_i32 : i32 to index
    %c0_15 = arith.constant 0 : index
    %c0_16 = arith.constant 0 : index
    %39 = vector.load %arg3[%38, %c0_15, %c0_16] : memref<16x8x16xf32, #tpu.memory_space<vmem>>, vector<1x8x16xf32>
    %40 = vector.shape_cast %39 : vector<1x8x16xf32> to vector<8x16xf32>
    %41 = vector.shape_cast %36 : vector<8x16xf32> to vector<1x8x16xf32>
    tpu.vector_store %arg3[%38, %c0_15, %c0_16], %41 {strides = array<i32>} : memref<16x8x16xf32, #tpu.memory_space<vmem>>, vector<1x8x16xf32>,
    %c1_i32 = arith.constant 1 : i32
    %c0_17 = arith.constant 0 : index
    %c0_18 = arith.constant 0 : index
    %42 = vector.load %arg4[%c0_17, %c0_18] : memref<8x16xf32, #tpu.memory_space<vmem>>, vector<8x16xf32>
    %cst_19 = arith.constant dense<0.000000e+00> : vector<8x48xf32>
    %43 = tpu.matmul %42, %2, %cst_19 {dimension_numbers = #tpu.dot_dimension_numbers<[1], [0], [0], [1], [0, 0, 1, 1], [], []>} : vector<8x16xf32>, vector<16x48xf32>, vector<8x48xf32> -> vector<8x48xf32>
    %44 = vector.broadcast %3 : vector<1x48xf32> to vector<8x48xf32>
    %45 = arith.addf %43, %44 : vector<8x48xf32>
    %46 = arith.index_cast %c1_i32 : i32 to index
    %c0_20 = arith.constant 0 : index
    %c0_21 = arith.constant 0 : index
    %47 = vector.load %arg0[%46, %c0_20, %c0_21] : memref<16x8x48xf32, #tpu.memory_space<vmem>>, vector<1x8x48xf32>
    %48 = vector.shape_cast %47 : vector<1x8x48xf32> to vector<8x48xf32>
    %49 = vector.extract_strided_slice %48 {offsets = [0, 0], sizes = [8, 16], strides = [1, 1]} : vector<8x48xf32> to vector<8x16xf32>
    %50 = vector.extract_strided_slice %45 {offsets = [0, 0], sizes = [8, 16], strides = [1, 1]} : vector<8x48xf32> to vector<8x16xf32>
    %51 = arith.addf %49, %50 : vector<8x16xf32>
    %52 = arith.negf %51 : vector<8x16xf32>
    %53 = math.exp %52 : vector<8x16xf32>
    %cst_22 = arith.constant 1.000000e+00 : f32
    %54 = vector.broadcast %cst_22 : f32 to vector<8x16xf32>
    %55 = arith.addf %54, %53 : vector<8x16xf32>
    %56 = arith.divf %54, %55 : vector<8x16xf32>
    %57 = vector.extract_strided_slice %48 {offsets = [0, 16], sizes = [8, 16], strides = [1, 1]} : vector<8x48xf32> to vector<8x16xf32>
    %58 = vector.extract_strided_slice %45 {offsets = [0, 16], sizes = [8, 16], strides = [1, 1]} : vector<8x48xf32> to vector<8x16xf32>
    %59 = arith.addf %57, %58 : vector<8x16xf32>
    %60 = arith.negf %59 : vector<8x16xf32>
    %61 = math.exp %60 : vector<8x16xf32>
    %cst_23 = arith.constant 1.000000e+00 : f32
    %62 = vector.broadcast %cst_23 : f32 to vector<8x16xf32>
    %63 = arith.addf %62, %61 : vector<8x16xf32>
    %64 = arith.divf %62, %63 : vector<8x16xf32>
    %65 = vector.extract_strided_slice %48 {offsets = [0, 32], sizes = [8, 16], strides = [1, 1]} : vector<8x48xf32> to vector<8x16xf32>
    %66 = vector.extract_strided_slice %45 {offsets = [0, 32], sizes = [8, 16], strides = [1, 1]} : vector<8x48xf32> to vector<8x16xf32>
    %67 = arith.mulf %56, %66 : vector<8x16xf32>
    %68 = arith.addf %65, %67 : vector<8x16xf32>
    %69 = math.tanh %68 : vector<8x16xf32>
    %cst_24 = arith.constant 1.000000e+00 : f32
    %70 = vector.broadcast %cst_24 : f32 to vector<8x16xf32>
    %71 = arith.subf %70, %64 : vector<8x16xf32>
    %72 = arith.mulf %71, %69 : vector<8x16xf32>
    %73 = arith.mulf %64, %42 : vector<8x16xf32>
    %74 = arith.addf %72, %73 : vector<8x16xf32>
    %c0_25 = arith.constant 0 : index
    %c0_26 = arith.constant 0 : index
    %75 = vector.load %arg4[%c0_25, %c0_26] : memref<8x16xf32, #tpu.memory_space<vmem>>, vector<8x16xf32>
    tpu.vector_store %arg4[%c0_25, %c0_26], %74 {strides = array<i32>} : memref<8x16xf32, #tpu.memory_space<vmem>>, vector<8x16xf32>,
    %76 = arith.index_cast %c1_i32 : i32 to index
    %c0_27 = arith.constant 0 : index
    %c0_28 = arith.constant 0 : index
    %77 = vector.load %arg3[%76, %c0_27, %c0_28] : memref<16x8x16xf32, #tpu.memory_space<vmem>>, vector<1x8x16xf32>
    %78 = vector.shape_cast %77 : vector<1x8x16xf32> to vector<8x16xf32>
    %79 = vector.shape_cast %74 : vector<8x16xf32> to vector<1x8x16xf32>
    tpu.vector_store %arg3[%76, %c0_27, %c0_28], %79 {strides = array<i32>} : memref<16x8x16xf32, #tpu.memory_space<vmem>>, vector<1x8x16xf32>,
    %c2_i32 = arith.constant 2 : i32
    %c0_29 = arith.constant 0 : index
    %c0_30 = arith.constant 0 : index
    %80 = vector.load %arg4[%c0_29, %c0_30] : memref<8x16xf32, #tpu.memory_space<vmem>>, vector<8x16xf32>
    %cst_31 = arith.constant dense<0.000000e+00> : vector<8x48xf32>
    %81 = tpu.matmul %80, %2, %cst_31 {dimension_numbers = #tpu.dot_dimension_numbers<[1], [0], [0], [1], [0, 0, 1, 1], [], []>} : vector<8x16xf32>, vector<16x48xf32>, vector<8x48xf32> -> vector<8x48xf32>
    %82 = vector.broadcast %3 : vector<1x48xf32> to vector<8x48xf32>
    %83 = arith.addf %81, %82 : vector<8x48xf32>
    %84 = arith.index_cast %c2_i32 : i32 to index
    %c0_32 = arith.constant 0 : index
    %c0_33 = arith.constant 0 : index
    %85 = vector.load %arg0[%84, %c0_32, %c0_33] : memref<16x8x48xf32, #tpu.memory_space<vmem>>, vector<1x8x48xf32>
    %86 = vector.shape_cast %85 : vector<1x8x48xf32> to vector<8x48xf32>
    %87 = vector.extract_strided_slice %86 {offsets = [0, 0], sizes = [8, 16], strides = [1, 1]} : vector<8x48xf32> to vector<8x16xf32>
    %88 = vector.extract_strided_slice %83 {offsets = [0, 0], sizes = [8, 16], strides = [1, 1]} : vector<8x48xf32> to vector<8x16xf32>
    %89 = arith.addf %87, %88 : vector<8x16xf32>
    %90 = arith.negf %89 : vector<8x16xf32>
    %91 = math.exp %90 : vector<8x16xf32>
    %cst_34 = arith.constant 1.000000e+00 : f32
    %92 = vector.broadcast %cst_34 : f32 to vector<8x16xf32>
    %93 = arith.addf %92, %91 : vector<8x16xf32>
    %94 = arith.divf %92, %93 : vector<8x16xf32>
    %95 = vector.extract_strided_slice %86 {offsets = [0, 16], sizes = [8, 16], strides = [1, 1]} : vector<8x48xf32> to vector<8x16xf32>
    %96 = vector.extract_strided_slice %83 {offsets = [0, 16], sizes = [8, 16], strides = [1, 1]} : vector<8x48xf32> to vector<8x16xf32>
    %97 = arith.addf %95, %96 : vector<8x16xf32>
    %98 = arith.negf %97 : vector<8x16xf32>
    %99 = math.exp %98 : vector<8x16xf32>
    %cst_35 = arith.constant 1.000000e+00 : f32
    %100 = vector.broadcast %cst_35 : f32 to vector<8x16xf32>
    %101 = arith.addf %100, %99 : vector<8x16xf32>
    %102 = arith.divf %100, %101 : vector<8x16xf32>
    %103 = vector.extract_strided_slice %86 {offsets = [0, 32], sizes = [8, 16], strides = [1, 1]} : vector<8x48xf32> to vector<8x16xf32>
    %104 = vector.extract_strided_slice %83 {offsets = [0, 32], sizes = [8, 16], strides = [1, 1]} : vector<8x48xf32> to vector<8x16xf32>
    %105 = arith.mulf %94, %104 : vector<8x16xf32>
    %106 = arith.addf %103, %105 : vector<8x16xf32>
    %107 = math.tanh %106 : vector<8x16xf32>
    %cst_36 = arith.constant 1.000000e+00 : f32
    %108 = vector.broadcast %cst_36 : f32 to vector<8x16xf32>
    %109 = arith.subf %108, %102 : vector<8x16xf32>
    %110 = arith.mulf %109, %107 : vector<8x16xf32>
    %111 = arith.mulf %102, %80 : vector<8x16xf32>
    %112 = arith.addf %110, %111 : vector<8x16xf32>
    %c0_37 = arith.constant 0 : index
    %c0_38 = arith.constant 0 : index
    %113 = vector.load %arg4[%c0_37, %c0_38] : memref<8x16xf32, #tpu.memory_space<vmem>>, vector<8x16xf32>
    tpu.vector_store %arg4[%c0_37, %c0_38], %112 {strides = array<i32>} : memref<8x16xf32, #tpu.memory_space<vmem>>, vector<8x16xf32>,
    %114 = arith.index_cast %c2_i32 : i32 to index
    %c0_39 = arith.constant 0 : index
    %c0_40 = arith.constant 0 : index
    %115 = vector.load %arg3[%114, %c0_39, %c0_40] : memref<16x8x16xf32, #tpu.memory_space<vmem>>, vector<1x8x16xf32>
    %116 = vector.shape_cast %115 : vector<1x8x16xf32> to vector<8x16xf32>
    %117 = vector.shape_cast %112 : vector<8x16xf32> to vector<1x8x16xf32>
    tpu.vector_store %arg3[%114, %c0_39, %c0_40], %117 {strides = array<i32>} : memref<16x8x16xf32, #tpu.memory_space<vmem>>, vector<1x8x16xf32>,
    %c3_i32 = arith.constant 3 : i32
    %c0_41 = arith.constant 0 : index
    %c0_42 = arith.constant 0 : index
    %118 = vector.load %arg4[%c0_41, %c0_42] : memref<8x16xf32, #tpu.memory_space<vmem>>, vector<8x16xf32>
    %cst_43 = arith.constant dense<0.000000e+00> : vector<8x48xf32>
    %119 = tpu.matmul %118, %2, %cst_43 {dimension_numbers = #tpu.dot_dimension_numbers<[1], [0], [0], [1], [0, 0, 1, 1], [], []>} : vector<8x16xf32>, vector<16x48xf32>, vector<8x48xf32> -> vector<8x48xf32>
    %120 = vector.broadcast %3 : vector<1x48xf32> to vector<8x48xf32>
    %121 = arith.addf %119, %120 : vector<8x48xf32>
    %122 = arith.index_cast %c3_i32 : i32 to index
    %c0_44 = arith.constant 0 : index
    %c0_45 = arith.constant 0 : index
    %123 = vector.load %arg0[%122, %c0_44, %c0_45] : memref<16x8x48xf32, #tpu.memory_space<vmem>>, vector<1x8x48xf32>
    %124 = vector.shape_cast %123 : vector<1x8x48xf32> to vector<8x48xf32>
    %125 = vector.extract_strided_slice %124 {offsets = [0, 0], sizes = [8, 16], strides = [1, 1]} : vector<8x48xf32> to vector<8x16xf32>
    %126 = vector.extract_strided_slice %121 {offsets = [0, 0], sizes = [8, 16], strides = [1, 1]} : vector<8x48xf32> to vector<8x16xf32>
    %127 = arith.addf %125, %126 : vector<8x16xf32>
    %128 = arith.negf %127 : vector<8x16xf32>
    %129 = math.exp %128 : vector<8x16xf32>
    %cst_46 = arith.constant 1.000000e+00 : f32
    %130 = vector.broadcast %cst_46 : f32 to vector<8x16xf32>
    %131 = arith.addf %130, %129 : vector<8x16xf32>
    %132 = arith.divf %130, %131 : vector<8x16xf32>
    %133 = vector.extract_strided_slice %124 {offsets = [0, 16], sizes = [8, 16], strides = [1, 1]} : vector<8x48xf32> to vector<8x16xf32>
    %134 = vector.extract_strided_slice %121 {offsets = [0, 16], sizes = [8, 16], strides = [1, 1]} : vector<8x48xf32> to vector<8x16xf32>
    %135 = arith.addf %133, %134 : vector<8x16xf32>
    %136 = arith.negf %135 : vector<8x16xf32>
    %137 = math.exp %136 : vector<8x16xf32>
    %cst_47 = arith.constant 1.000000e+00 : f32
    %138 = vector.broadcast %cst_47 : f32 to vector<8x16xf32>
    %139 = arith.addf %138, %137 : vector<8x16xf32>
    %140 = arith.divf %138, %139 : vector<8x16xf32>
    %141 = vector.extract_strided_slice %124 {offsets = [0, 32], sizes = [8, 16], strides = [1, 1]} : vector<8x48xf32> to vector<8x16xf32>
    %142 = vector.extract_strided_slice %121 {offsets = [0, 32], sizes = [8, 16], strides = [1, 1]} : vector<8x48xf32> to vector<8x16xf32>
    %143 = arith.mulf %132, %142 : vector<8x16xf32>
    %144 = arith.addf %141, %143 : vector<8x16xf32>
    %145 = math.tanh %144 : vector<8x16xf32>
    %cst_48 = arith.constant 1.000000e+00 : f32
    %146 = vector.broadcast %cst_48 : f32 to vector<8x16xf32>
    %147 = arith.subf %146, %140 : vector<8x16xf32>
    %148 = arith.mulf %147, %145 : vector<8x16xf32>
    %149 = arith.mulf %140, %118 : vector<8x16xf32>
    %150 = arith.addf %148, %149 : vector<8x16xf32>
    %c0_49 = arith.constant 0 : index
    %c0_50 = arith.constant 0 : index
    %151 = vector.load %arg4[%c0_49, %c0_50] : memref<8x16xf32, #tpu.memory_space<vmem>>, vector<8x16xf32>
    tpu.vector_store %arg4[%c0_49, %c0_50], %150 {strides = array<i32>} : memref<8x16xf32, #tpu.memory_space<vmem>>, vector<8x16xf32>,
    %152 = arith.index_cast %c3_i32 : i32 to index
    %c0_51 = arith.constant 0 : index
    %c0_52 = arith.constant 0 : index
    %153 = vector.load %arg3[%152, %c0_51, %c0_52] : memref<16x8x16xf32, #tpu.memory_space<vmem>>, vector<1x8x16xf32>
    %154 = vector.shape_cast %153 : vector<1x8x16xf32> to vector<8x16xf32>
    %155 = vector.shape_cast %150 : vector<8x16xf32> to vector<1x8x16xf32>
    tpu.vector_store %arg3[%152, %c0_51, %c0_52], %155 {strides = array<i32>} : memref<16x8x16xf32, #tpu.memory_space<vmem>>, vector<1x8x16xf32>,
    %c4_i32 = arith.constant 4 : i32
    %c0_53 = arith.constant 0 : index
    %c0_54 = arith.constant 0 : index
    %156 = vector.load %arg4[%c0_53, %c0_54] : memref<8x16xf32, #tpu.memory_space<vmem>>, vector<8x16xf32>
    %cst_55 = arith.constant dense<0.000000e+00> : vector<8x48xf32>
    %157 = tpu.matmul %156, %2, %cst_55 {dimension_numbers = #tpu.dot_dimension_numbers<[1], [0], [0], [1], [0, 0, 1, 1], [], []>} : vector<8x16xf32>, vector<16x48xf32>, vector<8x48xf32> -> vector<8x48xf32>
    %158 = vector.broadcast %3 : vector<1x48xf32> to vector<8x48xf32>
    %159 = arith.addf %157, %158 : vector<8x48xf32>
    %160 = arith.index_cast %c4_i32 : i32 to index
    %c0_56 = arith.constant 0 : index
    %c0_57 = arith.constant 0 : index
    %161 = vector.load %arg0[%160, %c0_56, %c0_57] : memref<16x8x48xf32, #tpu.memory_space<vmem>>, vector<1x8x48xf32>
    %162 = vector.shape_cast %161 : vector<1x8x48xf32> to vector<8x48xf32>
    %163 = vector.extract_strided_slice %162 {offsets = [0, 0], sizes = [8, 16], strides = [1, 1]} : vector<8x48xf32> to vector<8x16xf32>
    %164 = vector.extract_strided_slice %159 {offsets = [0, 0], sizes = [8, 16], strides = [1, 1]} : vector<8x48xf32> to vector<8x16xf32>
    %165 = arith.addf %163, %164 : vector<8x16xf32>
    %166 = arith.negf %165 : vector<8x16xf32>
    %167 = math.exp %166 : vector<8x16xf32>
    %cst_58 = arith.constant 1.000000e+00 : f32
    %168 = vector.broadcast %cst_58 : f32 to vector<8x16xf32>
    %169 = arith.addf %168, %167 : vector<8x16xf32>
    %170 = arith.divf %168, %169 : vector<8x16xf32>
    %171 = vector.extract_strided_slice %162 {offsets = [0, 16], sizes = [8, 16], strides = [1, 1]} : vector<8x48xf32> to vector<8x16xf32>
    %172 = vector.extract_strided_slice %159 {offsets = [0, 16], sizes = [8, 16], strides = [1, 1]} : vector<8x48xf32> to vector<8x16xf32>
    %173 = arith.addf %171, %172 : vector<8x16xf32>
    %174 = arith.negf %173 : vector<8x16xf32>
    %175 = math.exp %174 : vector<8x16xf32>
    %cst_59 = arith.constant 1.000000e+00 : f32
    %176 = vector.broadcast %cst_59 : f32 to vector<8x16xf32>
    %177 = arith.addf %176, %175 : vector<8x16xf32>
    %178 = arith.divf %176, %177 : vector<8x16xf32>
    %179 = vector.extract_strided_slice %162 {offsets = [0, 32], sizes = [8, 16], strides = [1, 1]} : vector<8x48xf32> to vector<8x16xf32>
    %180 = vector.extract_strided_slice %159 {offsets = [0, 32], sizes = [8, 16], strides = [1, 1]} : vector<8x48xf32> to vector<8x16xf32>
    %181 = arith.mulf %170, %180 : vector<8x16xf32>
    %182 = arith.addf %179, %181 : vector<8x16xf32>
    %183 = math.tanh %182 : vector<8x16xf32>
    %cst_60 = arith.constant 1.000000e+00 : f32
    %184 = vector.broadcast %cst_60 : f32 to vector<8x16xf32>
    %185 = arith.subf %184, %178 : vector<8x16xf32>
    %186 = arith.mulf %185, %183 : vector<8x16xf32>
    %187 = arith.mulf %178, %156 : vector<8x16xf32>
    %188 = arith.addf %186, %187 : vector<8x16xf32>
    %c0_61 = arith.constant 0 : index
    %c0_62 = arith.constant 0 : index
    %189 = vector.load %arg4[%c0_61, %c0_62] : memref<8x16xf32, #tpu.memory_space<vmem>>, vector<8x16xf32>
    tpu.vector_store %arg4[%c0_61, %c0_62], %188 {strides = array<i32>} : memref<8x16xf32, #tpu.memory_space<vmem>>, vector<8x16xf32>,
    %190 = arith.index_cast %c4_i32 : i32 to index
    %c0_63 = arith.constant 0 : index
    %c0_64 = arith.constant 0 : index
    %191 = vector.load %arg3[%190, %c0_63, %c0_64] : memref<16x8x16xf32, #tpu.memory_space<vmem>>, vector<1x8x16xf32>
    %192 = vector.shape_cast %191 : vector<1x8x16xf32> to vector<8x16xf32>
    %193 = vector.shape_cast %188 : vector<8x16xf32> to vector<1x8x16xf32>
    tpu.vector_store %arg3[%190, %c0_63, %c0_64], %193 {strides = array<i32>} : memref<16x8x16xf32, #tpu.memory_space<vmem>>, vector<1x8x16xf32>,
    %c5_i32 = arith.constant 5 : i32
    %c0_65 = arith.constant 0 : index
    %c0_66 = arith.constant 0 : index
    %194 = vector.load %arg4[%c0_65, %c0_66] : memref<8x16xf32, #tpu.memory_space<vmem>>, vector<8x16xf32>
    %cst_67 = arith.constant dense<0.000000e+00> : vector<8x48xf32>
    %195 = tpu.matmul %194, %2, %cst_67 {dimension_numbers = #tpu.dot_dimension_numbers<[1], [0], [0], [1], [0, 0, 1, 1], [], []>} : vector<8x16xf32>, vector<16x48xf32>, vector<8x48xf32> -> vector<8x48xf32>
    %196 = vector.broadcast %3 : vector<1x48xf32> to vector<8x48xf32>
    %197 = arith.addf %195, %196 : vector<8x48xf32>
    %198 = arith.index_cast %c5_i32 : i32 to index
    %c0_68 = arith.constant 0 : index
    %c0_69 = arith.constant 0 : index
    %199 = vector.load %arg0[%198, %c0_68, %c0_69] : memref<16x8x48xf32, #tpu.memory_space<vmem>>, vector<1x8x48xf32>
    %200 = vector.shape_cast %199 : vector<1x8x48xf32> to vector<8x48xf32>
    %201 = vector.extract_strided_slice %200 {offsets = [0, 0], sizes = [8, 16], strides = [1, 1]} : vector<8x48xf32> to vector<8x16xf32>
    %202 = vector.extract_strided_slice %197 {offsets = [0, 0], sizes = [8, 16], strides = [1, 1]} : vector<8x48xf32> to vector<8x16xf32>
    %203 = arith.addf %201, %202 : vector<8x16xf32>
    %204 = arith.negf %203 : vector<8x16xf32>
    %205 = math.exp %204 : vector<8x16xf32>
    %cst_70 = arith.constant 1.000000e+00 : f32
    %206 = vector.broadcast %cst_70 : f32 to vector<8x16xf32>
    %207 = arith.addf %206, %205 : vector<8x16xf32>
    %208 = arith.divf %206, %207 : vector<8x16xf32>
    %209 = vector.extract_strided_slice %200 {offsets = [0, 16], sizes = [8, 16], strides = [1, 1]} : vector<8x48xf32> to vector<8x16xf32>
    %210 = vector.extract_strided_slice %197 {offsets = [0, 16], sizes = [8, 16], strides = [1, 1]} : vector<8x48xf32> to vector<8x16xf32>
    %211 = arith.addf %209, %210 : vector<8x16xf32>
    %212 = arith.negf %211 : vector<8x16xf32>
    %213 = math.exp %212 : vector<8x16xf32>
    %cst_71 = arith.constant 1.000000e+00 : f32
    %214 = vector.broadcast %cst_71 : f32 to vector<8x16xf32>
    %215 = arith.addf %214, %213 : vector<8x16xf32>
    %216 = arith.divf %214, %215 : vector<8x16xf32>
    %217 = vector.extract_strided_slice %200 {offsets = [0, 32], sizes = [8, 16], strides = [1, 1]} : vector<8x48xf32> to vector<8x16xf32>
    %218 = vector.extract_strided_slice %197 {offsets = [0, 32], sizes = [8, 16], strides = [1, 1]} : vector<8x48xf32> to vector<8x16xf32>
    %219 = arith.mulf %208, %218 : vector<8x16xf32>
    %220 = arith.addf %217, %219 : vector<8x16xf32>
    %221 = math.tanh %220 : vector<8x16xf32>
    %cst_72 = arith.constant 1.000000e+00 : f32
    %222 = vector.broadcast %cst_72 : f32 to vector<8x16xf32>
    %223 = arith.subf %222, %216 : vector<8x16xf32>
    %224 = arith.mulf %223, %221 : vector<8x16xf32>
    %225 = arith.mulf %216, %194 : vector<8x16xf32>
    %226 = arith.addf %224, %225 : vector<8x16xf32>
    %c0_73 = arith.constant 0 : index
    %c0_74 = arith.constant 0 : index
    %227 = vector.load %arg4[%c0_73, %c0_74] : memref<8x16xf32, #tpu.memory_space<vmem>>, vector<8x16xf32>
    tpu.vector_store %arg4[%c0_73, %c0_74], %226 {strides = array<i32>} : memref<8x16xf32, #tpu.memory_space<vmem>>, vector<8x16xf32>,
    %228 = arith.index_cast %c5_i32 : i32 to index
    %c0_75 = arith.constant 0 : index
    %c0_76 = arith.constant 0 : index
    %229 = vector.load %arg3[%228, %c0_75, %c0_76] : memref<16x8x16xf32, #tpu.memory_space<vmem>>, vector<1x8x16xf32>
    %230 = vector.shape_cast %229 : vector<1x8x16xf32> to vector<8x16xf32>
    %231 = vector.shape_cast %226 : vector<8x16xf32> to vector<1x8x16xf32>
    tpu.vector_store %arg3[%228, %c0_75, %c0_76], %231 {strides = array<i32>} : memref<16x8x16xf32, #tpu.memory_space<vmem>>, vector<1x8x16xf32>,
    %c6_i32 = arith.constant 6 : i32
    %c0_77 = arith.constant 0 : index
    %c0_78 = arith.constant 0 : index
    %232 = vector.load %arg4[%c0_77, %c0_78] : memref<8x16xf32, #tpu.memory_space<vmem>>, vector<8x16xf32>
    %cst_79 = arith.constant dense<0.000000e+00> : vector<8x48xf32>
    %233 = tpu.matmul %232, %2, %cst_79 {dimension_numbers = #tpu.dot_dimension_numbers<[1], [0], [0], [1], [0, 0, 1, 1], [], []>} : vector<8x16xf32>, vector<16x48xf32>, vector<8x48xf32> -> vector<8x48xf32>
    %234 = vector.broadcast %3 : vector<1x48xf32> to vector<8x48xf32>
    %235 = arith.addf %233, %234 : vector<8x48xf32>
    %236 = arith.index_cast %c6_i32 : i32 to index
    %c0_80 = arith.constant 0 : index
    %c0_81 = arith.constant 0 : index
    %237 = vector.load %arg0[%236, %c0_80, %c0_81] : memref<16x8x48xf32, #tpu.memory_space<vmem>>, vector<1x8x48xf32>
    %238 = vector.shape_cast %237 : vector<1x8x48xf32> to vector<8x48xf32>
    %239 = vector.extract_strided_slice %238 {offsets = [0, 0], sizes = [8, 16], strides = [1, 1]} : vector<8x48xf32> to vector<8x16xf32>
    %240 = vector.extract_strided_slice %235 {offsets = [0, 0], sizes = [8, 16], strides = [1, 1]} : vector<8x48xf32> to vector<8x16xf32>
    %241 = arith.addf %239, %240 : vector<8x16xf32>
    %242 = arith.negf %241 : vector<8x16xf32>
    %243 = math.exp %242 : vector<8x16xf32>
    %cst_82 = arith.constant 1.000000e+00 : f32
    %244 = vector.broadcast %cst_82 : f32 to vector<8x16xf32>
    %245 = arith.addf %244, %243 : vector<8x16xf32>
    %246 = arith.divf %244, %245 : vector<8x16xf32>
    %247 = vector.extract_strided_slice %238 {offsets = [0, 16], sizes = [8, 16], strides = [1, 1]} : vector<8x48xf32> to vector<8x16xf32>
    %248 = vector.extract_strided_slice %235 {offsets = [0, 16], sizes = [8, 16], strides = [1, 1]} : vector<8x48xf32> to vector<8x16xf32>
    %249 = arith.addf %247, %248 : vector<8x16xf32>
    %250 = arith.negf %249 : vector<8x16xf32>
    %251 = math.exp %250 : vector<8x16xf32>
    %cst_83 = arith.constant 1.000000e+00 : f32
    %252 = vector.broadcast %cst_83 : f32 to vector<8x16xf32>
    %253 = arith.addf %252, %251 : vector<8x16xf32>
    %254 = arith.divf %252, %253 : vector<8x16xf32>
    %255 = vector.extract_strided_slice %238 {offsets = [0, 32], sizes = [8, 16], strides = [1, 1]} : vector<8x48xf32> to vector<8x16xf32>
    %256 = vector.extract_strided_slice %235 {offsets = [0, 32], sizes = [8, 16], strides = [1, 1]} : vector<8x48xf32> to vector<8x16xf32>
    %257 = arith.mulf %246, %256 : vector<8x16xf32>
    %258 = arith.addf %255, %257 : vector<8x16xf32>
    %259 = math.tanh %258 : vector<8x16xf32>
    %cst_84 = arith.constant 1.000000e+00 : f32
    %260 = vector.broadcast %cst_84 : f32 to vector<8x16xf32>
    %261 = arith.subf %260, %254 : vector<8x16xf32>
    %262 = arith.mulf %261, %259 : vector<8x16xf32>
    %263 = arith.mulf %254, %232 : vector<8x16xf32>
    %264 = arith.addf %262, %263 : vector<8x16xf32>
    %c0_85 = arith.constant 0 : index
    %c0_86 = arith.constant 0 : index
    %265 = vector.load %arg4[%c0_85, %c0_86] : memref<8x16xf32, #tpu.memory_space<vmem>>, vector<8x16xf32>
    tpu.vector_store %arg4[%c0_85, %c0_86], %264 {strides = array<i32>} : memref<8x16xf32, #tpu.memory_space<vmem>>, vector<8x16xf32>,
    %266 = arith.index_cast %c6_i32 : i32 to index
    %c0_87 = arith.constant 0 : index
    %c0_88 = arith.constant 0 : index
    %267 = vector.load %arg3[%266, %c0_87, %c0_88] : memref<16x8x16xf32, #tpu.memory_space<vmem>>, vector<1x8x16xf32>
    %268 = vector.shape_cast %267 : vector<1x8x16xf32> to vector<8x16xf32>
    %269 = vector.shape_cast %264 : vector<8x16xf32> to vector<1x8x16xf32>
    tpu.vector_store %arg3[%266, %c0_87, %c0_88], %269 {strides = array<i32>} : memref<16x8x16xf32, #tpu.memory_space<vmem>>, vector<1x8x16xf32>,
    %c7_i32 = arith.constant 7 : i32
    %c0_89 = arith.constant 0 : index
    %c0_90 = arith.constant 0 : index
    %270 = vector.load %arg4[%c0_89, %c0_90] : memref<8x16xf32, #tpu.memory_space<vmem>>, vector<8x16xf32>
    %cst_91 = arith.constant dense<0.000000e+00> : vector<8x48xf32>
    %271 = tpu.matmul %270, %2, %cst_91 {dimension_numbers = #tpu.dot_dimension_numbers<[1], [0], [0], [1], [0, 0, 1, 1], [], []>} : vector<8x16xf32>, vector<16x48xf32>, vector<8x48xf32> -> vector<8x48xf32>
    %272 = vector.broadcast %3 : vector<1x48xf32> to vector<8x48xf32>
    %273 = arith.addf %271, %272 : vector<8x48xf32>
    %274 = arith.index_cast %c7_i32 : i32 to index
    %c0_92 = arith.constant 0 : index
    %c0_93 = arith.constant 0 : index
    %275 = vector.load %arg0[%274, %c0_92, %c0_93] : memref<16x8x48xf32, #tpu.memory_space<vmem>>, vector<1x8x48xf32>
    %276 = vector.shape_cast %275 : vector<1x8x48xf32> to vector<8x48xf32>
    %277 = vector.extract_strided_slice %276 {offsets = [0, 0], sizes = [8, 16], strides = [1, 1]} : vector<8x48xf32> to vector<8x16xf32>
    %278 = vector.extract_strided_slice %273 {offsets = [0, 0], sizes = [8, 16], strides = [1, 1]} : vector<8x48xf32> to vector<8x16xf32>
    %279 = arith.addf %277, %278 : vector<8x16xf32>
    %280 = arith.negf %279 : vector<8x16xf32>
    %281 = math.exp %280 : vector<8x16xf32>
    %cst_94 = arith.constant 1.000000e+00 : f32
    %282 = vector.broadcast %cst_94 : f32 to vector<8x16xf32>
    %283 = arith.addf %282, %281 : vector<8x16xf32>
    %284 = arith.divf %282, %283 : vector<8x16xf32>
    %285 = vector.extract_strided_slice %276 {offsets = [0, 16], sizes = [8, 16], strides = [1, 1]} : vector<8x48xf32> to vector<8x16xf32>
    %286 = vector.extract_strided_slice %273 {offsets = [0, 16], sizes = [8, 16], strides = [1, 1]} : vector<8x48xf32> to vector<8x16xf32>
    %287 = arith.addf %285, %286 : vector<8x16xf32>
    %288 = arith.negf %287 : vector<8x16xf32>
    %289 = math.exp %288 : vector<8x16xf32>
    %cst_95 = arith.constant 1.000000e+00 : f32
    %290 = vector.broadcast %cst_95 : f32 to vector<8x16xf32>
    %291 = arith.addf %290, %289 : vector<8x16xf32>
    %292 = arith.divf %290, %291 : vector<8x16xf32>
    %293 = vector.extract_strided_slice %276 {offsets = [0, 32], sizes = [8, 16], strides = [1, 1]} : vector<8x48xf32> to vector<8x16xf32>
    %294 = vector.extract_strided_slice %273 {offsets = [0, 32], sizes = [8, 16], strides = [1, 1]} : vector<8x48xf32> to vector<8x16xf32>
    %295 = arith.mulf %284, %294 : vector<8x16xf32>
    %296 = arith.addf %293, %295 : vector<8x16xf32>
    %297 = math.tanh %296 : vector<8x16xf32>
    %cst_96 = arith.constant 1.000000e+00 : f32
    %298 = vector.broadcast %cst_96 : f32 to vector<8x16xf32>
    %299 = arith.subf %298, %292 : vector<8x16xf32>
    %300 = arith.mulf %299, %297 : vector<8x16xf32>
    %301 = arith.mulf %292, %270 : vector<8x16xf32>
    %302 = arith.addf %300, %301 : vector<8x16xf32>
    %c0_97 = arith.constant 0 : index
    %c0_98 = arith.constant 0 : index
    %303 = vector.load %arg4[%c0_97, %c0_98] : memref<8x16xf32, #tpu.memory_space<vmem>>, vector<8x16xf32>
    tpu.vector_store %arg4[%c0_97, %c0_98], %302 {strides = array<i32>} : memref<8x16xf32, #tpu.memory_space<vmem>>, vector<8x16xf32>,
    %304 = arith.index_cast %c7_i32 : i32 to index
    %c0_99 = arith.constant 0 : index
    %c0_100 = arith.constant 0 : index
    %305 = vector.load %arg3[%304, %c0_99, %c0_100] : memref<16x8x16xf32, #tpu.memory_space<vmem>>, vector<1x8x16xf32>
    %306 = vector.shape_cast %305 : vector<1x8x16xf32> to vector<8x16xf32>
    %307 = vector.shape_cast %302 : vector<8x16xf32> to vector<1x8x16xf32>
    tpu.vector_store %arg3[%304, %c0_99, %c0_100], %307 {strides = array<i32>} : memref<16x8x16xf32, #tpu.memory_space<vmem>>, vector<1x8x16xf32>,
    %c8_i32 = arith.constant 8 : i32
    %c0_101 = arith.constant 0 : index
    %c0_102 = arith.constant 0 : index
    %308 = vector.load %arg4[%c0_101, %c0_102] : memref<8x16xf32, #tpu.memory_space<vmem>>, vector<8x16xf32>
    %cst_103 = arith.constant dense<0.000000e+00> : vector<8x48xf32>
    %309 = tpu.matmul %308, %2, %cst_103 {dimension_numbers = #tpu.dot_dimension_numbers<[1], [0], [0], [1], [0, 0, 1, 1], [], []>} : vector<8x16xf32>, vector<16x48xf32>, vector<8x48xf32> -> vector<8x48xf32>
    %310 = vector.broadcast %3 : vector<1x48xf32> to vector<8x48xf32>
    %311 = arith.addf %309, %310 : vector<8x48xf32>
    %312 = arith.index_cast %c8_i32 : i32 to index
    %c0_104 = arith.constant 0 : index
    %c0_105 = arith.constant 0 : index
    %313 = vector.load %arg0[%312, %c0_104, %c0_105] : memref<16x8x48xf32, #tpu.memory_space<vmem>>, vector<1x8x48xf32>
    %314 = vector.shape_cast %313 : vector<1x8x48xf32> to vector<8x48xf32>
    %315 = vector.extract_strided_slice %314 {offsets = [0, 0], sizes = [8, 16], strides = [1, 1]} : vector<8x48xf32> to vector<8x16xf32>
    %316 = vector.extract_strided_slice %311 {offsets = [0, 0], sizes = [8, 16], strides = [1, 1]} : vector<8x48xf32> to vector<8x16xf32>
    %317 = arith.addf %315, %316 : vector<8x16xf32>
    %318 = arith.negf %317 : vector<8x16xf32>
    %319 = math.exp %318 : vector<8x16xf32>
    %cst_106 = arith.constant 1.000000e+00 : f32
    %320 = vector.broadcast %cst_106 : f32 to vector<8x16xf32>
    %321 = arith.addf %320, %319 : vector<8x16xf32>
    %322 = arith.divf %320, %321 : vector<8x16xf32>
    %323 = vector.extract_strided_slice %314 {offsets = [0, 16], sizes = [8, 16], strides = [1, 1]} : vector<8x48xf32> to vector<8x16xf32>
    %324 = vector.extract_strided_slice %311 {offsets = [0, 16], sizes = [8, 16], strides = [1, 1]} : vector<8x48xf32> to vector<8x16xf32>
    %325 = arith.addf %323, %324 : vector<8x16xf32>
    %326 = arith.negf %325 : vector<8x16xf32>
    %327 = math.exp %326 : vector<8x16xf32>
    %cst_107 = arith.constant 1.000000e+00 : f32
    %328 = vector.broadcast %cst_107 : f32 to vector<8x16xf32>
    %329 = arith.addf %328, %327 : vector<8x16xf32>
    %330 = arith.divf %328, %329 : vector<8x16xf32>
    %331 = vector.extract_strided_slice %314 {offsets = [0, 32], sizes = [8, 16], strides = [1, 1]} : vector<8x48xf32> to vector<8x16xf32>
    %332 = vector.extract_strided_slice %311 {offsets = [0, 32], sizes = [8, 16], strides = [1, 1]} : vector<8x48xf32> to vector<8x16xf32>
    %333 = arith.mulf %322, %332 : vector<8x16xf32>
    %334 = arith.addf %331, %333 : vector<8x16xf32>
    %335 = math.tanh %334 : vector<8x16xf32>
    %cst_108 = arith.constant 1.000000e+00 : f32
    %336 = vector.broadcast %cst_108 : f32 to vector<8x16xf32>
    %337 = arith.subf %336, %330 : vector<8x16xf32>
    %338 = arith.mulf %337, %335 : vector<8x16xf32>
    %339 = arith.mulf %330, %308 : vector<8x16xf32>
    %340 = arith.addf %338, %339 : vector<8x16xf32>
    %c0_109 = arith.constant 0 : index
    %c0_110 = arith.constant 0 : index
    %341 = vector.load %arg4[%c0_109, %c0_110] : memref<8x16xf32, #tpu.memory_space<vmem>>, vector<8x16xf32>
    tpu.vector_store %arg4[%c0_109, %c0_110], %340 {strides = array<i32>} : memref<8x16xf32, #tpu.memory_space<vmem>>, vector<8x16xf32>,
    %342 = arith.index_cast %c8_i32 : i32 to index
    %c0_111 = arith.constant 0 : index
    %c0_112 = arith.constant 0 : index
    %343 = vector.load %arg3[%342, %c0_111, %c0_112] : memref<16x8x16xf32, #tpu.memory_space<vmem>>, vector<1x8x16xf32>
    %344 = vector.shape_cast %343 : vector<1x8x16xf32> to vector<8x16xf32>
    %345 = vector.shape_cast %340 : vector<8x16xf32> to vector<1x8x16xf32>
    tpu.vector_store %arg3[%342, %c0_111, %c0_112], %345 {strides = array<i32>} : memref<16x8x16xf32, #tpu.memory_space<vmem>>, vector<1x8x16xf32>,
    %c9_i32 = arith.constant 9 : i32
    %c0_113 = arith.constant 0 : index
    %c0_114 = arith.constant 0 : index
    %346 = vector.load %arg4[%c0_113, %c0_114] : memref<8x16xf32, #tpu.memory_space<vmem>>, vector<8x16xf32>
    %cst_115 = arith.constant dense<0.000000e+00> : vector<8x48xf32>
    %347 = tpu.matmul %346, %2, %cst_115 {dimension_numbers = #tpu.dot_dimension_numbers<[1], [0], [0], [1], [0, 0, 1, 1], [], []>} : vector<8x16xf32>, vector<16x48xf32>, vector<8x48xf32> -> vector<8x48xf32>
    %348 = vector.broadcast %3 : vector<1x48xf32> to vector<8x48xf32>
    %349 = arith.addf %347, %348 : vector<8x48xf32>
    %350 = arith.index_cast %c9_i32 : i32 to index
    %c0_116 = arith.constant 0 : index
    %c0_117 = arith.constant 0 : index
    %351 = vector.load %arg0[%350, %c0_116, %c0_117] : memref<16x8x48xf32, #tpu.memory_space<vmem>>, vector<1x8x48xf32>
    %352 = vector.shape_cast %351 : vector<1x8x48xf32> to vector<8x48xf32>
    %353 = vector.extract_strided_slice %352 {offsets = [0, 0], sizes = [8, 16], strides = [1, 1]} : vector<8x48xf32> to vector<8x16xf32>
    %354 = vector.extract_strided_slice %349 {offsets = [0, 0], sizes = [8, 16], strides = [1, 1]} : vector<8x48xf32> to vector<8x16xf32>
    %355 = arith.addf %353, %354 : vector<8x16xf32>
    %356 = arith.negf %355 : vector<8x16xf32>
    %357 = math.exp %356 : vector<8x16xf32>
    %cst_118 = arith.constant 1.000000e+00 : f32
    %358 = vector.broadcast %cst_118 : f32 to vector<8x16xf32>
    %359 = arith.addf %358, %357 : vector<8x16xf32>
    %360 = arith.divf %358, %359 : vector<8x16xf32>
    %361 = vector.extract_strided_slice %352 {offsets = [0, 16], sizes = [8, 16], strides = [1, 1]} : vector<8x48xf32> to vector<8x16xf32>
    %362 = vector.extract_strided_slice %349 {offsets = [0, 16], sizes = [8, 16], strides = [1, 1]} : vector<8x48xf32> to vector<8x16xf32>
    %363 = arith.addf %361, %362 : vector<8x16xf32>
    %364 = arith.negf %363 : vector<8x16xf32>
    %365 = math.exp %364 : vector<8x16xf32>
    %cst_119 = arith.constant 1.000000e+00 : f32
    %366 = vector.broadcast %cst_119 : f32 to vector<8x16xf32>
    %367 = arith.addf %366, %365 : vector<8x16xf32>
    %368 = arith.divf %366, %367 : vector<8x16xf32>
    %369 = vector.extract_strided_slice %352 {offsets = [0, 32], sizes = [8, 16], strides = [1, 1]} : vector<8x48xf32> to vector<8x16xf32>
    %370 = vector.extract_strided_slice %349 {offsets = [0, 32], sizes = [8, 16], strides = [1, 1]} : vector<8x48xf32> to vector<8x16xf32>
    %371 = arith.mulf %360, %370 : vector<8x16xf32>
    %372 = arith.addf %369, %371 : vector<8x16xf32>
    %373 = math.tanh %372 : vector<8x16xf32>
    %cst_120 = arith.constant 1.000000e+00 : f32
    %374 = vector.broadcast %cst_120 : f32 to vector<8x16xf32>
    %375 = arith.subf %374, %368 : vector<8x16xf32>
    %376 = arith.mulf %375, %373 : vector<8x16xf32>
    %377 = arith.mulf %368, %346 : vector<8x16xf32>
    %378 = arith.addf %376, %377 : vector<8x16xf32>
    %c0_121 = arith.constant 0 : index
    %c0_122 = arith.constant 0 : index
    %379 = vector.load %arg4[%c0_121, %c0_122] : memref<8x16xf32, #tpu.memory_space<vmem>>, vector<8x16xf32>
    tpu.vector_store %arg4[%c0_121, %c0_122], %378 {strides = array<i32>} : memref<8x16xf32, #tpu.memory_space<vmem>>, vector<8x16xf32>,
    %380 = arith.index_cast %c9_i32 : i32 to index
    %c0_123 = arith.constant 0 : index
    %c0_124 = arith.constant 0 : index
    %381 = vector.load %arg3[%380, %c0_123, %c0_124] : memref<16x8x16xf32, #tpu.memory_space<vmem>>, vector<1x8x16xf32>
    %382 = vector.shape_cast %381 : vector<1x8x16xf32> to vector<8x16xf32>
    %383 = vector.shape_cast %378 : vector<8x16xf32> to vector<1x8x16xf32>
    tpu.vector_store %arg3[%380, %c0_123, %c0_124], %383 {strides = array<i32>} : memref<16x8x16xf32, #tpu.memory_space<vmem>>, vector<1x8x16xf32>,
    %c10_i32 = arith.constant 10 : i32
    %c0_125 = arith.constant 0 : index
    %c0_126 = arith.constant 0 : index
    %384 = vector.load %arg4[%c0_125, %c0_126] : memref<8x16xf32, #tpu.memory_space<vmem>>, vector<8x16xf32>
    %cst_127 = arith.constant dense<0.000000e+00> : vector<8x48xf32>
    %385 = tpu.matmul %384, %2, %cst_127 {dimension_numbers = #tpu.dot_dimension_numbers<[1], [0], [0], [1], [0, 0, 1, 1], [], []>} : vector<8x16xf32>, vector<16x48xf32>, vector<8x48xf32> -> vector<8x48xf32>
    %386 = vector.broadcast %3 : vector<1x48xf32> to vector<8x48xf32>
    %387 = arith.addf %385, %386 : vector<8x48xf32>
    %388 = arith.index_cast %c10_i32 : i32 to index
    %c0_128 = arith.constant 0 : index
    %c0_129 = arith.constant 0 : index
    %389 = vector.load %arg0[%388, %c0_128, %c0_129] : memref<16x8x48xf32, #tpu.memory_space<vmem>>, vector<1x8x48xf32>
    %390 = vector.shape_cast %389 : vector<1x8x48xf32> to vector<8x48xf32>
    %391 = vector.extract_strided_slice %390 {offsets = [0, 0], sizes = [8, 16], strides = [1, 1]} : vector<8x48xf32> to vector<8x16xf32>
    %392 = vector.extract_strided_slice %387 {offsets = [0, 0], sizes = [8, 16], strides = [1, 1]} : vector<8x48xf32> to vector<8x16xf32>
    %393 = arith.addf %391, %392 : vector<8x16xf32>
    %394 = arith.negf %393 : vector<8x16xf32>
    %395 = math.exp %394 : vector<8x16xf32>
    %cst_130 = arith.constant 1.000000e+00 : f32
    %396 = vector.broadcast %cst_130 : f32 to vector<8x16xf32>
    %397 = arith.addf %396, %395 : vector<8x16xf32>
    %398 = arith.divf %396, %397 : vector<8x16xf32>
    %399 = vector.extract_strided_slice %390 {offsets = [0, 16], sizes = [8, 16], strides = [1, 1]} : vector<8x48xf32> to vector<8x16xf32>
    %400 = vector.extract_strided_slice %387 {offsets = [0, 16], sizes = [8, 16], strides = [1, 1]} : vector<8x48xf32> to vector<8x16xf32>
    %401 = arith.addf %399, %400 : vector<8x16xf32>
    %402 = arith.negf %401 : vector<8x16xf32>
    %403 = math.exp %402 : vector<8x16xf32>
    %cst_131 = arith.constant 1.000000e+00 : f32
    %404 = vector.broadcast %cst_131 : f32 to vector<8x16xf32>
    %405 = arith.addf %404, %403 : vector<8x16xf32>
    %406 = arith.divf %404, %405 : vector<8x16xf32>
    %407 = vector.extract_strided_slice %390 {offsets = [0, 32], sizes = [8, 16], strides = [1, 1]} : vector<8x48xf32> to vector<8x16xf32>
    %408 = vector.extract_strided_slice %387 {offsets = [0, 32], sizes = [8, 16], strides = [1, 1]} : vector<8x48xf32> to vector<8x16xf32>
    %409 = arith.mulf %398, %408 : vector<8x16xf32>
    %410 = arith.addf %407, %409 : vector<8x16xf32>
    %411 = math.tanh %410 : vector<8x16xf32>
    %cst_132 = arith.constant 1.000000e+00 : f32
    %412 = vector.broadcast %cst_132 : f32 to vector<8x16xf32>
    %413 = arith.subf %412, %406 : vector<8x16xf32>
    %414 = arith.mulf %413, %411 : vector<8x16xf32>
    %415 = arith.mulf %406, %384 : vector<8x16xf32>
    %416 = arith.addf %414, %415 : vector<8x16xf32>
    %c0_133 = arith.constant 0 : index
    %c0_134 = arith.constant 0 : index
    %417 = vector.load %arg4[%c0_133, %c0_134] : memref<8x16xf32, #tpu.memory_space<vmem>>, vector<8x16xf32>
    tpu.vector_store %arg4[%c0_133, %c0_134], %416 {strides = array<i32>} : memref<8x16xf32, #tpu.memory_space<vmem>>, vector<8x16xf32>,
    %418 = arith.index_cast %c10_i32 : i32 to index
    %c0_135 = arith.constant 0 : index
    %c0_136 = arith.constant 0 : index
    %419 = vector.load %arg3[%418, %c0_135, %c0_136] : memref<16x8x16xf32, #tpu.memory_space<vmem>>, vector<1x8x16xf32>
    %420 = vector.shape_cast %419 : vector<1x8x16xf32> to vector<8x16xf32>
    %421 = vector.shape_cast %416 : vector<8x16xf32> to vector<1x8x16xf32>
    tpu.vector_store %arg3[%418, %c0_135, %c0_136], %421 {strides = array<i32>} : memref<16x8x16xf32, #tpu.memory_space<vmem>>, vector<1x8x16xf32>,
    %c11_i32 = arith.constant 11 : i32
    %c0_137 = arith.constant 0 : index
    %c0_138 = arith.constant 0 : index
    %422 = vector.load %arg4[%c0_137, %c0_138] : memref<8x16xf32, #tpu.memory_space<vmem>>, vector<8x16xf32>
    %cst_139 = arith.constant dense<0.000000e+00> : vector<8x48xf32>
    %423 = tpu.matmul %422, %2, %cst_139 {dimension_numbers = #tpu.dot_dimension_numbers<[1], [0], [0], [1], [0, 0, 1, 1], [], []>} : vector<8x16xf32>, vector<16x48xf32>, vector<8x48xf32> -> vector<8x48xf32>
    %424 = vector.broadcast %3 : vector<1x48xf32> to vector<8x48xf32>
    %425 = arith.addf %423, %424 : vector<8x48xf32>
    %426 = arith.index_cast %c11_i32 : i32 to index
    %c0_140 = arith.constant 0 : index
    %c0_141 = arith.constant 0 : index
    %427 = vector.load %arg0[%426, %c0_140, %c0_141] : memref<16x8x48xf32, #tpu.memory_space<vmem>>, vector<1x8x48xf32>
    %428 = vector.shape_cast %427 : vector<1x8x48xf32> to vector<8x48xf32>
    %429 = vector.extract_strided_slice %428 {offsets = [0, 0], sizes = [8, 16], strides = [1, 1]} : vector<8x48xf32> to vector<8x16xf32>
    %430 = vector.extract_strided_slice %425 {offsets = [0, 0], sizes = [8, 16], strides = [1, 1]} : vector<8x48xf32> to vector<8x16xf32>
    %431 = arith.addf %429, %430 : vector<8x16xf32>
    %432 = arith.negf %431 : vector<8x16xf32>
    %433 = math.exp %432 : vector<8x16xf32>
    %cst_142 = arith.constant 1.000000e+00 : f32
    %434 = vector.broadcast %cst_142 : f32 to vector<8x16xf32>
    %435 = arith.addf %434, %433 : vector<8x16xf32>
    %436 = arith.divf %434, %435 : vector<8x16xf32>
    %437 = vector.extract_strided_slice %428 {offsets = [0, 16], sizes = [8, 16], strides = [1, 1]} : vector<8x48xf32> to vector<8x16xf32>
    %438 = vector.extract_strided_slice %425 {offsets = [0, 16], sizes = [8, 16], strides = [1, 1]} : vector<8x48xf32> to vector<8x16xf32>
    %439 = arith.addf %437, %438 : vector<8x16xf32>
    %440 = arith.negf %439 : vector<8x16xf32>
    %441 = math.exp %440 : vector<8x16xf32>
    %cst_143 = arith.constant 1.000000e+00 : f32
    %442 = vector.broadcast %cst_143 : f32 to vector<8x16xf32>
    %443 = arith.addf %442, %441 : vector<8x16xf32>
    %444 = arith.divf %442, %443 : vector<8x16xf32>
    %445 = vector.extract_strided_slice %428 {offsets = [0, 32], sizes = [8, 16], strides = [1, 1]} : vector<8x48xf32> to vector<8x16xf32>
    %446 = vector.extract_strided_slice %425 {offsets = [0, 32], sizes = [8, 16], strides = [1, 1]} : vector<8x48xf32> to vector<8x16xf32>
    %447 = arith.mulf %436, %446 : vector<8x16xf32>
    %448 = arith.addf %445, %447 : vector<8x16xf32>
    %449 = math.tanh %448 : vector<8x16xf32>
    %cst_144 = arith.constant 1.000000e+00 : f32
    %450 = vector.broadcast %cst_144 : f32 to vector<8x16xf32>
    %451 = arith.subf %450, %444 : vector<8x16xf32>
    %452 = arith.mulf %451, %449 : vector<8x16xf32>
    %453 = arith.mulf %444, %422 : vector<8x16xf32>
    %454 = arith.addf %452, %453 : vector<8x16xf32>
    %c0_145 = arith.constant 0 : index
    %c0_146 = arith.constant 0 : index
    %455 = vector.load %arg4[%c0_145, %c0_146] : memref<8x16xf32, #tpu.memory_space<vmem>>, vector<8x16xf32>
    tpu.vector_store %arg4[%c0_145, %c0_146], %454 {strides = array<i32>} : memref<8x16xf32, #tpu.memory_space<vmem>>, vector<8x16xf32>,
    %456 = arith.index_cast %c11_i32 : i32 to index
    %c0_147 = arith.constant 0 : index
    %c0_148 = arith.constant 0 : index
    %457 = vector.load %arg3[%456, %c0_147, %c0_148] : memref<16x8x16xf32, #tpu.memory_space<vmem>>, vector<1x8x16xf32>
    %458 = vector.shape_cast %457 : vector<1x8x16xf32> to vector<8x16xf32>
    %459 = vector.shape_cast %454 : vector<8x16xf32> to vector<1x8x16xf32>
    tpu.vector_store %arg3[%456, %c0_147, %c0_148], %459 {strides = array<i32>} : memref<16x8x16xf32, #tpu.memory_space<vmem>>, vector<1x8x16xf32>,
    %c12_i32 = arith.constant 12 : i32
    %c0_149 = arith.constant 0 : index
    %c0_150 = arith.constant 0 : index
    %460 = vector.load %arg4[%c0_149, %c0_150] : memref<8x16xf32, #tpu.memory_space<vmem>>, vector<8x16xf32>
    %cst_151 = arith.constant dense<0.000000e+00> : vector<8x48xf32>
    %461 = tpu.matmul %460, %2, %cst_151 {dimension_numbers = #tpu.dot_dimension_numbers<[1], [0], [0], [1], [0, 0, 1, 1], [], []>} : vector<8x16xf32>, vector<16x48xf32>, vector<8x48xf32> -> vector<8x48xf32>
    %462 = vector.broadcast %3 : vector<1x48xf32> to vector<8x48xf32>
    %463 = arith.addf %461, %462 : vector<8x48xf32>
    %464 = arith.index_cast %c12_i32 : i32 to index
    %c0_152 = arith.constant 0 : index
    %c0_153 = arith.constant 0 : index
    %465 = vector.load %arg0[%464, %c0_152, %c0_153] : memref<16x8x48xf32, #tpu.memory_space<vmem>>, vector<1x8x48xf32>
    %466 = vector.shape_cast %465 : vector<1x8x48xf32> to vector<8x48xf32>
    %467 = vector.extract_strided_slice %466 {offsets = [0, 0], sizes = [8, 16], strides = [1, 1]} : vector<8x48xf32> to vector<8x16xf32>
    %468 = vector.extract_strided_slice %463 {offsets = [0, 0], sizes = [8, 16], strides = [1, 1]} : vector<8x48xf32> to vector<8x16xf32>
    %469 = arith.addf %467, %468 : vector<8x16xf32>
    %470 = arith.negf %469 : vector<8x16xf32>
    %471 = math.exp %470 : vector<8x16xf32>
    %cst_154 = arith.constant 1.000000e+00 : f32
    %472 = vector.broadcast %cst_154 : f32 to vector<8x16xf32>
    %473 = arith.addf %472, %471 : vector<8x16xf32>
    %474 = arith.divf %472, %473 : vector<8x16xf32>
    %475 = vector.extract_strided_slice %466 {offsets = [0, 16], sizes = [8, 16], strides = [1, 1]} : vector<8x48xf32> to vector<8x16xf32>
    %476 = vector.extract_strided_slice %463 {offsets = [0, 16], sizes = [8, 16], strides = [1, 1]} : vector<8x48xf32> to vector<8x16xf32>
    %477 = arith.addf %475, %476 : vector<8x16xf32>
    %478 = arith.negf %477 : vector<8x16xf32>
    %479 = math.exp %478 : vector<8x16xf32>
    %cst_155 = arith.constant 1.000000e+00 : f32
    %480 = vector.broadcast %cst_155 : f32 to vector<8x16xf32>
    %481 = arith.addf %480, %479 : vector<8x16xf32>
    %482 = arith.divf %480, %481 : vector<8x16xf32>
    %483 = vector.extract_strided_slice %466 {offsets = [0, 32], sizes = [8, 16], strides = [1, 1]} : vector<8x48xf32> to vector<8x16xf32>
    %484 = vector.extract_strided_slice %463 {offsets = [0, 32], sizes = [8, 16], strides = [1, 1]} : vector<8x48xf32> to vector<8x16xf32>
    %485 = arith.mulf %474, %484 : vector<8x16xf32>
    %486 = arith.addf %483, %485 : vector<8x16xf32>
    %487 = math.tanh %486 : vector<8x16xf32>
    %cst_156 = arith.constant 1.000000e+00 : f32
    %488 = vector.broadcast %cst_156 : f32 to vector<8x16xf32>
    %489 = arith.subf %488, %482 : vector<8x16xf32>
    %490 = arith.mulf %489, %487 : vector<8x16xf32>
    %491 = arith.mulf %482, %460 : vector<8x16xf32>
    %492 = arith.addf %490, %491 : vector<8x16xf32>
    %c0_157 = arith.constant 0 : index
    %c0_158 = arith.constant 0 : index
    %493 = vector.load %arg4[%c0_157, %c0_158] : memref<8x16xf32, #tpu.memory_space<vmem>>, vector<8x16xf32>
    tpu.vector_store %arg4[%c0_157, %c0_158], %492 {strides = array<i32>} : memref<8x16xf32, #tpu.memory_space<vmem>>, vector<8x16xf32>,
    %494 = arith.index_cast %c12_i32 : i32 to index
    %c0_159 = arith.constant 0 : index
    %c0_160 = arith.constant 0 : index
    %495 = vector.load %arg3[%494, %c0_159, %c0_160] : memref<16x8x16xf32, #tpu.memory_space<vmem>>, vector<1x8x16xf32>
    %496 = vector.shape_cast %495 : vector<1x8x16xf32> to vector<8x16xf32>
    %497 = vector.shape_cast %492 : vector<8x16xf32> to vector<1x8x16xf32>
    tpu.vector_store %arg3[%494, %c0_159, %c0_160], %497 {strides = array<i32>} : memref<16x8x16xf32, #tpu.memory_space<vmem>>, vector<1x8x16xf32>,
    %c13_i32 = arith.constant 13 : i32
    %c0_161 = arith.constant 0 : index
    %c0_162 = arith.constant 0 : index
    %498 = vector.load %arg4[%c0_161, %c0_162] : memref<8x16xf32, #tpu.memory_space<vmem>>, vector<8x16xf32>
    %cst_163 = arith.constant dense<0.000000e+00> : vector<8x48xf32>
    %499 = tpu.matmul %498, %2, %cst_163 {dimension_numbers = #tpu.dot_dimension_numbers<[1], [0], [0], [1], [0, 0, 1, 1], [], []>} : vector<8x16xf32>, vector<16x48xf32>, vector<8x48xf32> -> vector<8x48xf32>
    %500 = vector.broadcast %3 : vector<1x48xf32> to vector<8x48xf32>
    %501 = arith.addf %499, %500 : vector<8x48xf32>
    %502 = arith.index_cast %c13_i32 : i32 to index
    %c0_164 = arith.constant 0 : index
    %c0_165 = arith.constant 0 : index
    %503 = vector.load %arg0[%502, %c0_164, %c0_165] : memref<16x8x48xf32, #tpu.memory_space<vmem>>, vector<1x8x48xf32>
    %504 = vector.shape_cast %503 : vector<1x8x48xf32> to vector<8x48xf32>
    %505 = vector.extract_strided_slice %504 {offsets = [0, 0], sizes = [8, 16], strides = [1, 1]} : vector<8x48xf32> to vector<8x16xf32>
    %506 = vector.extract_strided_slice %501 {offsets = [0, 0], sizes = [8, 16], strides = [1, 1]} : vector<8x48xf32> to vector<8x16xf32>
    %507 = arith.addf %505, %506 : vector<8x16xf32>
    %508 = arith.negf %507 : vector<8x16xf32>
    %509 = math.exp %508 : vector<8x16xf32>
    %cst_166 = arith.constant 1.000000e+00 : f32
    %510 = vector.broadcast %cst_166 : f32 to vector<8x16xf32>
    %511 = arith.addf %510, %509 : vector<8x16xf32>
    %512 = arith.divf %510, %511 : vector<8x16xf32>
    %513 = vector.extract_strided_slice %504 {offsets = [0, 16], sizes = [8, 16], strides = [1, 1]} : vector<8x48xf32> to vector<8x16xf32>
    %514 = vector.extract_strided_slice %501 {offsets = [0, 16], sizes = [8, 16], strides = [1, 1]} : vector<8x48xf32> to vector<8x16xf32>
    %515 = arith.addf %513, %514 : vector<8x16xf32>
    %516 = arith.negf %515 : vector<8x16xf32>
    %517 = math.exp %516 : vector<8x16xf32>
    %cst_167 = arith.constant 1.000000e+00 : f32
    %518 = vector.broadcast %cst_167 : f32 to vector<8x16xf32>
    %519 = arith.addf %518, %517 : vector<8x16xf32>
    %520 = arith.divf %518, %519 : vector<8x16xf32>
    %521 = vector.extract_strided_slice %504 {offsets = [0, 32], sizes = [8, 16], strides = [1, 1]} : vector<8x48xf32> to vector<8x16xf32>
    %522 = vector.extract_strided_slice %501 {offsets = [0, 32], sizes = [8, 16], strides = [1, 1]} : vector<8x48xf32> to vector<8x16xf32>
    %523 = arith.mulf %512, %522 : vector<8x16xf32>
    %524 = arith.addf %521, %523 : vector<8x16xf32>
    %525 = math.tanh %524 : vector<8x16xf32>
    %cst_168 = arith.constant 1.000000e+00 : f32
    %526 = vector.broadcast %cst_168 : f32 to vector<8x16xf32>
    %527 = arith.subf %526, %520 : vector<8x16xf32>
    %528 = arith.mulf %527, %525 : vector<8x16xf32>
    %529 = arith.mulf %520, %498 : vector<8x16xf32>
    %530 = arith.addf %528, %529 : vector<8x16xf32>
    %c0_169 = arith.constant 0 : index
    %c0_170 = arith.constant 0 : index
    %531 = vector.load %arg4[%c0_169, %c0_170] : memref<8x16xf32, #tpu.memory_space<vmem>>, vector<8x16xf32>
    tpu.vector_store %arg4[%c0_169, %c0_170], %530 {strides = array<i32>} : memref<8x16xf32, #tpu.memory_space<vmem>>, vector<8x16xf32>,
    %532 = arith.index_cast %c13_i32 : i32 to index
    %c0_171 = arith.constant 0 : index
    %c0_172 = arith.constant 0 : index
    %533 = vector.load %arg3[%532, %c0_171, %c0_172] : memref<16x8x16xf32, #tpu.memory_space<vmem>>, vector<1x8x16xf32>
    %534 = vector.shape_cast %533 : vector<1x8x16xf32> to vector<8x16xf32>
    %535 = vector.shape_cast %530 : vector<8x16xf32> to vector<1x8x16xf32>
    tpu.vector_store %arg3[%532, %c0_171, %c0_172], %535 {strides = array<i32>} : memref<16x8x16xf32, #tpu.memory_space<vmem>>, vector<1x8x16xf32>,
    %c14_i32 = arith.constant 14 : i32
    %c0_173 = arith.constant 0 : index
    %c0_174 = arith.constant 0 : index
    %536 = vector.load %arg4[%c0_173, %c0_174] : memref<8x16xf32, #tpu.memory_space<vmem>>, vector<8x16xf32>
    %cst_175 = arith.constant dense<0.000000e+00> : vector<8x48xf32>
    %537 = tpu.matmul %536, %2, %cst_175 {dimension_numbers = #tpu.dot_dimension_numbers<[1], [0], [0], [1], [0, 0, 1, 1], [], []>} : vector<8x16xf32>, vector<16x48xf32>, vector<8x48xf32> -> vector<8x48xf32>
    %538 = vector.broadcast %3 : vector<1x48xf32> to vector<8x48xf32>
    %539 = arith.addf %537, %538 : vector<8x48xf32>
    %540 = arith.index_cast %c14_i32 : i32 to index
    %c0_176 = arith.constant 0 : index
    %c0_177 = arith.constant 0 : index
    %541 = vector.load %arg0[%540, %c0_176, %c0_177] : memref<16x8x48xf32, #tpu.memory_space<vmem>>, vector<1x8x48xf32>
    %542 = vector.shape_cast %541 : vector<1x8x48xf32> to vector<8x48xf32>
    %543 = vector.extract_strided_slice %542 {offsets = [0, 0], sizes = [8, 16], strides = [1, 1]} : vector<8x48xf32> to vector<8x16xf32>
    %544 = vector.extract_strided_slice %539 {offsets = [0, 0], sizes = [8, 16], strides = [1, 1]} : vector<8x48xf32> to vector<8x16xf32>
    %545 = arith.addf %543, %544 : vector<8x16xf32>
    %546 = arith.negf %545 : vector<8x16xf32>
    %547 = math.exp %546 : vector<8x16xf32>
    %cst_178 = arith.constant 1.000000e+00 : f32
    %548 = vector.broadcast %cst_178 : f32 to vector<8x16xf32>
    %549 = arith.addf %548, %547 : vector<8x16xf32>
    %550 = arith.divf %548, %549 : vector<8x16xf32>
    %551 = vector.extract_strided_slice %542 {offsets = [0, 16], sizes = [8, 16], strides = [1, 1]} : vector<8x48xf32> to vector<8x16xf32>
    %552 = vector.extract_strided_slice %539 {offsets = [0, 16], sizes = [8, 16], strides = [1, 1]} : vector<8x48xf32> to vector<8x16xf32>
    %553 = arith.addf %551, %552 : vector<8x16xf32>
    %554 = arith.negf %553 : vector<8x16xf32>
    %555 = math.exp %554 : vector<8x16xf32>
    %cst_179 = arith.constant 1.000000e+00 : f32
    %556 = vector.broadcast %cst_179 : f32 to vector<8x16xf32>
    %557 = arith.addf %556, %555 : vector<8x16xf32>
    %558 = arith.divf %556, %557 : vector<8x16xf32>
    %559 = vector.extract_strided_slice %542 {offsets = [0, 32], sizes = [8, 16], strides = [1, 1]} : vector<8x48xf32> to vector<8x16xf32>
    %560 = vector.extract_strided_slice %539 {offsets = [0, 32], sizes = [8, 16], strides = [1, 1]} : vector<8x48xf32> to vector<8x16xf32>
    %561 = arith.mulf %550, %560 : vector<8x16xf32>
    %562 = arith.addf %559, %561 : vector<8x16xf32>
    %563 = math.tanh %562 : vector<8x16xf32>
    %cst_180 = arith.constant 1.000000e+00 : f32
    %564 = vector.broadcast %cst_180 : f32 to vector<8x16xf32>
    %565 = arith.subf %564, %558 : vector<8x16xf32>
    %566 = arith.mulf %565, %563 : vector<8x16xf32>
    %567 = arith.mulf %558, %536 : vector<8x16xf32>
    %568 = arith.addf %566, %567 : vector<8x16xf32>
    %c0_181 = arith.constant 0 : index
    %c0_182 = arith.constant 0 : index
    %569 = vector.load %arg4[%c0_181, %c0_182] : memref<8x16xf32, #tpu.memory_space<vmem>>, vector<8x16xf32>
    tpu.vector_store %arg4[%c0_181, %c0_182], %568 {strides = array<i32>} : memref<8x16xf32, #tpu.memory_space<vmem>>, vector<8x16xf32>,
    %570 = arith.index_cast %c14_i32 : i32 to index
    %c0_183 = arith.constant 0 : index
    %c0_184 = arith.constant 0 : index
    %571 = vector.load %arg3[%570, %c0_183, %c0_184] : memref<16x8x16xf32, #tpu.memory_space<vmem>>, vector<1x8x16xf32>
    %572 = vector.shape_cast %571 : vector<1x8x16xf32> to vector<8x16xf32>
    %573 = vector.shape_cast %568 : vector<8x16xf32> to vector<1x8x16xf32>
    tpu.vector_store %arg3[%570, %c0_183, %c0_184], %573 {strides = array<i32>} : memref<16x8x16xf32, #tpu.memory_space<vmem>>, vector<1x8x16xf32>,
    %c15_i32 = arith.constant 15 : i32
    %c0_185 = arith.constant 0 : index
    %c0_186 = arith.constant 0 : index
    %574 = vector.load %arg4[%c0_185, %c0_186] : memref<8x16xf32, #tpu.memory_space<vmem>>, vector<8x16xf32>
    %cst_187 = arith.constant dense<0.000000e+00> : vector<8x48xf32>
    %575 = tpu.matmul %574, %2, %cst_187 {dimension_numbers = #tpu.dot_dimension_numbers<[1], [0], [0], [1], [0, 0, 1, 1], [], []>} : vector<8x16xf32>, vector<16x48xf32>, vector<8x48xf32> -> vector<8x48xf32>
    %576 = vector.broadcast %3 : vector<1x48xf32> to vector<8x48xf32>
    %577 = arith.addf %575, %576 : vector<8x48xf32>
    %578 = arith.index_cast %c15_i32 : i32 to index
    %c0_188 = arith.constant 0 : index
    %c0_189 = arith.constant 0 : index
    %579 = vector.load %arg0[%578, %c0_188, %c0_189] : memref<16x8x48xf32, #tpu.memory_space<vmem>>, vector<1x8x48xf32>
    %580 = vector.shape_cast %579 : vector<1x8x48xf32> to vector<8x48xf32>
    %581 = vector.extract_strided_slice %580 {offsets = [0, 0], sizes = [8, 16], strides = [1, 1]} : vector<8x48xf32> to vector<8x16xf32>
    %582 = vector.extract_strided_slice %577 {offsets = [0, 0], sizes = [8, 16], strides = [1, 1]} : vector<8x48xf32> to vector<8x16xf32>
    %583 = arith.addf %581, %582 : vector<8x16xf32>
    %584 = arith.negf %583 : vector<8x16xf32>
    %585 = math.exp %584 : vector<8x16xf32>
    %cst_190 = arith.constant 1.000000e+00 : f32
    %586 = vector.broadcast %cst_190 : f32 to vector<8x16xf32>
    %587 = arith.addf %586, %585 : vector<8x16xf32>
    %588 = arith.divf %586, %587 : vector<8x16xf32>
    %589 = vector.extract_strided_slice %580 {offsets = [0, 16], sizes = [8, 16], strides = [1, 1]} : vector<8x48xf32> to vector<8x16xf32>
    %590 = vector.extract_strided_slice %577 {offsets = [0, 16], sizes = [8, 16], strides = [1, 1]} : vector<8x48xf32> to vector<8x16xf32>
    %591 = arith.addf %589, %590 : vector<8x16xf32>
    %592 = arith.negf %591 : vector<8x16xf32>
    %593 = math.exp %592 : vector<8x16xf32>
    %cst_191 = arith.constant 1.000000e+00 : f32
    %594 = vector.broadcast %cst_191 : f32 to vector<8x16xf32>
    %595 = arith.addf %594, %593 : vector<8x16xf32>
    %596 = arith.divf %594, %595 : vector<8x16xf32>
    %597 = vector.extract_strided_slice %580 {offsets = [0, 32], sizes = [8, 16], strides = [1, 1]} : vector<8x48xf32> to vector<8x16xf32>
    %598 = vector.extract_strided_slice %577 {offsets = [0, 32], sizes = [8, 16], strides = [1, 1]} : vector<8x48xf32> to vector<8x16xf32>
    %599 = arith.mulf %588, %598 : vector<8x16xf32>
    %600 = arith.addf %597, %599 : vector<8x16xf32>
    %601 = math.tanh %600 : vector<8x16xf32>
    %cst_192 = arith.constant 1.000000e+00 : f32
    %602 = vector.broadcast %cst_192 : f32 to vector<8x16xf32>
    %603 = arith.subf %602, %596 : vector<8x16xf32>
    %604 = arith.mulf %603, %601 : vector<8x16xf32>
    %605 = arith.mulf %596, %574 : vector<8x16xf32>
    %606 = arith.addf %604, %605 : vector<8x16xf32>
    %c0_193 = arith.constant 0 : index
    %c0_194 = arith.constant 0 : index
    %607 = vector.load %arg4[%c0_193, %c0_194] : memref<8x16xf32, #tpu.memory_space<vmem>>, vector<8x16xf32>
    tpu.vector_store %arg4[%c0_193, %c0_194], %606 {strides = array<i32>} : memref<8x16xf32, #tpu.memory_space<vmem>>, vector<8x16xf32>,
    %608 = arith.index_cast %c15_i32 : i32 to index
    %c0_195 = arith.constant 0 : index
    %c0_196 = arith.constant 0 : index
    %609 = vector.load %arg3[%608, %c0_195, %c0_196] : memref<16x8x16xf32, #tpu.memory_space<vmem>>, vector<1x8x16xf32>
    %610 = vector.shape_cast %609 : vector<1x8x16xf32> to vector<8x16xf32>
    %611 = vector.shape_cast %606 : vector<8x16xf32> to vector<1x8x16xf32>
    tpu.vector_store %arg3[%608, %c0_195, %c0_196], %611 {strides = array<i32>} : memref<16x8x16xf32, #tpu.memory_space<vmem>>, vector<1x8x16xf32>,
    %c16_i32 = arith.constant 16 : i32
    return
  }
}

module attributes {stable_mosaic.version = 11 : i64} {
  func.func @_attn_score_kernel(%arg0: memref<128x16xf32, #tpu.memory_space<vmem>>, %arg1: memref<16x16xf32, #tpu.memory_space<vmem>>, %arg2: memref<1x16xf32, #tpu.memory_space<vmem>>, %arg3: memref<1x16xf32, #tpu.memory_space<vmem>>, %arg4: memref<128x1xf32, #tpu.memory_space<vmem>>) attributes {dimension_semantics = [], scalar_prefetch = 0 : i64, scratch_operands = 0 : i64, tpu.core_type = #tpu.core_type<tc>} {
    %c0 = arith.constant 0 : index
    %c0_0 = arith.constant 0 : index
    %0 = vector.load %arg0[%c0, %c0_0] : memref<128x16xf32, #tpu.memory_space<vmem>>, vector<128x16xf32>
    %c0_1 = arith.constant 0 : index
    %c0_2 = arith.constant 0 : index
    %1 = vector.load %arg1[%c0_1, %c0_2] : memref<16x16xf32, #tpu.memory_space<vmem>>, vector<16x16xf32>
    %cst = arith.constant dense<0.000000e+00> : vector<128x16xf32>
    %2 = tpu.matmul %0, %1, %cst {dimension_numbers = #tpu.dot_dimension_numbers<[1], [0], [0], [1], [0, 0, 1, 1], [], []>} : vector<128x16xf32>, vector<16x16xf32>, vector<128x16xf32> -> vector<128x16xf32>
    %c0_3 = arith.constant 0 : index
    %c0_4 = arith.constant 0 : index
    %3 = vector.load %arg2[%c0_3, %c0_4] : memref<1x16xf32, #tpu.memory_space<vmem>>, vector<1x16xf32>
    %4 = vector.broadcast %3 : vector<1x16xf32> to vector<128x16xf32>
    %5 = arith.addf %2, %4 : vector<128x16xf32>
    %6 = math.tanh %5 : vector<128x16xf32>
    %c0_5 = arith.constant 0 : index
    %c0_6 = arith.constant 0 : index
    %7 = vector.load %arg3[%c0_5, %c0_6] : memref<1x16xf32, #tpu.memory_space<vmem>>, vector<1x16xf32>
    %8 = vector.broadcast %7 : vector<1x16xf32> to vector<128x16xf32>
    %9 = arith.mulf %6, %8 : vector<128x16xf32>
    %cst_7 = arith.constant dense<0.000000e+00> : vector<128xf32>
    %10 = vector.multi_reduction <add>, %9, %cst_7 [1] : vector<128x16xf32> to vector<128xf32>
    %11 = vector.shape_cast %10 : vector<128xf32> to vector<128x1xf32>
    %c0_8 = arith.constant 0 : index
    %c0_9 = arith.constant 0 : index
    %12 = vector.load %arg4[%c0_8, %c0_9] : memref<128x1xf32, #tpu.memory_space<vmem>>, vector<128x1xf32>
    tpu.vector_store %arg4[%c0_8, %c0_9], %11 {strides = array<i32>} : memref<128x1xf32, #tpu.memory_space<vmem>>, vector<128x1xf32>,
    return
  }
}

module attributes {stable_mosaic.version = 11 : i64} {
  func.func @_linear_kernel(%arg0: memref<8x16xf32, #tpu.memory_space<vmem>>, %arg1: memref<16x48xf32, #tpu.memory_space<vmem>>, %arg2: memref<1x48xf32, #tpu.memory_space<vmem>>, %arg3: memref<8x48xf32, #tpu.memory_space<vmem>>) attributes {dimension_semantics = [], scalar_prefetch = 0 : i64, scratch_operands = 0 : i64, tpu.core_type = #tpu.core_type<tc>} {
    %c0 = arith.constant 0 : index
    %c0_0 = arith.constant 0 : index
    %0 = vector.load %arg0[%c0, %c0_0] : memref<8x16xf32, #tpu.memory_space<vmem>>, vector<8x16xf32>
    %c0_1 = arith.constant 0 : index
    %c0_2 = arith.constant 0 : index
    %1 = vector.load %arg1[%c0_1, %c0_2] : memref<16x48xf32, #tpu.memory_space<vmem>>, vector<16x48xf32>
    %cst = arith.constant dense<0.000000e+00> : vector<8x48xf32>
    %2 = tpu.matmul %0, %1, %cst {dimension_numbers = #tpu.dot_dimension_numbers<[1], [0], [0], [1], [0, 0, 1, 1], [], []>} : vector<8x16xf32>, vector<16x48xf32>, vector<8x48xf32> -> vector<8x48xf32>
    %c0_3 = arith.constant 0 : index
    %c0_4 = arith.constant 0 : index
    %3 = vector.load %arg2[%c0_3, %c0_4] : memref<1x48xf32, #tpu.memory_space<vmem>>, vector<1x48xf32>
    %4 = vector.broadcast %3 : vector<1x48xf32> to vector<8x48xf32>
    %5 = arith.addf %2, %4 : vector<8x48xf32>
    %c0_5 = arith.constant 0 : index
    %c0_6 = arith.constant 0 : index
    %6 = vector.load %arg3[%c0_5, %c0_6] : memref<8x48xf32, #tpu.memory_space<vmem>>, vector<8x48xf32>
    tpu.vector_store %arg3[%c0_5, %c0_6], %5 {strides = array<i32>} : memref<8x48xf32, #tpu.memory_space<vmem>>, vector<8x48xf32>,
    return
  }
}

module attributes {stable_mosaic.version = 11 : i64} {
  func.func @_bigru_kernel(%arg0: memref<4x2x48xf32, #tpu.memory_space<vmem>>, %arg1: memref<16x48xf32, #tpu.memory_space<vmem>>, %arg2: memref<1x48xf32, #tpu.memory_space<vmem>>, %arg3: memref<4x2x16xf32, #tpu.memory_space<vmem>>, %arg4: memref<2x16xf32, #tpu.memory_space<vmem>>) attributes {dimension_semantics = [], scalar_prefetch = 0 : i64, scratch_operands = 1 : i64, tpu.core_type = #tpu.core_type<tc>} {
    %cst = arith.constant 0.000000e+00 : f32
    %0 = vector.broadcast %cst : f32 to vector<2x16xf32>
    %c0 = arith.constant 0 : index
    %c0_0 = arith.constant 0 : index
    %1 = vector.load %arg4[%c0, %c0_0] : memref<2x16xf32, #tpu.memory_space<vmem>>, vector<2x16xf32>
    tpu.vector_store %arg4[%c0, %c0_0], %0 {strides = array<i32>} : memref<2x16xf32, #tpu.memory_space<vmem>>, vector<2x16xf32>,
    %c0_1 = arith.constant 0 : index
    %c0_2 = arith.constant 0 : index
    %2 = vector.load %arg1[%c0_1, %c0_2] : memref<16x48xf32, #tpu.memory_space<vmem>>, vector<16x48xf32>
    %c0_3 = arith.constant 0 : index
    %c0_4 = arith.constant 0 : index
    %3 = vector.load %arg2[%c0_3, %c0_4] : memref<1x48xf32, #tpu.memory_space<vmem>>, vector<1x48xf32>
    %c0_i32 = arith.constant 0 : i32
    %c0_5 = arith.constant 0 : index
    %c0_6 = arith.constant 0 : index
    %4 = vector.load %arg4[%c0_5, %c0_6] : memref<2x16xf32, #tpu.memory_space<vmem>>, vector<2x16xf32>
    %cst_7 = arith.constant dense<0.000000e+00> : vector<2x48xf32>
    %5 = tpu.matmul %4, %2, %cst_7 {dimension_numbers = #tpu.dot_dimension_numbers<[1], [0], [0], [1], [0, 0, 1, 1], [], []>} : vector<2x16xf32>, vector<16x48xf32>, vector<2x48xf32> -> vector<2x48xf32>
    %6 = vector.broadcast %3 : vector<1x48xf32> to vector<2x48xf32>
    %7 = arith.addf %5, %6 : vector<2x48xf32>
    %8 = arith.index_cast %c0_i32 : i32 to index
    %c0_8 = arith.constant 0 : index
    %c0_9 = arith.constant 0 : index
    %9 = vector.load %arg0[%8, %c0_8, %c0_9] : memref<4x2x48xf32, #tpu.memory_space<vmem>>, vector<1x2x48xf32>
    %10 = vector.shape_cast %9 : vector<1x2x48xf32> to vector<2x48xf32>
    %11 = vector.extract_strided_slice %10 {offsets = [0, 0], sizes = [2, 16], strides = [1, 1]} : vector<2x48xf32> to vector<2x16xf32>
    %12 = vector.extract_strided_slice %7 {offsets = [0, 0], sizes = [2, 16], strides = [1, 1]} : vector<2x48xf32> to vector<2x16xf32>
    %13 = arith.addf %11, %12 : vector<2x16xf32>
    %14 = arith.negf %13 : vector<2x16xf32>
    %15 = math.exp %14 : vector<2x16xf32>
    %cst_10 = arith.constant 1.000000e+00 : f32
    %16 = vector.broadcast %cst_10 : f32 to vector<2x16xf32>
    %17 = arith.addf %16, %15 : vector<2x16xf32>
    %18 = arith.divf %16, %17 : vector<2x16xf32>
    %19 = vector.extract_strided_slice %10 {offsets = [0, 16], sizes = [2, 16], strides = [1, 1]} : vector<2x48xf32> to vector<2x16xf32>
    %20 = vector.extract_strided_slice %7 {offsets = [0, 16], sizes = [2, 16], strides = [1, 1]} : vector<2x48xf32> to vector<2x16xf32>
    %21 = arith.addf %19, %20 : vector<2x16xf32>
    %22 = arith.negf %21 : vector<2x16xf32>
    %23 = math.exp %22 : vector<2x16xf32>
    %cst_11 = arith.constant 1.000000e+00 : f32
    %24 = vector.broadcast %cst_11 : f32 to vector<2x16xf32>
    %25 = arith.addf %24, %23 : vector<2x16xf32>
    %26 = arith.divf %24, %25 : vector<2x16xf32>
    %27 = vector.extract_strided_slice %10 {offsets = [0, 32], sizes = [2, 16], strides = [1, 1]} : vector<2x48xf32> to vector<2x16xf32>
    %28 = vector.extract_strided_slice %7 {offsets = [0, 32], sizes = [2, 16], strides = [1, 1]} : vector<2x48xf32> to vector<2x16xf32>
    %29 = arith.mulf %18, %28 : vector<2x16xf32>
    %30 = arith.addf %27, %29 : vector<2x16xf32>
    %31 = math.tanh %30 : vector<2x16xf32>
    %cst_12 = arith.constant 1.000000e+00 : f32
    %32 = vector.broadcast %cst_12 : f32 to vector<2x16xf32>
    %33 = arith.subf %32, %26 : vector<2x16xf32>
    %34 = arith.mulf %33, %31 : vector<2x16xf32>
    %35 = arith.mulf %26, %4 : vector<2x16xf32>
    %36 = arith.addf %34, %35 : vector<2x16xf32>
    %c0_13 = arith.constant 0 : index
    %c0_14 = arith.constant 0 : index
    %37 = vector.load %arg4[%c0_13, %c0_14] : memref<2x16xf32, #tpu.memory_space<vmem>>, vector<2x16xf32>
    tpu.vector_store %arg4[%c0_13, %c0_14], %36 {strides = array<i32>} : memref<2x16xf32, #tpu.memory_space<vmem>>, vector<2x16xf32>,
    %38 = arith.index_cast %c0_i32 : i32 to index
    %c0_15 = arith.constant 0 : index
    %c0_16 = arith.constant 0 : index
    %39 = vector.load %arg3[%38, %c0_15, %c0_16] : memref<4x2x16xf32, #tpu.memory_space<vmem>>, vector<1x2x16xf32>
    %40 = vector.shape_cast %39 : vector<1x2x16xf32> to vector<2x16xf32>
    %41 = vector.shape_cast %36 : vector<2x16xf32> to vector<1x2x16xf32>
    tpu.vector_store %arg3[%38, %c0_15, %c0_16], %41 {strides = array<i32>} : memref<4x2x16xf32, #tpu.memory_space<vmem>>, vector<1x2x16xf32>,
    %c1_i32 = arith.constant 1 : i32
    %c0_17 = arith.constant 0 : index
    %c0_18 = arith.constant 0 : index
    %42 = vector.load %arg4[%c0_17, %c0_18] : memref<2x16xf32, #tpu.memory_space<vmem>>, vector<2x16xf32>
    %cst_19 = arith.constant dense<0.000000e+00> : vector<2x48xf32>
    %43 = tpu.matmul %42, %2, %cst_19 {dimension_numbers = #tpu.dot_dimension_numbers<[1], [0], [0], [1], [0, 0, 1, 1], [], []>} : vector<2x16xf32>, vector<16x48xf32>, vector<2x48xf32> -> vector<2x48xf32>
    %44 = vector.broadcast %3 : vector<1x48xf32> to vector<2x48xf32>
    %45 = arith.addf %43, %44 : vector<2x48xf32>
    %46 = arith.index_cast %c1_i32 : i32 to index
    %c0_20 = arith.constant 0 : index
    %c0_21 = arith.constant 0 : index
    %47 = vector.load %arg0[%46, %c0_20, %c0_21] : memref<4x2x48xf32, #tpu.memory_space<vmem>>, vector<1x2x48xf32>
    %48 = vector.shape_cast %47 : vector<1x2x48xf32> to vector<2x48xf32>
    %49 = vector.extract_strided_slice %48 {offsets = [0, 0], sizes = [2, 16], strides = [1, 1]} : vector<2x48xf32> to vector<2x16xf32>
    %50 = vector.extract_strided_slice %45 {offsets = [0, 0], sizes = [2, 16], strides = [1, 1]} : vector<2x48xf32> to vector<2x16xf32>
    %51 = arith.addf %49, %50 : vector<2x16xf32>
    %52 = arith.negf %51 : vector<2x16xf32>
    %53 = math.exp %52 : vector<2x16xf32>
    %cst_22 = arith.constant 1.000000e+00 : f32
    %54 = vector.broadcast %cst_22 : f32 to vector<2x16xf32>
    %55 = arith.addf %54, %53 : vector<2x16xf32>
    %56 = arith.divf %54, %55 : vector<2x16xf32>
    %57 = vector.extract_strided_slice %48 {offsets = [0, 16], sizes = [2, 16], strides = [1, 1]} : vector<2x48xf32> to vector<2x16xf32>
    %58 = vector.extract_strided_slice %45 {offsets = [0, 16], sizes = [2, 16], strides = [1, 1]} : vector<2x48xf32> to vector<2x16xf32>
    %59 = arith.addf %57, %58 : vector<2x16xf32>
    %60 = arith.negf %59 : vector<2x16xf32>
    %61 = math.exp %60 : vector<2x16xf32>
    %cst_23 = arith.constant 1.000000e+00 : f32
    %62 = vector.broadcast %cst_23 : f32 to vector<2x16xf32>
    %63 = arith.addf %62, %61 : vector<2x16xf32>
    %64 = arith.divf %62, %63 : vector<2x16xf32>
    %65 = vector.extract_strided_slice %48 {offsets = [0, 32], sizes = [2, 16], strides = [1, 1]} : vector<2x48xf32> to vector<2x16xf32>
    %66 = vector.extract_strided_slice %45 {offsets = [0, 32], sizes = [2, 16], strides = [1, 1]} : vector<2x48xf32> to vector<2x16xf32>
    %67 = arith.mulf %56, %66 : vector<2x16xf32>
    %68 = arith.addf %65, %67 : vector<2x16xf32>
    %69 = math.tanh %68 : vector<2x16xf32>
    %cst_24 = arith.constant 1.000000e+00 : f32
    %70 = vector.broadcast %cst_24 : f32 to vector<2x16xf32>
    %71 = arith.subf %70, %64 : vector<2x16xf32>
    %72 = arith.mulf %71, %69 : vector<2x16xf32>
    %73 = arith.mulf %64, %42 : vector<2x16xf32>
    %74 = arith.addf %72, %73 : vector<2x16xf32>
    %c0_25 = arith.constant 0 : index
    %c0_26 = arith.constant 0 : index
    %75 = vector.load %arg4[%c0_25, %c0_26] : memref<2x16xf32, #tpu.memory_space<vmem>>, vector<2x16xf32>
    tpu.vector_store %arg4[%c0_25, %c0_26], %74 {strides = array<i32>} : memref<2x16xf32, #tpu.memory_space<vmem>>, vector<2x16xf32>,
    %76 = arith.index_cast %c1_i32 : i32 to index
    %c0_27 = arith.constant 0 : index
    %c0_28 = arith.constant 0 : index
    %77 = vector.load %arg3[%76, %c0_27, %c0_28] : memref<4x2x16xf32, #tpu.memory_space<vmem>>, vector<1x2x16xf32>
    %78 = vector.shape_cast %77 : vector<1x2x16xf32> to vector<2x16xf32>
    %79 = vector.shape_cast %74 : vector<2x16xf32> to vector<1x2x16xf32>
    tpu.vector_store %arg3[%76, %c0_27, %c0_28], %79 {strides = array<i32>} : memref<4x2x16xf32, #tpu.memory_space<vmem>>, vector<1x2x16xf32>,
    %c2_i32 = arith.constant 2 : i32
    %c0_29 = arith.constant 0 : index
    %c0_30 = arith.constant 0 : index
    %80 = vector.load %arg4[%c0_29, %c0_30] : memref<2x16xf32, #tpu.memory_space<vmem>>, vector<2x16xf32>
    %cst_31 = arith.constant dense<0.000000e+00> : vector<2x48xf32>
    %81 = tpu.matmul %80, %2, %cst_31 {dimension_numbers = #tpu.dot_dimension_numbers<[1], [0], [0], [1], [0, 0, 1, 1], [], []>} : vector<2x16xf32>, vector<16x48xf32>, vector<2x48xf32> -> vector<2x48xf32>
    %82 = vector.broadcast %3 : vector<1x48xf32> to vector<2x48xf32>
    %83 = arith.addf %81, %82 : vector<2x48xf32>
    %84 = arith.index_cast %c2_i32 : i32 to index
    %c0_32 = arith.constant 0 : index
    %c0_33 = arith.constant 0 : index
    %85 = vector.load %arg0[%84, %c0_32, %c0_33] : memref<4x2x48xf32, #tpu.memory_space<vmem>>, vector<1x2x48xf32>
    %86 = vector.shape_cast %85 : vector<1x2x48xf32> to vector<2x48xf32>
    %87 = vector.extract_strided_slice %86 {offsets = [0, 0], sizes = [2, 16], strides = [1, 1]} : vector<2x48xf32> to vector<2x16xf32>
    %88 = vector.extract_strided_slice %83 {offsets = [0, 0], sizes = [2, 16], strides = [1, 1]} : vector<2x48xf32> to vector<2x16xf32>
    %89 = arith.addf %87, %88 : vector<2x16xf32>
    %90 = arith.negf %89 : vector<2x16xf32>
    %91 = math.exp %90 : vector<2x16xf32>
    %cst_34 = arith.constant 1.000000e+00 : f32
    %92 = vector.broadcast %cst_34 : f32 to vector<2x16xf32>
    %93 = arith.addf %92, %91 : vector<2x16xf32>
    %94 = arith.divf %92, %93 : vector<2x16xf32>
    %95 = vector.extract_strided_slice %86 {offsets = [0, 16], sizes = [2, 16], strides = [1, 1]} : vector<2x48xf32> to vector<2x16xf32>
    %96 = vector.extract_strided_slice %83 {offsets = [0, 16], sizes = [2, 16], strides = [1, 1]} : vector<2x48xf32> to vector<2x16xf32>
    %97 = arith.addf %95, %96 : vector<2x16xf32>
    %98 = arith.negf %97 : vector<2x16xf32>
    %99 = math.exp %98 : vector<2x16xf32>
    %cst_35 = arith.constant 1.000000e+00 : f32
    %100 = vector.broadcast %cst_35 : f32 to vector<2x16xf32>
    %101 = arith.addf %100, %99 : vector<2x16xf32>
    %102 = arith.divf %100, %101 : vector<2x16xf32>
    %103 = vector.extract_strided_slice %86 {offsets = [0, 32], sizes = [2, 16], strides = [1, 1]} : vector<2x48xf32> to vector<2x16xf32>
    %104 = vector.extract_strided_slice %83 {offsets = [0, 32], sizes = [2, 16], strides = [1, 1]} : vector<2x48xf32> to vector<2x16xf32>
    %105 = arith.mulf %94, %104 : vector<2x16xf32>
    %106 = arith.addf %103, %105 : vector<2x16xf32>
    %107 = math.tanh %106 : vector<2x16xf32>
    %cst_36 = arith.constant 1.000000e+00 : f32
    %108 = vector.broadcast %cst_36 : f32 to vector<2x16xf32>
    %109 = arith.subf %108, %102 : vector<2x16xf32>
    %110 = arith.mulf %109, %107 : vector<2x16xf32>
    %111 = arith.mulf %102, %80 : vector<2x16xf32>
    %112 = arith.addf %110, %111 : vector<2x16xf32>
    %c0_37 = arith.constant 0 : index
    %c0_38 = arith.constant 0 : index
    %113 = vector.load %arg4[%c0_37, %c0_38] : memref<2x16xf32, #tpu.memory_space<vmem>>, vector<2x16xf32>
    tpu.vector_store %arg4[%c0_37, %c0_38], %112 {strides = array<i32>} : memref<2x16xf32, #tpu.memory_space<vmem>>, vector<2x16xf32>,
    %114 = arith.index_cast %c2_i32 : i32 to index
    %c0_39 = arith.constant 0 : index
    %c0_40 = arith.constant 0 : index
    %115 = vector.load %arg3[%114, %c0_39, %c0_40] : memref<4x2x16xf32, #tpu.memory_space<vmem>>, vector<1x2x16xf32>
    %116 = vector.shape_cast %115 : vector<1x2x16xf32> to vector<2x16xf32>
    %117 = vector.shape_cast %112 : vector<2x16xf32> to vector<1x2x16xf32>
    tpu.vector_store %arg3[%114, %c0_39, %c0_40], %117 {strides = array<i32>} : memref<4x2x16xf32, #tpu.memory_space<vmem>>, vector<1x2x16xf32>,
    %c3_i32 = arith.constant 3 : i32
    %c0_41 = arith.constant 0 : index
    %c0_42 = arith.constant 0 : index
    %118 = vector.load %arg4[%c0_41, %c0_42] : memref<2x16xf32, #tpu.memory_space<vmem>>, vector<2x16xf32>
    %cst_43 = arith.constant dense<0.000000e+00> : vector<2x48xf32>
    %119 = tpu.matmul %118, %2, %cst_43 {dimension_numbers = #tpu.dot_dimension_numbers<[1], [0], [0], [1], [0, 0, 1, 1], [], []>} : vector<2x16xf32>, vector<16x48xf32>, vector<2x48xf32> -> vector<2x48xf32>
    %120 = vector.broadcast %3 : vector<1x48xf32> to vector<2x48xf32>
    %121 = arith.addf %119, %120 : vector<2x48xf32>
    %122 = arith.index_cast %c3_i32 : i32 to index
    %c0_44 = arith.constant 0 : index
    %c0_45 = arith.constant 0 : index
    %123 = vector.load %arg0[%122, %c0_44, %c0_45] : memref<4x2x48xf32, #tpu.memory_space<vmem>>, vector<1x2x48xf32>
    %124 = vector.shape_cast %123 : vector<1x2x48xf32> to vector<2x48xf32>
    %125 = vector.extract_strided_slice %124 {offsets = [0, 0], sizes = [2, 16], strides = [1, 1]} : vector<2x48xf32> to vector<2x16xf32>
    %126 = vector.extract_strided_slice %121 {offsets = [0, 0], sizes = [2, 16], strides = [1, 1]} : vector<2x48xf32> to vector<2x16xf32>
    %127 = arith.addf %125, %126 : vector<2x16xf32>
    %128 = arith.negf %127 : vector<2x16xf32>
    %129 = math.exp %128 : vector<2x16xf32>
    %cst_46 = arith.constant 1.000000e+00 : f32
    %130 = vector.broadcast %cst_46 : f32 to vector<2x16xf32>
    %131 = arith.addf %130, %129 : vector<2x16xf32>
    %132 = arith.divf %130, %131 : vector<2x16xf32>
    %133 = vector.extract_strided_slice %124 {offsets = [0, 16], sizes = [2, 16], strides = [1, 1]} : vector<2x48xf32> to vector<2x16xf32>
    %134 = vector.extract_strided_slice %121 {offsets = [0, 16], sizes = [2, 16], strides = [1, 1]} : vector<2x48xf32> to vector<2x16xf32>
    %135 = arith.addf %133, %134 : vector<2x16xf32>
    %136 = arith.negf %135 : vector<2x16xf32>
    %137 = math.exp %136 : vector<2x16xf32>
    %cst_47 = arith.constant 1.000000e+00 : f32
    %138 = vector.broadcast %cst_47 : f32 to vector<2x16xf32>
    %139 = arith.addf %138, %137 : vector<2x16xf32>
    %140 = arith.divf %138, %139 : vector<2x16xf32>
    %141 = vector.extract_strided_slice %124 {offsets = [0, 32], sizes = [2, 16], strides = [1, 1]} : vector<2x48xf32> to vector<2x16xf32>
    %142 = vector.extract_strided_slice %121 {offsets = [0, 32], sizes = [2, 16], strides = [1, 1]} : vector<2x48xf32> to vector<2x16xf32>
    %143 = arith.mulf %132, %142 : vector<2x16xf32>
    %144 = arith.addf %141, %143 : vector<2x16xf32>
    %145 = math.tanh %144 : vector<2x16xf32>
    %cst_48 = arith.constant 1.000000e+00 : f32
    %146 = vector.broadcast %cst_48 : f32 to vector<2x16xf32>
    %147 = arith.subf %146, %140 : vector<2x16xf32>
    %148 = arith.mulf %147, %145 : vector<2x16xf32>
    %149 = arith.mulf %140, %118 : vector<2x16xf32>
    %150 = arith.addf %148, %149 : vector<2x16xf32>
    %c0_49 = arith.constant 0 : index
    %c0_50 = arith.constant 0 : index
    %151 = vector.load %arg4[%c0_49, %c0_50] : memref<2x16xf32, #tpu.memory_space<vmem>>, vector<2x16xf32>
    tpu.vector_store %arg4[%c0_49, %c0_50], %150 {strides = array<i32>} : memref<2x16xf32, #tpu.memory_space<vmem>>, vector<2x16xf32>,
    %152 = arith.index_cast %c3_i32 : i32 to index
    %c0_51 = arith.constant 0 : index
    %c0_52 = arith.constant 0 : index
    %153 = vector.load %arg3[%152, %c0_51, %c0_52] : memref<4x2x16xf32, #tpu.memory_space<vmem>>, vector<1x2x16xf32>
    %154 = vector.shape_cast %153 : vector<1x2x16xf32> to vector<2x16xf32>
    %155 = vector.shape_cast %150 : vector<2x16xf32> to vector<1x2x16xf32>
    tpu.vector_store %arg3[%152, %c0_51, %c0_52], %155 {strides = array<i32>} : memref<4x2x16xf32, #tpu.memory_space<vmem>>, vector<1x2x16xf32>,
    %c4_i32 = arith.constant 4 : i32
    return
  }
}

module attributes {stable_mosaic.version = 11 : i64} {
  func.func @_cem_clf_kernel(%arg0: memref<8x16xf32, #tpu.memory_space<vmem>>, %arg1: memref<16x40xf32, #tpu.memory_space<vmem>>, %arg2: memref<1x40xf32, #tpu.memory_space<vmem>>, %arg3: memref<1x8xf32, #tpu.memory_space<vmem>>, %arg4: memref<1x8xf32, #tpu.memory_space<vmem>>, %arg5: memref<1x1xf32, #tpu.memory_space<vmem>>, %arg6: memref<32x5xf32, #tpu.memory_space<vmem>>, %arg7: memref<1x5xf32, #tpu.memory_space<vmem>>, %arg8: memref<8x32xf32, #tpu.memory_space<vmem>>, %arg9: memref<8x4xf32, #tpu.memory_space<vmem>>, %arg10: memref<8x5xf32, #tpu.memory_space<vmem>>) attributes {dimension_semantics = [], scalar_prefetch = 0 : i64, scratch_operands = 0 : i64, tpu.core_type = #tpu.core_type<tc>} {
    %c0 = arith.constant 0 : index
    %c0_0 = arith.constant 0 : index
    %0 = vector.load %arg0[%c0, %c0_0] : memref<8x16xf32, #tpu.memory_space<vmem>>, vector<8x16xf32>
    %c0_1 = arith.constant 0 : index
    %c0_2 = arith.constant 0 : index
    %1 = vector.load %arg1[%c0_1, %c0_2] : memref<16x40xf32, #tpu.memory_space<vmem>>, vector<16x40xf32>
    %cst = arith.constant dense<0.000000e+00> : vector<8x40xf32>
    %2 = tpu.matmul %0, %1, %cst {dimension_numbers = #tpu.dot_dimension_numbers<[1], [0], [0], [1], [0, 0, 1, 1], [], []>} : vector<8x16xf32>, vector<16x40xf32>, vector<8x40xf32> -> vector<8x40xf32>
    %c0_3 = arith.constant 0 : index
    %c0_4 = arith.constant 0 : index
    %3 = vector.load %arg2[%c0_3, %c0_4] : memref<1x40xf32, #tpu.memory_space<vmem>>, vector<1x40xf32>
    %4 = vector.broadcast %3 : vector<1x40xf32> to vector<8x40xf32>
    %5 = arith.addf %2, %4 : vector<8x40xf32>
    %cst_5 = arith.constant 0.000000e+00 : f32
    %6 = vector.broadcast %cst_5 : f32 to vector<8x40xf32>
    %7 = arith.cmpf oge, %5, %6 : vector<8x40xf32>
    %cst_6 = arith.constant 0.00999999977 : f32
    %8 = vector.broadcast %cst_6 : f32 to vector<8x40xf32>
    %9 = arith.mulf %8, %5 : vector<8x40xf32>
    %10 = arith.select %7, %5, %9 : vector<8x40xi1>, vector<8x40xf32>
    %c0_7 = arith.constant 0 : index
    %c0_8 = arith.constant 0 : index
    %11 = vector.load %arg3[%c0_7, %c0_8] : memref<1x8xf32, #tpu.memory_space<vmem>>, vector<1x8xf32>
    %c0_9 = arith.constant 0 : index
    %c0_10 = arith.constant 0 : index
    %12 = vector.load %arg4[%c0_9, %c0_10] : memref<1x8xf32, #tpu.memory_space<vmem>>, vector<1x8xf32>
    %c0_11 = arith.constant 0 : index
    %c0_12 = arith.constant 0 : index
    %13 = vector.load %arg5[%c0_11, %c0_12] : memref<1x1xf32, #tpu.memory_space<vmem>>, vector<1x1xf32>
    %14 = vector.extract_strided_slice %10 {offsets = [0, 0], sizes = [8, 8], strides = [1, 1]} : vector<8x40xf32> to vector<8x8xf32>
    %15 = vector.extract_strided_slice %10 {offsets = [0, 8], sizes = [8, 8], strides = [1, 1]} : vector<8x40xf32> to vector<8x8xf32>
    %16 = vector.broadcast %11 : vector<1x8xf32> to vector<8x8xf32>
    %17 = arith.mulf %14, %16 : vector<8x8xf32>
    %18 = vector.broadcast %12 : vector<1x8xf32> to vector<8x8xf32>
    %19 = arith.mulf %15, %18 : vector<8x8xf32>
    %20 = arith.addf %17, %19 : vector<8x8xf32>
    %cst_13 = arith.constant dense<0.000000e+00> : vector<8xf32>
    %21 = vector.multi_reduction <add>, %20, %cst_13 [1] : vector<8x8xf32> to vector<8xf32>
    %22 = vector.shape_cast %21 : vector<8xf32> to vector<8x1xf32>
    %23 = vector.broadcast %13 : vector<1x1xf32> to vector<8x1xf32>
    %24 = arith.addf %22, %23 : vector<8x1xf32>
    %25 = arith.negf %24 : vector<8x1xf32>
    %26 = math.exp %25 : vector<8x1xf32>
    %cst_14 = arith.constant 1.000000e+00 : f32
    %27 = vector.broadcast %cst_14 : f32 to vector<8x1xf32>
    %28 = arith.addf %27, %26 : vector<8x1xf32>
    %29 = arith.divf %27, %28 : vector<8x1xf32>
    %30 = vector.broadcast %29 : vector<8x1xf32> to vector<8x8xf32>
    %31 = arith.mulf %30, %14 : vector<8x8xf32>
    %cst_15 = arith.constant 1.000000e+00 : f32
    %32 = vector.broadcast %cst_15 : f32 to vector<8x1xf32>
    %33 = arith.subf %32, %29 : vector<8x1xf32>
    %34 = vector.broadcast %33 : vector<8x1xf32> to vector<8x8xf32>
    %35 = arith.mulf %34, %15 : vector<8x8xf32>
    %36 = arith.addf %31, %35 : vector<8x8xf32>
    %37 = vector.extract_strided_slice %10 {offsets = [0, 8], sizes = [8, 8], strides = [1, 1]} : vector<8x40xf32> to vector<8x8xf32>
    %38 = vector.extract_strided_slice %10 {offsets = [0, 16], sizes = [8, 8], strides = [1, 1]} : vector<8x40xf32> to vector<8x8xf32>
    %39 = vector.broadcast %11 : vector<1x8xf32> to vector<8x8xf32>
    %40 = arith.mulf %37, %39 : vector<8x8xf32>
    %41 = vector.broadcast %12 : vector<1x8xf32> to vector<8x8xf32>
    %42 = arith.mulf %38, %41 : vector<8x8xf32>
    %43 = arith.addf %40, %42 : vector<8x8xf32>
    %cst_16 = arith.constant dense<0.000000e+00> : vector<8xf32>
    %44 = vector.multi_reduction <add>, %43, %cst_16 [1] : vector<8x8xf32> to vector<8xf32>
    %45 = vector.shape_cast %44 : vector<8xf32> to vector<8x1xf32>
    %46 = vector.broadcast %13 : vector<1x1xf32> to vector<8x1xf32>
    %47 = arith.addf %45, %46 : vector<8x1xf32>
    %48 = arith.negf %47 : vector<8x1xf32>
    %49 = math.exp %48 : vector<8x1xf32>
    %cst_17 = arith.constant 1.000000e+00 : f32
    %50 = vector.broadcast %cst_17 : f32 to vector<8x1xf32>
    %51 = arith.addf %50, %49 : vector<8x1xf32>
    %52 = arith.divf %50, %51 : vector<8x1xf32>
    %53 = vector.broadcast %52 : vector<8x1xf32> to vector<8x8xf32>
    %54 = arith.mulf %53, %37 : vector<8x8xf32>
    %cst_18 = arith.constant 1.000000e+00 : f32
    %55 = vector.broadcast %cst_18 : f32 to vector<8x1xf32>
    %56 = arith.subf %55, %52 : vector<8x1xf32>
    %57 = vector.broadcast %56 : vector<8x1xf32> to vector<8x8xf32>
    %58 = arith.mulf %57, %38 : vector<8x8xf32>
    %59 = arith.addf %54, %58 : vector<8x8xf32>
    %60 = vector.extract_strided_slice %10 {offsets = [0, 16], sizes = [8, 8], strides = [1, 1]} : vector<8x40xf32> to vector<8x8xf32>
    %61 = vector.extract_strided_slice %10 {offsets = [0, 24], sizes = [8, 8], strides = [1, 1]} : vector<8x40xf32> to vector<8x8xf32>
    %62 = vector.broadcast %11 : vector<1x8xf32> to vector<8x8xf32>
    %63 = arith.mulf %60, %62 : vector<8x8xf32>
    %64 = vector.broadcast %12 : vector<1x8xf32> to vector<8x8xf32>
    %65 = arith.mulf %61, %64 : vector<8x8xf32>
    %66 = arith.addf %63, %65 : vector<8x8xf32>
    %cst_19 = arith.constant dense<0.000000e+00> : vector<8xf32>
    %67 = vector.multi_reduction <add>, %66, %cst_19 [1] : vector<8x8xf32> to vector<8xf32>
    %68 = vector.shape_cast %67 : vector<8xf32> to vector<8x1xf32>
    %69 = vector.broadcast %13 : vector<1x1xf32> to vector<8x1xf32>
    %70 = arith.addf %68, %69 : vector<8x1xf32>
    %71 = arith.negf %70 : vector<8x1xf32>
    %72 = math.exp %71 : vector<8x1xf32>
    %cst_20 = arith.constant 1.000000e+00 : f32
    %73 = vector.broadcast %cst_20 : f32 to vector<8x1xf32>
    %74 = arith.addf %73, %72 : vector<8x1xf32>
    %75 = arith.divf %73, %74 : vector<8x1xf32>
    %76 = vector.broadcast %75 : vector<8x1xf32> to vector<8x8xf32>
    %77 = arith.mulf %76, %60 : vector<8x8xf32>
    %cst_21 = arith.constant 1.000000e+00 : f32
    %78 = vector.broadcast %cst_21 : f32 to vector<8x1xf32>
    %79 = arith.subf %78, %75 : vector<8x1xf32>
    %80 = vector.broadcast %79 : vector<8x1xf32> to vector<8x8xf32>
    %81 = arith.mulf %80, %61 : vector<8x8xf32>
    %82 = arith.addf %77, %81 : vector<8x8xf32>
    %83 = vector.extract_strided_slice %10 {offsets = [0, 24], sizes = [8, 8], strides = [1, 1]} : vector<8x40xf32> to vector<8x8xf32>
    %84 = vector.extract_strided_slice %10 {offsets = [0, 32], sizes = [8, 8], strides = [1, 1]} : vector<8x40xf32> to vector<8x8xf32>
    %85 = vector.broadcast %11 : vector<1x8xf32> to vector<8x8xf32>
    %86 = arith.mulf %83, %85 : vector<8x8xf32>
    %87 = vector.broadcast %12 : vector<1x8xf32> to vector<8x8xf32>
    %88 = arith.mulf %84, %87 : vector<8x8xf32>
    %89 = arith.addf %86, %88 : vector<8x8xf32>
    %cst_22 = arith.constant dense<0.000000e+00> : vector<8xf32>
    %90 = vector.multi_reduction <add>, %89, %cst_22 [1] : vector<8x8xf32> to vector<8xf32>
    %91 = vector.shape_cast %90 : vector<8xf32> to vector<8x1xf32>
    %92 = vector.broadcast %13 : vector<1x1xf32> to vector<8x1xf32>
    %93 = arith.addf %91, %92 : vector<8x1xf32>
    %94 = arith.negf %93 : vector<8x1xf32>
    %95 = math.exp %94 : vector<8x1xf32>
    %cst_23 = arith.constant 1.000000e+00 : f32
    %96 = vector.broadcast %cst_23 : f32 to vector<8x1xf32>
    %97 = arith.addf %96, %95 : vector<8x1xf32>
    %98 = arith.divf %96, %97 : vector<8x1xf32>
    %99 = vector.broadcast %98 : vector<8x1xf32> to vector<8x8xf32>
    %100 = arith.mulf %99, %83 : vector<8x8xf32>
    %cst_24 = arith.constant 1.000000e+00 : f32
    %101 = vector.broadcast %cst_24 : f32 to vector<8x1xf32>
    %102 = arith.subf %101, %98 : vector<8x1xf32>
    %103 = vector.broadcast %102 : vector<8x1xf32> to vector<8x8xf32>
    %104 = arith.mulf %103, %84 : vector<8x8xf32>
    %105 = arith.addf %100, %104 : vector<8x8xf32>
    %106 = tpu.concatenate %36, %59, %82, %105 in 1 : vector<8x8xf32>, vector<8x8xf32>, vector<8x8xf32>, vector<8x8xf32> -> vector<8x32xf32>
    %107 = tpu.concatenate %29, %52, %75, %98 in 1 : vector<8x1xf32>, vector<8x1xf32>, vector<8x1xf32>, vector<8x1xf32> -> vector<8x4xf32>
    %c0_25 = arith.constant 0 : index
    %c0_26 = arith.constant 0 : index
    %108 = vector.load %arg8[%c0_25, %c0_26] : memref<8x32xf32, #tpu.memory_space<vmem>>, vector<8x32xf32>
    tpu.vector_store %arg8[%c0_25, %c0_26], %106 {strides = array<i32>} : memref<8x32xf32, #tpu.memory_space<vmem>>, vector<8x32xf32>,
    %c0_27 = arith.constant 0 : index
    %c0_28 = arith.constant 0 : index
    %109 = vector.load %arg9[%c0_27, %c0_28] : memref<8x4xf32, #tpu.memory_space<vmem>>, vector<8x4xf32>
    tpu.vector_store %arg9[%c0_27, %c0_28], %107 {strides = array<i32>} : memref<8x4xf32, #tpu.memory_space<vmem>>, vector<8x4xf32>,
    %c0_29 = arith.constant 0 : index
    %c0_30 = arith.constant 0 : index
    %110 = vector.load %arg6[%c0_29, %c0_30] : memref<32x5xf32, #tpu.memory_space<vmem>>, vector<32x5xf32>
    %cst_31 = arith.constant dense<0.000000e+00> : vector<8x5xf32>
    %111 = tpu.matmul %106, %110, %cst_31 {dimension_numbers = #tpu.dot_dimension_numbers<[1], [0], [0], [1], [0, 0, 1, 1], [], []>} : vector<8x32xf32>, vector<32x5xf32>, vector<8x5xf32> -> vector<8x5xf32>
    %c0_32 = arith.constant 0 : index
    %c0_33 = arith.constant 0 : index
    %112 = vector.load %arg7[%c0_32, %c0_33] : memref<1x5xf32, #tpu.memory_space<vmem>>, vector<1x5xf32>
    %113 = vector.broadcast %112 : vector<1x5xf32> to vector<8x5xf32>
    %114 = arith.addf %111, %113 : vector<8x5xf32>
    %c0_34 = arith.constant 0 : index
    %c0_35 = arith.constant 0 : index
    %115 = vector.load %arg10[%c0_34, %c0_35] : memref<8x5xf32, #tpu.memory_space<vmem>>, vector<8x5xf32>
    tpu.vector_store %arg10[%c0_34, %c0_35], %114 {strides = array<i32>} : memref<8x5xf32, #tpu.memory_space<vmem>>, vector<8x5xf32>,
    return
  }
}

</mosaic_0001>

<bundles_post_ra>
// kernel: net_forward.7
= control target key start
LH: loop header
LB: loop body
LE: loop exit
PB: predicated region body
PF: predicated region fallthrough
CT: control target
= control target key end

     0   :  { %vm41_vm0 = vcmask 261120   ;;  %vm235_vm1 = vcmask 64512   ;;  %s500_s1 = inlined_call_operand.vmem [shape: f32[32,8], index: 1, kind: input, shape index: {}]   ;;  %s501_s0 = inlined_call_operand.vmem [shape: f32[128,32], index: 0, kind: input, shape index: {}]   ;;  %s502_s2 = inlined_call_operand.vmem [shape: f32[1,8], index: 2, kind: input, shape index: {}]   ;;  %s503_s3 = inlined_call_operand.vmem [shape: f32[128,8], index: 3, kind: output, shape index: {}]  }
   0x1   :  { %v30_v0 = vld [vmem:[%s500_s1] sm:$0xff]  ;;  %v31_v1 = vld [vmem:[%s500_s1 + $0x8] sm:$0xff]  ;;  %v32_v2 = vld [vmem:[%s500_s1 + $0x10] sm:$0xff] }
   0x2   :  { %v325_v3 = vpack.c.bf16 %v31_v1, %v30_v0  ;;  %v33_v4 = vld [vmem:[%s500_s1 + $0x18] sm:$0xff]  ;;  %v14_v5 = vld [vmem:[%s501_s0] sm:$0xff]  ;;  %v15_v8 = vld [vmem:[%s501_s0 + $0x8] sm:$0xff] }
   0x3   :  { %v22_v6 = vld [vmem:[%s501_s0 + $0x40] sm:$0xff]  ;;  %v329_v7 = vpack.c.bf16 %v33_v4, %v32_v2  ;;  %301 = vmatprep.mubr.msk.f32.mxu0 %vm41_vm0, %v14_v5  ;;  %v23_v9 = vld [vmem:[%s501_s0 + $0x48] sm:$0xff]  ;;  %v16_v10 = vld [vmem:[%s501_s0 + $0x10] sm:$0xff] }
   0x4   :  { %313 = vmatprep.mubr.msk.f32.mxu1 %vm41_vm0, %v22_v6  ;;  %326 = vmatprep.subr.bf16.mxu0 %v325_v3  ;;  %v24_v11 = vld [vmem:[%s501_s0 + $0x50] sm:$0xff]  ;;  %v17_v12 = vld [vmem:[%s501_s0 + $0x18] sm:$0xff]  ;;  %v18_v14 = vld [vmem:[%s501_s0 + $0x20] sm:$0xff] }
   0x5   :  { %333 = vmatprep.subr.bf16.mxu1 %v325_v3  ;;  %328 = vmatpush3.bf16.msra.mxu0 %v325_v3  ;;  %v25_v13 = vld [vmem:[%s501_s0 + $0x58] sm:$0xff]  ;;  %v26_v15 = vld [vmem:[%s501_s0 + $0x60] sm:$0xff]  ;;  %v19_v16 = vld [vmem:[%s501_s0 + $0x28] sm:$0xff] }
   0x6   :  { %335 = vmatpush3.bf16.msra.mxu1 %v325_v3  ;;  %330 = vmatprep.subr.bf16.mxu0 %v329_v7  ;;  %v27_v17 = vld [vmem:[%s501_s0 + $0x68] sm:$0xff]  ;;  %v20_v18 = vld [vmem:[%s501_s0 + $0x30] sm:$0xff]  ;;  %v21_v20 = vld [vmem:[%s501_s0 + $0x38] sm:$0xff] }
   0x7   :  { %334 = vmatprep.subr.bf16.mxu1 %v329_v7  ;;  %v28_v19 = vld [vmem:[%s501_s0 + $0x70] sm:$0xff]  ;;  %v29_v21 = vld [vmem:[%s501_s0 + $0x78] sm:$0xff]  ;;  %v256_v22 = vld [vmem:[%s502_s2] ss:$0 sm:$0xff] }
   0x9   :  { %332 = vmatpush3.bf16.msra.mxu0 %v329_v7 }
   0xa   :  { %336 = vmatpush3.bf16.msra.mxu1 %v329_v7 }
   0xc   :  { %302 = vmatmul.mubr.msk.f32.vlgmr.msra.gmra.mrb[0].mxu0 %vm41_vm0, %v15_v8 }
   0xd   :  { %314 = vmatmul.mubr.msk.f32.vlgmr.msra.gmra.mrb[0].mxu1 %vm41_vm0, %v23_v9  ;;  %304 = vmatprep.mubr.msk.f32.mxu0 %vm41_vm0, %v16_v10 }
   0xe   :  { %316 = vmatprep.mubr.msk.f32.mxu1 %vm41_vm0, %v24_v11 }
  0x10   :  { %305 = vmatmul.mubr.msk.f32.gmra.mrb[2].mxu0 %vm41_vm0, %v17_v12 }
  0x11   :  { %317 = vmatmul.mubr.msk.f32.gmra.mrb[2].mxu1 %vm41_vm0, %v25_v13  ;;  %307 = vmatprep.mubr.msk.f32.mxu0 %vm41_vm0, %v18_v14 }
  0x12   :  { %319 = vmatprep.mubr.msk.f32.mxu1 %vm41_vm0, %v26_v15 }
  0x14   :  { %308 = vmatmul.mubr.msk.f32.gmra.mrb[4].mxu0 %vm41_vm0, %v19_v16 }
  0x15   :  { %320 = vmatmul.mubr.msk.f32.gmra.mrb[4].mxu1 %vm41_vm0, %v27_v17  ;;  %310 = vmatprep.mubr.msk.f32.mxu0 %vm41_vm0, %v20_v18 }
  0x16   :  { %322 = vmatprep.mubr.msk.f32.mxu1 %vm41_vm0, %v28_v19 }
  0x18   :  { %311 = vmatmul.mubr.msk.f32.gmra.mrb[6].mxu0 %vm41_vm0, %v21_v20 }
  0x19   :  { %323 = vmatmul.mubr.msk.f32.gmra.mrb[6].mxu1 %vm41_vm0, %v29_v21 }
  0xdf   :  { %v303_v23 = vpop.f32.mrb[0].mxu0 }
  0xe0   :  { %v315_v24 = vpop.f32.mrb[0].mxu1  ;;  %v162_v25 = vadd.f32 %v303_v23, %v256_v22  ;;  %v156_v27 = vpop.f32.mrb[1].mxu0 }
  0xe1   :  { %v202_v26 = vadd.f32 %v315_v24, %v256_v22  ;;  %v196_v28 = vpop.f32.mrb[1].mxu1  ;;  %v157_v29 = vadd.f32 %v256_v22, %v156_v27 }
  0xe2   :  { %v197_v30 = vadd.f32 %v256_v22, %v196_v28  ;;  %237 = vst.msk [vmem:[%s503_s3 + $0x8] sm:$0xff] %vm235_vm1, %v162_v25 }
  0xe3   :  { %245 = vst.msk [vmem:[%s503_s3 + $0x48] sm:$0xff] %vm235_vm1, %v202_v26  ;;  %236 = vst.msk [vmem:[%s503_s3] sm:$0xff] %vm235_vm1, %v157_v29  ;;  %v306_v31 = vpop.f32.mrb[2].mxu0 }
  0xe4   :  { %244 = vst.msk [vmem:[%s503_s3 + $0x40] sm:$0xff] %vm235_vm1, %v197_v30  ;;  %v318_v32 = vpop.f32.mrb[2].mxu1  ;;  %v172_v33 = vadd.f32 %v306_v31, %v256_v22  ;;  %v166_v35 = vpop.f32.mrb[3].mxu0 }
  0xe5   :  { %v212_v34 = vadd.f32 %v318_v32, %v256_v22  ;;  %v206_v36 = vpop.f32.mrb[3].mxu1  ;;  %v167_v37 = vadd.f32 %v256_v22, %v166_v35 }
  0xe6   :  { %v207_v38 = vadd.f32 %v256_v22, %v206_v36  ;;  %239 = vst.msk [vmem:[%s503_s3 + $0x18] sm:$0xff] %vm235_vm1, %v172_v33 }
  0xe7   :  { %247 = vst.msk [vmem:[%s503_s3 + $0x58] sm:$0xff] %vm235_vm1, %v212_v34  ;;  %238 = vst.msk [vmem:[%s503_s3 + $0x10] sm:$0xff] %vm235_vm1, %v167_v37  ;;  %v309_v39 = vpop.f32.mrb[4].mxu0 }
  0xe8   :  { %246 = vst.msk [vmem:[%s503_s3 + $0x50] sm:$0xff] %vm235_vm1, %v207_v38  ;;  %v321_v40 = vpop.f32.mrb[4].mxu1  ;;  %v182_v41 = vadd.f32 %v309_v39, %v256_v22  ;;  %v176_v43 = vpop.f32.mrb[5].mxu0 }
  0xe9   :  { %v222_v42 = vadd.f32 %v321_v40, %v256_v22  ;;  %v216_v44 = vpop.f32.mrb[5].mxu1  ;;  %v177_v45 = vadd.f32 %v256_v22, %v176_v43 }
  0xea   :  { %v217_v46 = vadd.f32 %v256_v22, %v216_v44  ;;  %241 = vst.msk [vmem:[%s503_s3 + $0x28] sm:$0xff] %vm235_vm1, %v182_v41 }
  0xeb   :  { %249 = vst.msk [vmem:[%s503_s3 + $0x68] sm:$0xff] %vm235_vm1, %v222_v42  ;;  %240 = vst.msk [vmem:[%s503_s3 + $0x20] sm:$0xff] %vm235_vm1, %v177_v45  ;;  %v312_v47 = vpop.f32.mrb[6].mxu0 }
  0xec   :  { %248 = vst.msk [vmem:[%s503_s3 + $0x60] sm:$0xff] %vm235_vm1, %v217_v46  ;;  %v324_v48 = vpop.f32.mrb[6].mxu1  ;;  %v192_v49 = vadd.f32 %v312_v47, %v256_v22  ;;  %v186_v51 = vpop.f32.mrb[7].mxu0 }
  0xed   :  { %v232_v50 = vadd.f32 %v324_v48, %v256_v22  ;;  %v226_v52 = vpop.f32.mrb[7].mxu1  ;;  %v187_v53 = vadd.f32 %v256_v22, %v186_v51 }
  0xee   :  { %v227_v54 = vadd.f32 %v256_v22, %v226_v52  ;;  %243 = vst.msk [vmem:[%s503_s3 + $0x38] sm:$0xff] %vm235_vm1, %v192_v49 }
  0xef   :  { %251 = vst.msk [vmem:[%s503_s3 + $0x78] sm:$0xff] %vm235_vm1, %v232_v50  ;;  %242 = vst.msk [vmem:[%s503_s3 + $0x30] sm:$0xff] %vm235_vm1, %v187_v53 }
  0xf0   :  { %250 = vst.msk [vmem:[%s503_s3 + $0x70] sm:$0xff] %vm235_vm1, %v227_v54 }

// kernel: net_forward.8
= control target key start
LH: loop header
LB: loop body
LE: loop exit
PB: predicated region body
PF: predicated region fallthrough
CT: control target
= control target key end

     0   :  { %vm38_vm0 = vcmask 64512   ;;  %vm232_vm1 = vcmask 392192   ;;  %s469_s1 = inlined_call_operand.vmem [shape: f32[8,48], index: 1, kind: input, shape index: {}]   ;;  %s470_s0 = inlined_call_operand.vmem [shape: f32[128,8], index: 0, kind: input, shape index: {}]   ;;  %s471_s2 = inlined_call_operand.vmem [shape: f32[1,48], index: 2, kind: input, shape index: {}]   ;;  %s472_s3 = inlined_call_operand.vmem [shape: f32[128,48], index: 3, kind: output, shape index: {}]  }
   0x1   :  { %v30_v0 = vld [vmem:[%s469_s1] sm:$0xff]  ;;  %v15_v3 = vld [vmem:[%s470_s0 + $0x8] sm:$0xff]  ;;  %v16_v5 = vld [vmem:[%s470_s0 + $0x10] sm:$0xff] }
   0x2   :  { %v14_v1 = vld [vmem:[%s470_s0] sm:$0xff]  ;;  %287 = vmatprep.subr.mxu0 %v30_v0  ;;  %313 = vmatprep.subr.mxu1 %v30_v0  ;;  %v23_v4 = vld [vmem:[%s470_s0 + $0x48] sm:$0xff]  ;;  %v24_v6 = vld [vmem:[%s470_s0 + $0x50] sm:$0xff] }
   0x3   :  { %v22_v2 = vld [vmem:[%s470_s0 + $0x40] sm:$0xff]  ;;  %288 = vmatpush3.msra.mxu0 %v30_v0  ;;  %314 = vmatpush3.msra.mxu1 %v30_v0  ;;  %v17_v7 = vld [vmem:[%s470_s0 + $0x18] sm:$0xff]  ;;  %v19_v11 = vld [vmem:[%s470_s0 + $0x28] sm:$0xff] }
   0x4   :  { %289 = vmatprep.mubr.msk.f32.mxu0 %vm38_vm0, %v14_v1  ;;  %301 = vmatprep.mubr.msk.f32.mxu1 %vm38_vm0, %v22_v2  ;;  %v25_v8 = vld [vmem:[%s470_s0 + $0x58] sm:$0xff]  ;;  %v18_v9 = vld [vmem:[%s470_s0 + $0x20] sm:$0xff]  ;;  %v27_v12 = vld [vmem:[%s470_s0 + $0x68] sm:$0xff] }
   0x5   :  { %290 = vmatmul.mubr.msk.f32.vlgmr.msra.gmra.mrb[0].mxu0 %vm38_vm0, %v15_v3  ;;  %302 = vmatmul.mubr.msk.f32.vlgmr.msra.gmra.mrb[0].mxu1 %vm38_vm0, %v23_v4  ;;  %v26_v10 = vld [vmem:[%s470_s0 + $0x60] sm:$0xff]  ;;  %v20_v13 = vld [vmem:[%s470_s0 + $0x30] sm:$0xff]  ;;  %v21_v15 = vld [vmem:[%s470_s0 + $0x38] sm:$0xff] }
   0x6   :  { %292 = vmatprep.mubr.msk.f32.mxu0 %vm38_vm0, %v16_v5  ;;  %304 = vmatprep.mubr.msk.f32.mxu1 %vm38_vm0, %v24_v6  ;;  %v28_v14 = vld [vmem:[%s470_s0 + $0x70] sm:$0xff]  ;;  %v29_v16 = vld [vmem:[%s470_s0 + $0x78] sm:$0xff]  ;;  %v253_v17 = vld [vmem:[%s471_s2] ss:$0 sm:$0xff] }
   0x9   :  { %293 = vmatmul.mubr.msk.f32.gmra.mrb[2].mxu0 %vm38_vm0, %v17_v7  ;;  %305 = vmatmul.mubr.msk.f32.gmra.mrb[2].mxu1 %vm38_vm0, %v25_v8 }
   0xa   :  { %295 = vmatprep.mubr.msk.f32.mxu0 %vm38_vm0, %v18_v9  ;;  %307 = vmatprep.mubr.msk.f32.mxu1 %vm38_vm0, %v26_v10 }
   0xd   :  { %296 = vmatmul.mubr.msk.f32.gmra.mrb[4].mxu0 %vm38_vm0, %v19_v11  ;;  %308 = vmatmul.mubr.msk.f32.gmra.mrb[4].mxu1 %vm38_vm0, %v27_v12 }
   0xe   :  { %298 = vmatprep.mubr.msk.f32.mxu0 %vm38_vm0, %v20_v13  ;;  %310 = vmatprep.mubr.msk.f32.mxu1 %vm38_vm0, %v28_v14 }
  0x11   :  { %299 = vmatmul.mubr.msk.f32.gmra.mrb[6].mxu0 %vm38_vm0, %v21_v15  ;;  %311 = vmatmul.mubr.msk.f32.gmra.mrb[6].mxu1 %vm38_vm0, %v29_v16 }
  0xd8   :  { %v291_v18 = vpop.f32.mrb[0].mxu0  ;;  %v303_v19 = vpop.f32.mrb[0].mxu1 }
  0xd9   :  { %v159_v20 = vadd.f32 %v291_v18, %v253_v17  ;;  %v199_v21 = vadd.f32 %v303_v19, %v253_v17  ;;  %v153_v22 = vpop.f32.mrb[1].mxu0  ;;  %v193_v23 = vpop.f32.mrb[1].mxu1 }
  0xda   :  { %v154_v24 = vadd.f32 %v253_v17, %v153_v22  ;;  %v194_v25 = vadd.f32 %v253_v17, %v193_v23 }
  0xdb   :  { %234 = vst.msk [vmem:[%s472_s3 + $0x8] sm:$0xff] %vm232_vm1, %v159_v20  ;;  %242 = vst.msk [vmem:[%s472_s3 + $0x48] sm:$0xff] %vm232_vm1, %v199_v21 }
  0xdc   :  { %233 = vst.msk [vmem:[%s472_s3] sm:$0xff] %vm232_vm1, %v154_v24  ;;  %241 = vst.msk [vmem:[%s472_s3 + $0x40] sm:$0xff] %vm232_vm1, %v194_v25  ;;  %v294_v26 = vpop.f32.mrb[2].mxu0  ;;  %v306_v27 = vpop.f32.mrb[2].mxu1 }
  0xdd   :  { %v169_v28 = vadd.f32 %v294_v26, %v253_v17  ;;  %v209_v29 = vadd.f32 %v306_v27, %v253_v17  ;;  %v163_v30 = vpop.f32.mrb[3].mxu0  ;;  %v203_v31 = vpop.f32.mrb[3].mxu1 }
  0xde   :  { %v164_v32 = vadd.f32 %v253_v17, %v163_v30  ;;  %v204_v33 = vadd.f32 %v253_v17, %v203_v31 }
  0xdf   :  { %236 = vst.msk [vmem:[%s472_s3 + $0x18] sm:$0xff] %vm232_vm1, %v169_v28  ;;  %244 = vst.msk [vmem:[%s472_s3 + $0x58] sm:$0xff] %vm232_vm1, %v209_v29 }
  0xe0   :  { %235 = vst.msk [vmem:[%s472_s3 + $0x10] sm:$0xff] %vm232_vm1, %v164_v32  ;;  %243 = vst.msk [vmem:[%s472_s3 + $0x50] sm:$0xff] %vm232_vm1, %v204_v33  ;;  %v297_v34 = vpop.f32.mrb[4].mxu0  ;;  %v309_v35 = vpop.f32.mrb[4].mxu1 }
  0xe1   :  { %v179_v36 = vadd.f32 %v297_v34, %v253_v17  ;;  %v219_v37 = vadd.f32 %v309_v35, %v253_v17  ;;  %v173_v38 = vpop.f32.mrb[5].mxu0  ;;  %v213_v39 = vpop.f32.mrb[5].mxu1 }
  0xe2   :  { %v174_v40 = vadd.f32 %v253_v17, %v173_v38  ;;  %v214_v41 = vadd.f32 %v253_v17, %v213_v39 }
  0xe3   :  { %238 = vst.msk [vmem:[%s472_s3 + $0x28] sm:$0xff] %vm232_vm1, %v179_v36  ;;  %246 = vst.msk [vmem:[%s472_s3 + $0x68] sm:$0xff] %vm232_vm1, %v219_v37 }
  0xe4   :  { %237 = vst.msk [vmem:[%s472_s3 + $0x20] sm:$0xff] %vm232_vm1, %v174_v40  ;;  %245 = vst.msk [vmem:[%s472_s3 + $0x60] sm:$0xff] %vm232_vm1, %v214_v41  ;;  %v300_v42 = vpop.f32.mrb[6].mxu0  ;;  %v312_v43 = vpop.f32.mrb[6].mxu1 }
  0xe5   :  { %v189_v44 = vadd.f32 %v300_v42, %v253_v17  ;;  %v229_v45 = vadd.f32 %v312_v43, %v253_v17  ;;  %v183_v46 = vpop.f32.mrb[7].mxu0  ;;  %v223_v47 = vpop.f32.mrb[7].mxu1 }
  0xe6   :  { %v184_v48 = vadd.f32 %v253_v17, %v183_v46  ;;  %v224_v49 = vadd.f32 %v253_v17, %v223_v47 }
  0xe7   :  { %240 = vst.msk [vmem:[%s472_s3 + $0x38] sm:$0xff] %vm232_vm1, %v189_v44  ;;  %248 = vst.msk [vmem:[%s472_s3 + $0x78] sm:$0xff] %vm232_vm1, %v229_v45 }
  0xe8   :  { %239 = vst.msk [vmem:[%s472_s3 + $0x30] sm:$0xff] %vm232_vm1, %v184_v48  ;;  %247 = vst.msk [vmem:[%s472_s3 + $0x70] sm:$0xff] %vm232_vm1, %v224_v49 }

// kernel: net_forward.9
= control target key start
LH: loop header
LB: loop body
LE: loop exit
PB: predicated region body
PF: predicated region fallthrough
CT: control target
= control target key end

     0   :  { %vm14_vm0 = vcmask 130048   ;;  %v2194_v0 = vmov 0.0|0.0   ;;  %vm2195_vm1 = vmmov 0   ;;  %v2196_v3 = vmov 0.0   ;;  %s2197_s17 = smov 96   ;;  %s2198_s20 = smov 32   ;;  %s2542_s1 = inlined_call_operand.vmem [shape: f32[16,48], index: 1, kind: input, shape index: {}]   ;;  %s2543_s2 = inlined_call_operand.vmem [shape: f32[1,48], index: 2, kind: input, shape index: {}]   ;;  %s2544_s0 = inlined_call_operand.vmem [shape: f32[16,8,48], index: 0, kind: input, shape index: {}]   ;;  %s2545_s3 = inlined_call_operand.vmem [shape: f32[16,8,16], index: 3, kind: output, shape index: {}]  }
   0x1   :  { %2042 = vmatprep.subr.bf16.mxu0 %v2194_v0  ;;  %v16_v1 = vld [vmem:[%s2542_s1] sm:$0xff]  ;;  %v17_v2 = vld [vmem:[%s2542_s1 + $0x8] sm:$0xff]  ;;  %1934 = vmatprep.mubr.msk.f32.mxu0 %vm2195_vm1, %v2196_v3  ;;  %15 = vst.msk [vmem:[#allocation2] sm:$0xff] %vm14_vm0, %v2196_v3  ;;  %s2199_s21 = smov 112   ;;  %s2200_s22 = smov 16   ;;  %v1827_v54 = vld [vmem:[%s2544_s0 + $0x10] sm:$0xff] }
   0x2   :  { %v2232_v4 = vpack.c.bf16 %v17_v2, %v16_v1  ;;  %2045 = vmatprep.subr.bf16.mxu1 %v2194_v0  ;;  %1941 = vmatprep.mubr.msk.f32.mxu1 %vm2195_vm1, %v2196_v3  ;;  %v2249_v6 = vld [vmem:[%s2543_s2] ss:$0 sm:$0xff]  ;;  %v1823_v32 = vld [vmem:[%s2544_s0 + $0x8] sm:$0xff] }
   0x3   :  { %v99_v10 = vld [vmem:[%s2544_s0] sm:$0xff] }
   0x4   :  { %2044 = vmatpush3.bf16.msra.mxu0 %v2232_v4  ;;  %2047 = vmatpush3.bf16.msra.mxu1 %v2232_v4 }
   0x5   :  { %2048 = vmatprep.subr.bf16.mxu0 %v2194_v0  ;;  %2051 = vmatprep.subr.bf16.mxu1 %v2194_v0 }
   0x8   :  { %v19_v5 = vld [vmem:[#allocation2] sm:$0xff] }
   0x9   :  { %1935 = vmatmul.mubr.msk.f32.vlgmr.msra.gmra.mrb[0].mxu0 %vm14_vm0, %v19_v5 }
   0xa   :  { %2050 = vmatpush3.bf16.msra.mxu0 %v2232_v4  ;;  %1948 = vmatprep.mubr.msk.f32.mxu0 %vm2195_vm1, %v2196_v3 }
   0xb   :  { %2054 = vmatprep.subr.bf16.mxu0 %v2194_v0 }
  0xdc   :  { %v95_v7 = vpop.f32.mrb[0].mxu0 }
  0xdd   :  { %v96_v8 = vadd.f32 %v2249_v6, %v95_v7  ;;  %v1936_v9 = vpop.f32.mrb[1].mxu0 }
  0xdf   :  { %108 = vrot.lane.b32.xlu0 %v96_v8, %s2197_s17  ;;  %v100_v11 = vadd.f32 %v99_v10, %v96_v8 }
  0xe1   :  { %v1821_v12 = vmul.f32 -1.442695, %v100_v11 }
  0xe3   :  { %2097 = vpow2.f32 %v1821_v12 }
  0xed   :  { %v2098_v13 = vpop.eup %2097 }
  0xee   :  { %v104_v14 = vadd.f32 1.0, %v2098_v13 }
  0xf0   :  { %2099 = vrcp.f32 %v104_v14 }
  0xfa   :  { %v2100_v15 = vpop.eup %2099 }
  0xfb   :  { %v118_v22 = vsub.f32 1.0, %v2100_v15 }
 0x151   :  { %v109_v16 = vpop.permute.xlu0 %108 }
 0x152   :  { %v111_v17 = vmul.f32 %v2100_v15, %v109_v16  ;;  %v1831_v16 = vld [vmem:[%s2544_s0 + $0x18] sm:$0xff] }
 0x154   :  { %113 = vrot.lane.b32.xlu0 %v111_v17, %s2198_s20 }
 0x1c6   :  { %v114_v18 = vpop.permute.xlu0 %113 }
 0x1c7   :  { %v116_v19 = vadd.f32 %v114_v18, %v99_v10 }
 0x1c9   :  { %2101 = vtanh.f32 %v116_v19 }
 0x1d3   :  { %v2102_v20 = vpop.eup %2101 }
 0x1d4   :  { %120 = vrot.lane.b32.xlu1 %v2102_v20, %s2199_s21 }
 0x1d8   :  { %124 = vrot.lane.b32.xlu1 %v19_v5, %s2200_s22 }
 0x246   :  { %v121_v21 = vpop.permute.xlu1 %120 }
 0x247   :  { %v123_v24 = vmul.f32 %v121_v21, %v118_v22 }
 0x24a   :  { %v125_v23 = vpop.permute.xlu1 %124 }
 0x24b   :  { %v127_v25 = vmul.f32 %v2100_v15, %v125_v23 }
 0x24d   :  { %v128_v26 = vadd.f32 %v127_v25, %v123_v24 }
 0x24f   :  { %130 = vrot.lane.b32.xlu0 %v128_v26, %s2199_s21 }
 0x2c1   :  { %v131_v27 = vpop.permute.xlu0 %130 }
 0x2c2   :  { %133 = vst.msk [vmem:[#allocation2] sm:$0xff] %vm14_vm0, %v131_v27  ;;  %134 = vst.msk [vmem:[%s2545_s3] sm:$0xff] %vm14_vm0, %v131_v27 }
 0x2c9   :  { %v135_v28 = vld [vmem:[#allocation2] sm:$0xff] }
 0x2ca   :  { %1942 = vmatmul.mubr.msk.f32.vlgmr.msra.gmra.mrb[0].mxu1 %vm14_vm0, %v135_v28 }
 0x2cb   :  { %2053 = vmatpush3.bf16.msra.mxu1 %v2232_v4  ;;  %1955 = vmatprep.mubr.msk.f32.mxu1 %vm2195_vm1, %v2196_v3 }
 0x2cc   :  { %2057 = vmatprep.subr.bf16.mxu1 %v2194_v0 }
 0x39d   :  { %v205_v29 = vpop.f32.mrb[0].mxu1 }
 0x39e   :  { %v206_v30 = vadd.f32 %v2249_v6, %v205_v29  ;;  %v1943_v31 = vpop.f32.mrb[1].mxu1 }
 0x3a0   :  { %219 = vrot.lane.b32.xlu1 %v206_v30, %s2197_s17  ;;  %v211_v33 = vadd.f32 %v1823_v32, %v206_v30 }
 0x3a2   :  { %v1824_v34 = vmul.f32 -1.442695, %v211_v33 }
 0x3a4   :  { %2103 = vpow2.f32 %v1824_v34 }
 0x3ae   :  { %v2104_v35 = vpop.eup %2103 }
 0x3af   :  { %v215_v36 = vadd.f32 1.0, %v2104_v35 }
 0x3b1   :  { %2105 = vrcp.f32 %v215_v36 }
 0x3bb   :  { %v2106_v37 = vpop.eup %2105 }
 0x3bc   :  { %v229_v44 = vsub.f32 1.0, %v2106_v37 }
 0x412   :  { %v220_v38 = vpop.permute.xlu1 %219 }
 0x413   :  { %v222_v39 = vmul.f32 %v2106_v37, %v220_v38  ;;  %v1835_v38 = vld [vmem:[%s2544_s0 + $0x20] sm:$0xff] }
 0x415   :  { %224 = vrot.lane.b32.xlu0 %v222_v39, %s2198_s20 }
 0x419   :  { %235 = vrot.lane.b32.xlu0 %v135_v28, %s2200_s22 }
 0x487   :  { %v225_v40 = vpop.permute.xlu0 %224 }
 0x488   :  { %v227_v41 = vadd.f32 %v1823_v32, %v225_v40 }
 0x48a   :  { %2107 = vtanh.f32 %v227_v41 }
 0x48b   :  { %v236_v43 = vpop.permute.xlu0 %235 }
 0x48c   :  { %v238_v46 = vmul.f32 %v2106_v37, %v236_v43 }
 0x494   :  { %v2108_v42 = vpop.eup %2107 }
 0x495   :  { %231 = vrot.lane.b32.xlu1 %v2108_v42, %s2199_s21 }
 0x507   :  { %v232_v45 = vpop.permute.xlu1 %231 }
 0x508   :  { %v234_v47 = vmul.f32 %v232_v45, %v229_v44 }
 0x50a   :  { %v239_v48 = vadd.f32 %v238_v46, %v234_v47 }
 0x50c   :  { %241 = vrot.lane.b32.xlu1 %v239_v48, %s2199_s21 }
 0x57e   :  { %v242_v49 = vpop.permute.xlu1 %241 }
 0x57f   :  { %244 = vst.msk [vmem:[#allocation2] sm:$0xff] %vm14_vm0, %v242_v49  ;;  %1825 = vst.msk [vmem:[%s2545_s3 + $0x8] sm:$0xff] %vm14_vm0, %v242_v49 }
 0x586   :  { %v247_v50 = vld [vmem:[#allocation2] sm:$0xff] }
 0x587   :  { %1949 = vmatmul.mubr.msk.f32.vlgmr.msra.gmra.mrb[2].mxu0 %vm14_vm0, %v247_v50 }
 0x588   :  { %2056 = vmatpush3.bf16.msra.mxu0 %v2232_v4  ;;  %1962 = vmatprep.mubr.msk.f32.mxu0 %vm2195_vm1, %v2196_v3 }
 0x589   :  { %2060 = vmatprep.subr.bf16.mxu0 %v2194_v0 }
 0x65a   :  { %v317_v51 = vpop.f32.mrb[2].mxu0 }
 0x65b   :  { %v318_v52 = vadd.f32 %v2249_v6, %v317_v51  ;;  %v1950_v53 = vpop.f32.mrb[3].mxu0 }
 0x65d   :  { %331 = vrot.lane.b32.xlu0 %v318_v52, %s2197_s17  ;;  %v323_v55 = vadd.f32 %v1827_v54, %v318_v52 }
 0x65f   :  { %v1828_v56 = vmul.f32 -1.442695, %v323_v55 }
 0x661   :  { %2109 = vpow2.f32 %v1828_v56 }
 0x66b   :  { %v2110_v57 = vpop.eup %2109 }
 0x66c   :  { %v327_v58 = vadd.f32 1.0, %v2110_v57 }
 0x66e   :  { %2111 = vrcp.f32 %v327_v58 }
 0x678   :  { %v2112_v59 = vpop.eup %2111 }
 0x679   :  { %v341_v5 = vsub.f32 1.0, %v2112_v59 }
 0x6cf   :  { %v332_v60 = vpop.permute.xlu0 %331 }
 0x6d0   :  { %v334_v61 = vmul.f32 %v2112_v59, %v332_v60  ;;  %v1839_v60 = vld [vmem:[%s2544_s0 + $0x28] sm:$0xff] }
 0x6d2   :  { %336 = vrot.lane.b32.xlu1 %v334_v61, %s2198_s20 }
 0x6d6   :  { %347 = vrot.lane.b32.xlu1 %v247_v50, %s2200_s22 }
 0x744   :  { %v337_v62 = vpop.permute.xlu1 %336 }
 0x745   :  { %v339_v63 = vadd.f32 %v1827_v54, %v337_v62 }
 0x747   :  { %2113 = vtanh.f32 %v339_v63 }
 0x748   :  { %v348_v2 = vpop.permute.xlu1 %347 }
 0x749   :  { %v350_v8 = vmul.f32 %v2112_v59, %v348_v2 }
 0x751   :  { %v2114_v1 = vpop.eup %2113 }
 0x752   :  { %343 = vrot.lane.b32.xlu0 %v2114_v1, %s2199_s21 }
 0x7c4   :  { %v344_v7 = vpop.permute.xlu0 %343 }
 0x7c5   :  { %v346_v9 = vmul.f32 %v344_v7, %v341_v5 }
 0x7c7   :  { %v351_v10 = vadd.f32 %v350_v8, %v346_v9 }
 0x7c9   :  { %353 = vrot.lane.b32.xlu0 %v351_v10, %s2199_s21 }
 0x83b   :  { %v354_v11 = vpop.permute.xlu0 %353 }
 0x83c   :  { %356 = vst.msk [vmem:[#allocation2] sm:$0xff] %vm14_vm0, %v354_v11  ;;  %1829 = vst.msk [vmem:[%s2545_s3 + $0x10] sm:$0xff] %vm14_vm0, %v354_v11 }
 0x843   :  { %v359_v12 = vld [vmem:[#allocation2] sm:$0xff] }
 0x844   :  { %1956 = vmatmul.mubr.msk.f32.vlgmr.msra.gmra.mrb[2].mxu1 %vm14_vm0, %v359_v12 }
 0x845   :  { %2059 = vmatpush3.bf16.msra.mxu1 %v2232_v4  ;;  %1969 = vmatprep.mubr.msk.f32.mxu1 %vm2195_vm1, %v2196_v3 }
 0x846   :  { %2063 = vmatprep.subr.bf16.mxu1 %v2194_v0 }
 0x917   :  { %v429_v13 = vpop.f32.mrb[2].mxu1 }
 0x918   :  { %v430_v14 = vadd.f32 %v2249_v6, %v429_v13  ;;  %v1957_v15 = vpop.f32.mrb[3].mxu1 }
 0x91a   :  { %443 = vrot.lane.b32.xlu1 %v430_v14, %s2197_s17  ;;  %v435_v17 = vadd.f32 %v1831_v16, %v430_v14 }
 0x91c   :  { %v1832_v18 = vmul.f32 -1.442695, %v435_v17 }
 0x91e   :  { %2115 = vpow2.f32 %v1832_v18 }
 0x928   :  { %v2116_v19 = vpop.eup %2115 }
 0x929   :  { %v439_v20 = vadd.f32 1.0, %v2116_v19 }
 0x92b   :  { %2117 = vrcp.f32 %v439_v20 }
 0x935   :  { %v2118_v21 = vpop.eup %2117 }
 0x936   :  { %v453_v28 = vsub.f32 1.0, %v2118_v21 }
 0x98c   :  { %v444_v22 = vpop.permute.xlu1 %443 }
 0x98d   :  { %v446_v23 = vmul.f32 %v2118_v21, %v444_v22  ;;  %v1843_v22 = vld [vmem:[%s2544_s0 + $0x30] sm:$0xff] }
 0x98f   :  { %448 = vrot.lane.b32.xlu0 %v446_v23, %s2198_s20 }
 0x993   :  { %459 = vrot.lane.b32.xlu0 %v359_v12, %s2200_s22 }
 0xa01   :  { %v449_v24 = vpop.permute.xlu0 %448 }
 0xa02   :  { %v451_v25 = vadd.f32 %v1831_v16, %v449_v24 }
 0xa04   :  { %2119 = vtanh.f32 %v451_v25 }
 0xa05   :  { %v460_v27 = vpop.permute.xlu0 %459 }
 0xa06   :  { %v462_v30 = vmul.f32 %v2118_v21, %v460_v27 }
 0xa0e   :  { %v2120_v26 = vpop.eup %2119 }
 0xa0f   :  { %455 = vrot.lane.b32.xlu1 %v2120_v26, %s2199_s21 }
 0xa81   :  { %v456_v29 = vpop.permute.xlu1 %455 }
 0xa82   :  { %v458_v31 = vmul.f32 %v456_v29, %v453_v28 }
 0xa84   :  { %v463_v32 = vadd.f32 %v462_v30, %v458_v31 }
 0xa86   :  { %465 = vrot.lane.b32.xlu1 %v463_v32, %s2199_s21 }
 0xaf8   :  { %v466_v33 = vpop.permute.xlu1 %465 }
 0xaf9   :  { %468 = vst.msk [vmem:[#allocation2] sm:$0xff] %vm14_vm0, %v466_v33  ;;  %1833 = vst.msk [vmem:[%s2545_s3 + $0x18] sm:$0xff] %vm14_vm0, %v466_v33 }
 0xb00   :  { %v471_v34 = vld [vmem:[#allocation2] sm:$0xff] }
 0xb01   :  { %1963 = vmatmul.mubr.msk.f32.vlgmr.msra.gmra.mrb[4].mxu0 %vm14_vm0, %v471_v34 }
 0xb02   :  { %2062 = vmatpush3.bf16.msra.mxu0 %v2232_v4  ;;  %1976 = vmatprep.mubr.msk.f32.mxu0 %vm2195_vm1, %v2196_v3 }
 0xb03   :  { %2066 = vmatprep.subr.bf16.mxu0 %v2194_v0 }
 0xbd4   :  { %v541_v35 = vpop.f32.mrb[4].mxu0 }
 0xbd5   :  { %v542_v36 = vadd.f32 %v2249_v6, %v541_v35  ;;  %v1964_v37 = vpop.f32.mrb[5].mxu0 }
 0xbd7   :  { %555 = vrot.lane.b32.xlu0 %v542_v36, %s2197_s17  ;;  %v547_v39 = vadd.f32 %v1835_v38, %v542_v36 }
 0xbd9   :  { %v1836_v40 = vmul.f32 -1.442695, %v547_v39 }
 0xbdb   :  { %2121 = vpow2.f32 %v1836_v40 }
 0xbe5   :  { %v2122_v41 = vpop.eup %2121 }
 0xbe6   :  { %v551_v42 = vadd.f32 1.0, %v2122_v41 }
 0xbe8   :  { %2123 = vrcp.f32 %v551_v42 }
 0xbf2   :  { %v2124_v43 = vpop.eup %2123 }
 0xbf3   :  { %v565_v50 = vsub.f32 1.0, %v2124_v43 }
 0xc49   :  { %v556_v44 = vpop.permute.xlu0 %555 }
 0xc4a   :  { %v558_v45 = vmul.f32 %v2124_v43, %v556_v44  ;;  %v1847_v44 = vld [vmem:[%s2544_s0 + $0x38] sm:$0xff] }
 0xc4c   :  { %560 = vrot.lane.b32.xlu1 %v558_v45, %s2198_s20 }
 0xc50   :  { %571 = vrot.lane.b32.xlu1 %v471_v34, %s2200_s22 }
 0xcbe   :  { %v561_v46 = vpop.permute.xlu1 %560 }
 0xcbf   :  { %v563_v47 = vadd.f32 %v1835_v38, %v561_v46 }
 0xcc1   :  { %2125 = vtanh.f32 %v563_v47 }
 0xcc2   :  { %v572_v49 = vpop.permute.xlu1 %571 }
 0xcc3   :  { %v574_v52 = vmul.f32 %v2124_v43, %v572_v49 }
 0xccb   :  { %v2126_v48 = vpop.eup %2125 }
 0xccc   :  { %567 = vrot.lane.b32.xlu0 %v2126_v48, %s2199_s21 }
 0xd3e   :  { %v568_v51 = vpop.permute.xlu0 %567 }
 0xd3f   :  { %v570_v53 = vmul.f32 %v568_v51, %v565_v50 }
 0xd41   :  { %v575_v54 = vadd.f32 %v574_v52, %v570_v53 }
 0xd43   :  { %577 = vrot.lane.b32.xlu0 %v575_v54, %s2199_s21 }
 0xdb5   :  { %v578_v55 = vpop.permute.xlu0 %577 }
 0xdb6   :  { %580 = vst.msk [vmem:[#allocation2] sm:$0xff] %vm14_vm0, %v578_v55  ;;  %1837 = vst.msk [vmem:[%s2545_s3 + $0x20] sm:$0xff] %vm14_vm0, %v578_v55 }
 0xdbd   :  { %v583_v56 = vld [vmem:[#allocation2] sm:$0xff] }
 0xdbe   :  { %1970 = vmatmul.mubr.msk.f32.vlgmr.msra.gmra.mrb[4].mxu1 %vm14_vm0, %v583_v56 }
 0xdbf   :  { %2065 = vmatpush3.bf16.msra.mxu1 %v2232_v4  ;;  %1983 = vmatprep.mubr.msk.f32.mxu1 %vm2195_vm1, %v2196_v3 }
 0xdc0   :  { %2069 = vmatprep.subr.bf16.mxu1 %v2194_v0 }
 0xe91   :  { %v653_v57 = vpop.f32.mrb[4].mxu1 }
 0xe92   :  { %v654_v58 = vadd.f32 %v2249_v6, %v653_v57  ;;  %v1971_v59 = vpop.f32.mrb[5].mxu1 }
 0xe94   :  { %667 = vrot.lane.b32.xlu1 %v654_v58, %s2197_s17  ;;  %v659_v61 = vadd.f32 %v1839_v60, %v654_v58 }
 0xe96   :  { %v1840_v62 = vmul.f32 -1.442695, %v659_v61 }
 0xe98   :  { %2127 = vpow2.f32 %v1840_v62 }
 0xea2   :  { %v2128_v63 = vpop.eup %2127 }
 0xea3   :  { %v663_v1 = vadd.f32 1.0, %v2128_v63 }
 0xea5   :  { %2129 = vrcp.f32 %v663_v1 }
 0xeaf   :  { %v2130_v2 = vpop.eup %2129 }
 0xeb0   :  { %v677_v12 = vsub.f32 1.0, %v2130_v2 }
 0xf06   :  { %v668_v5 = vpop.permute.xlu1 %667 }
 0xf07   :  { %v670_v7 = vmul.f32 %v2130_v2, %v668_v5  ;;  %v1851_v5 = vld [vmem:[%s2544_s0 + $0x40] sm:$0xff] }
 0xf09   :  { %672 = vrot.lane.b32.xlu0 %v670_v7, %s2198_s20 }
 0xf0d   :  { %683 = vrot.lane.b32.xlu0 %v583_v56, %s2200_s22 }
 0xf7b   :  { %v673_v8 = vpop.permute.xlu0 %672 }
 0xf7c   :  { %v675_v9 = vadd.f32 %v1839_v60, %v673_v8 }
 0xf7e   :  { %2131 = vtanh.f32 %v675_v9 }
 0xf7f   :  { %v684_v11 = vpop.permute.xlu0 %683 }
 0xf80   :  { %v686_v14 = vmul.f32 %v2130_v2, %v684_v11 }
 0xf88   :  { %v2132_v10 = vpop.eup %2131 }
 0xf89   :  { %679 = vrot.lane.b32.xlu1 %v2132_v10, %s2199_s21 }
 0xffb   :  { %v680_v13 = vpop.permute.xlu1 %679 }
 0xffc   :  { %v682_v15 = vmul.f32 %v680_v13, %v677_v12 }
 0xffe   :  { %v687_v16 = vadd.f32 %v686_v14, %v682_v15 }
0x1000   :  { %689 = vrot.lane.b32.xlu1 %v687_v16, %s2199_s21 }
0x1072   :  { %v690_v17 = vpop.permute.xlu1 %689 }
0x1073   :  { %692 = vst.msk [vmem:[#allocation2] sm:$0xff] %vm14_vm0, %v690_v17  ;;  %1841 = vst.msk [vmem:[%s2545_s3 + $0x28] sm:$0xff] %vm14_vm0, %v690_v17 }
0x107a   :  { %v695_v18 = vld [vmem:[#allocation2] sm:$0xff] }
0x107b   :  { %1977 = vmatmul.mubr.msk.f32.vlgmr.msra.gmra.mrb[6].mxu0 %vm14_vm0, %v695_v18 }
0x107c   :  { %2068 = vmatpush3.bf16.msra.mxu0 %v2232_v4  ;;  %1990 = vmatprep.mubr.msk.f32.mxu0 %vm2195_vm1, %v2196_v3 }
0x107d   :  { %2072 = vmatprep.subr.bf16.mxu0 %v2194_v0 }
0x114e   :  { %v765_v19 = vpop.f32.mrb[6].mxu0 }
0x114f   :  { %v766_v20 = vadd.f32 %v2249_v6, %v765_v19  ;;  %v1978_v21 = vpop.f32.mrb[7].mxu0 }
0x1151   :  { %779 = vrot.lane.b32.xlu0 %v766_v20, %s2197_s17  ;;  %v771_v23 = vadd.f32 %v1843_v22, %v766_v20 }
0x1153   :  { %v1844_v24 = vmul.f32 -1.442695, %v771_v23 }
0x1155   :  { %2133 = vpow2.f32 %v1844_v24 }
0x115f   :  { %v2134_v25 = vpop.eup %2133 }
0x1160   :  { %v775_v26 = vadd.f32 1.0, %v2134_v25 }
0x1162   :  { %2135 = vrcp.f32 %v775_v26 }
0x116c   :  { %v2136_v27 = vpop.eup %2135 }
0x116d   :  { %v789_v34 = vsub.f32 1.0, %v2136_v27 }
0x11c3   :  { %v780_v28 = vpop.permute.xlu0 %779 }
0x11c4   :  { %v782_v29 = vmul.f32 %v2136_v27, %v780_v28  ;;  %v1855_v28 = vld [vmem:[%s2544_s0 + $0x48] sm:$0xff] }
0x11c6   :  { %784 = vrot.lane.b32.xlu1 %v782_v29, %s2198_s20 }
0x11ca   :  { %795 = vrot.lane.b32.xlu1 %v695_v18, %s2200_s22 }
0x1238   :  { %v785_v30 = vpop.permute.xlu1 %784 }
0x1239   :  { %v787_v31 = vadd.f32 %v1843_v22, %v785_v30 }
0x123b   :  { %2137 = vtanh.f32 %v787_v31 }
0x123c   :  { %v796_v33 = vpop.permute.xlu1 %795 }
0x123d   :  { %v798_v36 = vmul.f32 %v2136_v27, %v796_v33 }
0x1245   :  { %v2138_v32 = vpop.eup %2137 }
0x1246   :  { %791 = vrot.lane.b32.xlu0 %v2138_v32, %s2199_s21 }
0x12b8   :  { %v792_v35 = vpop.permute.xlu0 %791 }
0x12b9   :  { %v794_v37 = vmul.f32 %v792_v35, %v789_v34 }
0x12bb   :  { %v799_v38 = vadd.f32 %v798_v36, %v794_v37 }
0x12bd   :  { %801 = vrot.lane.b32.xlu0 %v799_v38, %s2199_s21 }
0x132f   :  { %v802_v39 = vpop.permute.xlu0 %801 }
0x1330   :  { %804 = vst.msk [vmem:[#allocation2] sm:$0xff] %vm14_vm0, %v802_v39  ;;  %1845 = vst.msk [vmem:[%s2545_s3 + $0x30] sm:$0xff] %vm14_vm0, %v802_v39 }
0x1337   :  { %v807_v40 = vld [vmem:[#allocation2] sm:$0xff] }
0x1338   :  { %1984 = vmatmul.mubr.msk.f32.vlgmr.msra.gmra.mrb[6].mxu1 %vm14_vm0, %v807_v40 }
0x1339   :  { %2071 = vmatpush3.bf16.msra.mxu1 %v2232_v4  ;;  %1997 = vmatprep.mubr.msk.f32.mxu1 %vm2195_vm1, %v2196_v3 }
0x133a   :  { %2075 = vmatprep.subr.bf16.mxu1 %v2194_v0 }
0x140b   :  { %v877_v41 = vpop.f32.mrb[6].mxu1 }
0x140c   :  { %v878_v42 = vadd.f32 %v2249_v6, %v877_v41  ;;  %v1985_v43 = vpop.f32.mrb[7].mxu1 }
0x140e   :  { %891 = vrot.lane.b32.xlu1 %v878_v42, %s2197_s17  ;;  %v883_v45 = vadd.f32 %v1847_v44, %v878_v42 }
0x1410   :  { %v1848_v46 = vmul.f32 -1.442695, %v883_v45 }
0x1412   :  { %2139 = vpow2.f32 %v1848_v46 }
0x141c   :  { %v2140_v47 = vpop.eup %2139 }
0x141d   :  { %v887_v48 = vadd.f32 1.0, %v2140_v47 }
0x141f   :  { %2141 = vrcp.f32 %v887_v48 }
0x1429   :  { %v2142_v49 = vpop.eup %2141 }
0x142a   :  { %v901_v56 = vsub.f32 1.0, %v2142_v49 }
0x1480   :  { %v892_v50 = vpop.permute.xlu1 %891 }
0x1481   :  { %v894_v51 = vmul.f32 %v2142_v49, %v892_v50  ;;  %v1859_v50 = vld [vmem:[%s2544_s0 + $0x50] sm:$0xff] }
0x1483   :  { %896 = vrot.lane.b32.xlu0 %v894_v51, %s2198_s20 }
0x1487   :  { %907 = vrot.lane.b32.xlu0 %v807_v40, %s2200_s22 }
0x14f5   :  { %v897_v52 = vpop.permute.xlu0 %896 }
0x14f6   :  { %v899_v53 = vadd.f32 %v1847_v44, %v897_v52 }
0x14f8   :  { %2143 = vtanh.f32 %v899_v53 }
0x14f9   :  { %v908_v55 = vpop.permute.xlu0 %907 }
0x14fa   :  { %v910_v58 = vmul.f32 %v2142_v49, %v908_v55 }
0x1502   :  { %v2144_v54 = vpop.eup %2143 }
0x1503   :  { %903 = vrot.lane.b32.xlu1 %v2144_v54, %s2199_s21 }
0x1575   :  { %v904_v57 = vpop.permute.xlu1 %903 }
0x1576   :  { %v906_v59 = vmul.f32 %v904_v57, %v901_v56 }
0x1578   :  { %v911_v60 = vadd.f32 %v910_v58, %v906_v59 }
0x157a   :  { %913 = vrot.lane.b32.xlu1 %v911_v60, %s2199_s21 }
0x15ec   :  { %v914_v61 = vpop.permute.xlu1 %913 }
0x15ed   :  { %916 = vst.msk [vmem:[#allocation2] sm:$0xff] %vm14_vm0, %v914_v61  ;;  %1849 = vst.msk [vmem:[%s2545_s3 + $0x38] sm:$0xff] %vm14_vm0, %v914_v61 }
0x15f4   :  { %v919_v62 = vld [vmem:[#allocation2] sm:$0xff] }
0x15f5   :  { %1991 = vmatmul.mubr.msk.f32.vlgmr.msra.gmra.mrb[8].mxu0 %vm14_vm0, %v919_v62 }
0x15f6   :  { %2074 = vmatpush3.bf16.msra.mxu0 %v2232_v4  ;;  %2004 = vmatprep.mubr.msk.f32.mxu0 %vm2195_vm1, %v2196_v3 }
0x15f7   :  { %2078 = vmatprep.subr.bf16.mxu0 %v2194_v0 }
0x16c8   :  { %v989_v63 = vpop.f32.mrb[8].mxu0 }
0x16c9   :  { %v990_v1 = vadd.f32 %v2249_v6, %v989_v63  ;;  %v1992_v2 = vpop.f32.mrb[9].mxu0 }
0x16cb   :  { %1003 = vrot.lane.b32.xlu0 %v990_v1, %s2197_s17  ;;  %v995_v7 = vadd.f32 %v1851_v5, %v990_v1 }
0x16cd   :  { %v1852_v8 = vmul.f32 -1.442695, %v995_v7 }
0x16cf   :  { %2145 = vpow2.f32 %v1852_v8 }
0x16d9   :  { %v2146_v9 = vpop.eup %2145 }
0x16da   :  { %v999_v10 = vadd.f32 1.0, %v2146_v9 }
0x16dc   :  { %2147 = vrcp.f32 %v999_v10 }
0x16e6   :  { %v2148_v11 = vpop.eup %2147 }
0x16e7   :  { %v1013_v18 = vsub.f32 1.0, %v2148_v11 }
0x173d   :  { %v1004_v12 = vpop.permute.xlu0 %1003 }
0x173e   :  { %v1006_v13 = vmul.f32 %v2148_v11, %v1004_v12  ;;  %v1863_v12 = vld [vmem:[%s2544_s0 + $0x58] sm:$0xff] }
0x1740   :  { %1008 = vrot.lane.b32.xlu1 %v1006_v13, %s2198_s20 }
0x1744   :  { %1019 = vrot.lane.b32.xlu1 %v919_v62, %s2200_s22 }
0x17b2   :  { %v1009_v14 = vpop.permute.xlu1 %1008 }
0x17b3   :  { %v1011_v15 = vadd.f32 %v1851_v5, %v1009_v14 }
0x17b5   :  { %2149 = vtanh.f32 %v1011_v15 }
0x17b6   :  { %v1020_v17 = vpop.permute.xlu1 %1019 }
0x17b7   :  { %v1022_v20 = vmul.f32 %v2148_v11, %v1020_v17 }
0x17bf   :  { %v2150_v16 = vpop.eup %2149 }
0x17c0   :  { %1015 = vrot.lane.b32.xlu0 %v2150_v16, %s2199_s21 }
0x1832   :  { %v1016_v19 = vpop.permute.xlu0 %1015 }
0x1833   :  { %v1018_v21 = vmul.f32 %v1016_v19, %v1013_v18 }
0x1835   :  { %v1023_v22 = vadd.f32 %v1022_v20, %v1018_v21 }
0x1837   :  { %1025 = vrot.lane.b32.xlu0 %v1023_v22, %s2199_s21 }
0x18a9   :  { %v1026_v23 = vpop.permute.xlu0 %1025 }
0x18aa   :  { %1028 = vst.msk [vmem:[#allocation2] sm:$0xff] %vm14_vm0, %v1026_v23  ;;  %1853 = vst.msk [vmem:[%s2545_s3 + $0x40] sm:$0xff] %vm14_vm0, %v1026_v23 }
0x18b1   :  { %v1031_v24 = vld [vmem:[#allocation2] sm:$0xff] }
0x18b2   :  { %1998 = vmatmul.mubr.msk.f32.vlgmr.msra.gmra.mrb[8].mxu1 %vm14_vm0, %v1031_v24 }
0x18b3   :  { %2077 = vmatpush3.bf16.msra.mxu1 %v2232_v4  ;;  %2011 = vmatprep.mubr.msk.f32.mxu1 %vm2195_vm1, %v2196_v3 }
0x18b4   :  { %2081 = vmatprep.subr.bf16.mxu1 %v2194_v0 }
0x1985   :  { %v1101_v25 = vpop.f32.mrb[8].mxu1 }
0x1986   :  { %v1102_v26 = vadd.f32 %v2249_v6, %v1101_v25  ;;  %v1999_v27 = vpop.f32.mrb[9].mxu1 }
0x1988   :  { %1115 = vrot.lane.b32.xlu1 %v1102_v26, %s2197_s17  ;;  %v1107_v29 = vadd.f32 %v1855_v28, %v1102_v26 }
0x198a   :  { %v1856_v30 = vmul.f32 -1.442695, %v1107_v29 }
0x198c   :  { %2151 = vpow2.f32 %v1856_v30 }
0x1996   :  { %v2152_v31 = vpop.eup %2151 }
0x1997   :  { %v1111_v32 = vadd.f32 1.0, %v2152_v31 }
0x1999   :  { %2153 = vrcp.f32 %v1111_v32 }
0x19a3   :  { %v2154_v33 = vpop.eup %2153 }
0x19a4   :  { %v1125_v40 = vsub.f32 1.0, %v2154_v33 }
0x19fa   :  { %v1116_v34 = vpop.permute.xlu1 %1115 }
0x19fb   :  { %v1118_v35 = vmul.f32 %v2154_v33, %v1116_v34 }
0x19fd   :  { %1120 = vrot.lane.b32.xlu0 %v1118_v35, %s2198_s20 }
0x1a01   :  { %1131 = vrot.lane.b32.xlu0 %v1031_v24, %s2200_s22 }
0x1a6f   :  { %v1121_v36 = vpop.permute.xlu0 %1120 }
0x1a70   :  { %v1123_v37 = vadd.f32 %v1855_v28, %v1121_v36 }
0x1a72   :  { %2155 = vtanh.f32 %v1123_v37 }
0x1a73   :  { %v1132_v39 = vpop.permute.xlu0 %1131 }
0x1a74   :  { %v1134_v42 = vmul.f32 %v2154_v33, %v1132_v39  ;;  %v1867_v33 = vld [vmem:[%s2544_s0 + $0x60] sm:$0xff] }
0x1a7c   :  { %v2156_v38 = vpop.eup %2155 }
0x1a7d   :  { %1127 = vrot.lane.b32.xlu1 %v2156_v38, %s2199_s21 }
0x1aef   :  { %v1128_v41 = vpop.permute.xlu1 %1127 }
0x1af0   :  { %v1130_v43 = vmul.f32 %v1128_v41, %v1125_v40 }
0x1af2   :  { %v1135_v44 = vadd.f32 %v1134_v42, %v1130_v43 }
0x1af4   :  { %1137 = vrot.lane.b32.xlu1 %v1135_v44, %s2199_s21 }
0x1b66   :  { %v1138_v45 = vpop.permute.xlu1 %1137 }
0x1b67   :  { %1140 = vst.msk [vmem:[#allocation2] sm:$0xff] %vm14_vm0, %v1138_v45  ;;  %1857 = vst.msk [vmem:[%s2545_s3 + $0x48] sm:$0xff] %vm14_vm0, %v1138_v45 }
0x1b6e   :  { %v1143_v46 = vld [vmem:[#allocation2] sm:$0xff] }
0x1b6f   :  { %2005 = vmatmul.mubr.msk.f32.vlgmr.msra.gmra.mrb[10].mxu0 %vm14_vm0, %v1143_v46 }
0x1b70   :  { %2080 = vmatpush3.bf16.msra.mxu0 %v2232_v4  ;;  %2018 = vmatprep.mubr.msk.f32.mxu0 %vm2195_vm1, %v2196_v3 }
0x1b71   :  { %2084 = vmatprep.subr.bf16.mxu0 %v2194_v0 }
0x1c42   :  { %v1213_v47 = vpop.f32.mrb[10].mxu0 }
0x1c43   :  { %v1214_v48 = vadd.f32 %v2249_v6, %v1213_v47  ;;  %v2006_v49 = vpop.f32.mrb[11].mxu0 }
0x1c45   :  { %1227 = vrot.lane.b32.xlu0 %v1214_v48, %s2197_s17  ;;  %v1219_v51 = vadd.f32 %v1859_v50, %v1214_v48 }
0x1c47   :  { %v1860_v52 = vmul.f32 -1.442695, %v1219_v51 }
0x1c49   :  { %2157 = vpow2.f32 %v1860_v52 }
0x1c53   :  { %v2158_v53 = vpop.eup %2157 }
0x1c54   :  { %v1223_v54 = vadd.f32 1.0, %v2158_v53 }
0x1c56   :  { %2159 = vrcp.f32 %v1223_v54 }
0x1c60   :  { %v2160_v55 = vpop.eup %2159 }
0x1c61   :  { %v1237_v62 = vsub.f32 1.0, %v2160_v55 }
0x1cb7   :  { %v1228_v56 = vpop.permute.xlu0 %1227 }
0x1cb8   :  { %v1230_v57 = vmul.f32 %v2160_v55, %v1228_v56 }
0x1cba   :  { %1232 = vrot.lane.b32.xlu1 %v1230_v57, %s2198_s20 }
0x1cbe   :  { %1243 = vrot.lane.b32.xlu1 %v1143_v46, %s2200_s22 }
0x1d2c   :  { %v1233_v58 = vpop.permute.xlu1 %1232 }
0x1d2d   :  { %v1235_v59 = vadd.f32 %v1859_v50, %v1233_v58 }
0x1d2f   :  { %2161 = vtanh.f32 %v1235_v59 }
0x1d30   :  { %v1244_v61 = vpop.permute.xlu1 %1243 }
0x1d31   :  { %v1246_v1 = vmul.f32 %v2160_v55, %v1244_v61  ;;  %v1871_v55 = vld [vmem:[%s2544_s0 + $0x68] sm:$0xff] }
0x1d39   :  { %v2162_v60 = vpop.eup %2161 }
0x1d3a   :  { %1239 = vrot.lane.b32.xlu0 %v2162_v60, %s2199_s21 }
0x1dac   :  { %v1240_v63 = vpop.permute.xlu0 %1239 }
0x1dad   :  { %v1242_v2 = vmul.f32 %v1240_v63, %v1237_v62 }
0x1daf   :  { %v1247_v5 = vadd.f32 %v1246_v1, %v1242_v2 }
0x1db1   :  { %1249 = vrot.lane.b32.xlu0 %v1247_v5, %s2199_s21 }
0x1e23   :  { %v1250_v7 = vpop.permute.xlu0 %1249 }
0x1e24   :  { %1252 = vst.msk [vmem:[#allocation2] sm:$0xff] %vm14_vm0, %v1250_v7  ;;  %1861 = vst.msk [vmem:[%s2545_s3 + $0x50] sm:$0xff] %vm14_vm0, %v1250_v7 }
0x1e2b   :  { %v1255_v8 = vld [vmem:[#allocation2] sm:$0xff] }
0x1e2c   :  { %2012 = vmatmul.mubr.msk.f32.vlgmr.msra.gmra.mrb[10].mxu1 %vm14_vm0, %v1255_v8 }
0x1e2d   :  { %2083 = vmatpush3.bf16.msra.mxu1 %v2232_v4  ;;  %2025 = vmatprep.mubr.msk.f32.mxu1 %vm2195_vm1, %v2196_v3 }
0x1e2e   :  { %2087 = vmatprep.subr.bf16.mxu1 %v2194_v0 }
0x1eff   :  { %v1325_v9 = vpop.f32.mrb[10].mxu1 }
0x1f00   :  { %v1326_v10 = vadd.f32 %v2249_v6, %v1325_v9  ;;  %v2013_v11 = vpop.f32.mrb[11].mxu1 }
0x1f02   :  { %1339 = vrot.lane.b32.xlu1 %v1326_v10, %s2197_s17  ;;  %v1331_v13 = vadd.f32 %v1863_v12, %v1326_v10 }
0x1f04   :  { %v1864_v14 = vmul.f32 -1.442695, %v1331_v13 }
0x1f06   :  { %2163 = vpow2.f32 %v1864_v14 }
0x1f10   :  { %v2164_v15 = vpop.eup %2163 }
0x1f11   :  { %v1335_v16 = vadd.f32 1.0, %v2164_v15  ;;  %v1875_v15 = vld [vmem:[%s2544_s0 + $0x70] sm:$0xff] }
0x1f13   :  { %2165 = vrcp.f32 %v1335_v16 }
0x1f1d   :  { %v2166_v17 = vpop.eup %2165 }
0x1f1e   :  { %v1349_v23 = vsub.f32 1.0, %v2166_v17 }
0x1f74   :  { %v1340_v18 = vpop.permute.xlu1 %1339 }
0x1f75   :  { %v1342_v19 = vmul.f32 %v2166_v17, %v1340_v18 }
0x1f77   :  { %1344 = vrot.lane.b32.xlu0 %v1342_v19, %s2198_s20 }
0x1f7b   :  { %1355 = vrot.lane.b32.xlu0 %v1255_v8, %s2200_s22 }
0x1fe9   :  { %v1345_v0 = vpop.permute.xlu0 %1344 }
0x1fea   :  { %v1347_v20 = vadd.f32 %v1863_v12, %v1345_v0 }
0x1fec   :  { %2167 = vtanh.f32 %v1347_v20 }
0x1fed   :  { %v1356_v22 = vpop.permute.xlu0 %1355 }
0x1fee   :  { %v1358_v25 = vmul.f32 %v2166_v17, %v1356_v22 }
0x1ff6   :  { %v2168_v21 = vpop.eup %2167 }
0x1ff7   :  { %1351 = vrot.lane.b32.xlu1 %v2168_v21, %s2199_s21 }
0x2069   :  { %v1352_v24 = vpop.permute.xlu1 %1351 }
0x206a   :  { %v1354_v26 = vmul.f32 %v1352_v24, %v1349_v23 }
0x206c   :  { %v1359_v27 = vadd.f32 %v1358_v25, %v1354_v26 }
0x206e   :  { %1361 = vrot.lane.b32.xlu1 %v1359_v27, %s2199_s21 }
0x20e0   :  { %v1362_v28 = vpop.permute.xlu1 %1361 }
0x20e1   :  { %1364 = vst.msk [vmem:[#allocation2] sm:$0xff] %vm14_vm0, %v1362_v28  ;;  %1865 = vst.msk [vmem:[%s2545_s3 + $0x58] sm:$0xff] %vm14_vm0, %v1362_v28 }
0x20e8   :  { %v1367_v29 = vld [vmem:[#allocation2] sm:$0xff] }
0x20e9   :  { %2019 = vmatmul.mubr.msk.f32.vlgmr.msra.gmra.mrb[12].mxu0 %vm14_vm0, %v1367_v29 }
0x20ea   :  { %2086 = vmatpush3.bf16.msra.mxu0 %v2232_v4  ;;  %2032 = vmatprep.mubr.msk.f32.mxu0 %vm2195_vm1, %v2196_v3 }
0x21bc   :  { %v1437_v30 = vpop.f32.mrb[12].mxu0 }
0x21bd   :  { %v1438_v31 = vadd.f32 %v2249_v6, %v1437_v30  ;;  %v2020_v32 = vpop.f32.mrb[13].mxu0 }
0x21bf   :  { %1451 = vrot.lane.b32.xlu0 %v1438_v31, %s2197_s17  ;;  %v1443_v34 = vadd.f32 %v1867_v33, %v1438_v31 }
0x21c1   :  { %v1868_v35 = vmul.f32 -1.442695, %v1443_v34 }
0x21c3   :  { %2169 = vpow2.f32 %v1868_v35 }
0x21cd   :  { %v2170_v36 = vpop.eup %2169 }
0x21ce   :  { %v1447_v37 = vadd.f32 1.0, %v2170_v36  ;;  %v1879_v36 = vld [vmem:[%s2544_s0 + $0x78] sm:$0xff] }
0x21d0   :  { %2171 = vrcp.f32 %v1447_v37 }
0x21da   :  { %v2172_v38 = vpop.eup %2171 }
0x21db   :  { %v1461_v45 = vsub.f32 1.0, %v2172_v38 }
0x2231   :  { %v1452_v39 = vpop.permute.xlu0 %1451 }
0x2232   :  { %v1454_v40 = vmul.f32 %v2172_v38, %v1452_v39 }
0x2234   :  { %1456 = vrot.lane.b32.xlu1 %v1454_v40, %s2198_s20 }
0x2238   :  { %1467 = vrot.lane.b32.xlu1 %v1367_v29, %s2200_s22 }
0x22a6   :  { %v1457_v41 = vpop.permute.xlu1 %1456 }
0x22a7   :  { %v1459_v42 = vadd.f32 %v1867_v33, %v1457_v41  ;;  %v2193_v33 = vld [vmem:[%s2543_s2] ss:$0 sm:$0xff] }
0x22a9   :  { %2173 = vtanh.f32 %v1459_v42 }
0x22aa   :  { %v1468_v44 = vpop.permute.xlu1 %1467 }
0x22ab   :  { %v1470_v47 = vmul.f32 %v2172_v38, %v1468_v44 }
0x22b3   :  { %v2174_v43 = vpop.eup %2173 }
0x22b4   :  { %1463 = vrot.lane.b32.xlu0 %v2174_v43, %s2199_s21 }
0x2326   :  { %v1464_v46 = vpop.permute.xlu0 %1463 }
0x2327   :  { %v1466_v48 = vmul.f32 %v1464_v46, %v1461_v45 }
0x2329   :  { %v1471_v49 = vadd.f32 %v1470_v47, %v1466_v48 }
0x232b   :  { %1473 = vrot.lane.b32.xlu0 %v1471_v49, %s2199_s21 }
0x239d   :  { %v1474_v50 = vpop.permute.xlu0 %1473 }
0x239e   :  { %1476 = vst.msk [vmem:[#allocation2] sm:$0xff] %vm14_vm0, %v1474_v50  ;;  %1869 = vst.msk [vmem:[%s2545_s3 + $0x60] sm:$0xff] %vm14_vm0, %v1474_v50 }
0x23a5   :  { %v1479_v51 = vld [vmem:[#allocation2] sm:$0xff] }
0x23a6   :  { %2026 = vmatmul.mubr.msk.f32.vlgmr.msra.gmra.mrb[12].mxu1 %vm14_vm0, %v1479_v51 }
0x23a7   :  { %2089 = vmatpush3.bf16.msra.mxu1 %v2232_v4  ;;  %2039 = vmatprep.mubr.msk.f32.mxu1 %vm2195_vm1, %v2196_v3 }
0x2479   :  { %v1549_v52 = vpop.f32.mrb[12].mxu1 }
0x247a   :  { %v1550_v53 = vadd.f32 %v2249_v6, %v1549_v52  ;;  %v2027_v54 = vpop.f32.mrb[13].mxu1 }
0x247c   :  { %1563 = vrot.lane.b32.xlu1 %v1550_v53, %s2197_s17  ;;  %v1555_v56 = vadd.f32 %v1871_v55, %v1550_v53 }
0x247e   :  { %v1872_v57 = vmul.f32 -1.442695, %v1555_v56 }
0x2480   :  { %2175 = vpow2.f32 %v1872_v57 }
0x248a   :  { %v2176_v58 = vpop.eup %2175 }
0x248b   :  { %v1559_v59 = vadd.f32 1.0, %v2176_v58 }
0x248d   :  { %2177 = vrcp.f32 %v1559_v59 }
0x2497   :  { %v2178_v4 = vpop.eup %2177 }
0x2498   :  { %v1573_v2 = vsub.f32 1.0, %v2178_v4 }
0x24ee   :  { %v1564_v60 = vpop.permute.xlu1 %1563 }
0x24ef   :  { %v1566_v61 = vmul.f32 %v2178_v4, %v1564_v60 }
0x24f1   :  { %1568 = vrot.lane.b32.xlu0 %v1566_v61, %s2198_s20 }
0x24f5   :  { %1579 = vrot.lane.b32.xlu0 %v1479_v51, %s2200_s22 }
0x2563   :  { %v1569_v3 = vpop.permute.xlu0 %1568 }
0x2564   :  { %v1571_v62 = vadd.f32 %v1871_v55, %v1569_v3 }
0x2566   :  { %2179 = vtanh.f32 %v1571_v62 }
0x2567   :  { %v1580_v1 = vpop.permute.xlu0 %1579 }
0x2568   :  { %v1582_v7 = vmul.f32 %v2178_v4, %v1580_v1 }
0x2570   :  { %v2180_v63 = vpop.eup %2179 }
0x2571   :  { %1575 = vrot.lane.b32.xlu1 %v2180_v63, %s2199_s21 }
0x25e3   :  { %v1576_v5 = vpop.permute.xlu1 %1575 }
0x25e4   :  { %v1578_v8 = vmul.f32 %v1576_v5, %v1573_v2 }
0x25e6   :  { %v1583_v9 = vadd.f32 %v1582_v7, %v1578_v8 }
0x25e8   :  { %1585 = vrot.lane.b32.xlu1 %v1583_v9, %s2199_s21 }
0x265a   :  { %v1586_v10 = vpop.permute.xlu1 %1585 }
0x265b   :  { %1588 = vst.msk [vmem:[#allocation2] sm:$0xff] %vm14_vm0, %v1586_v10  ;;  %1873 = vst.msk [vmem:[%s2545_s3 + $0x68] sm:$0xff] %vm14_vm0, %v1586_v10 }
0x2662   :  { %v1591_v11 = vld [vmem:[#allocation2] sm:$0xff] }
0x2663   :  { %2033 = vmatmul.mubr.msk.f32.vlgmr.msra.gmra.mrb[14].mxu0 %vm14_vm0, %v1591_v11 }
0x2736   :  { %v1661_v12 = vpop.f32.mrb[14].mxu0 }
0x2737   :  { %v1662_v13 = vadd.f32 %v2249_v6, %v1661_v12  ;;  %v2034_v14 = vpop.f32.mrb[15].mxu0 }
0x2739   :  { %1675 = vrot.lane.b32.xlu0 %v1662_v13, %s2197_s17  ;;  %v1667_v16 = vadd.f32 %v1875_v15, %v1662_v13 }
0x273b   :  { %v1876_v17 = vmul.f32 -1.442695, %v1667_v16 }
0x273d   :  { %2181 = vpow2.f32 %v1876_v17 }
0x2747   :  { %v2182_v18 = vpop.eup %2181 }
0x2748   :  { %v1671_v19 = vadd.f32 1.0, %v2182_v18 }
0x274a   :  { %2183 = vrcp.f32 %v1671_v19 }
0x2754   :  { %v2184_v0 = vpop.eup %2183 }
0x2755   :  { %v1685_v25 = vsub.f32 1.0, %v2184_v0 }
0x27ab   :  { %v1676_v20 = vpop.permute.xlu0 %1675 }
0x27ac   :  { %v1678_v21 = vmul.f32 %v2184_v0, %v1676_v20 }
0x27ae   :  { %1680 = vrot.lane.b32.xlu1 %v1678_v21, %s2198_s20 }
0x27b2   :  { %1691 = vrot.lane.b32.xlu1 %v1591_v11, %s2200_s22 }
0x2820   :  { %v1681_v6 = vpop.permute.xlu1 %1680 }
0x2821   :  { %v1683_v22 = vadd.f32 %v1875_v15, %v1681_v6 }
0x2823   :  { %2185 = vtanh.f32 %v1683_v22 }
0x2824   :  { %v1692_v24 = vpop.permute.xlu1 %1691 }
0x2825   :  { %v1694_v27 = vmul.f32 %v2184_v0, %v1692_v24 }
0x282d   :  { %v2186_v23 = vpop.eup %2185 }
0x282e   :  { %1687 = vrot.lane.b32.xlu0 %v2186_v23, %s2199_s21 }
0x28a0   :  { %v1688_v26 = vpop.permute.xlu0 %1687 }
0x28a1   :  { %v1690_v28 = vmul.f32 %v1688_v26, %v1685_v25 }
0x28a3   :  { %v1695_v29 = vadd.f32 %v1694_v27, %v1690_v28 }
0x28a5   :  { %1697 = vrot.lane.b32.xlu0 %v1695_v29, %s2199_s21 }
0x2917   :  { %v1698_v30 = vpop.permute.xlu0 %1697 }
0x2918   :  { %1700 = vst.msk [vmem:[#allocation2] sm:$0xff] %vm14_vm0, %v1698_v30  ;;  %1877 = vst.msk [vmem:[%s2545_s3 + $0x70] sm:$0xff] %vm14_vm0, %v1698_v30 }
0x291f   :  { %v1703_v31 = vld [vmem:[#allocation2] sm:$0xff] }
0x2920   :  { %2040 = vmatmul.mubr.msk.f32.vlgmr.msra.gmra.mrb[14].mxu1 %vm14_vm0, %v1703_v31 }
0x29f3   :  { %v1773_v32 = vpop.f32.mrb[14].mxu1 }
0x29f4   :  { %v1774_v34 = vadd.f32 %v2193_v33, %v1773_v32  ;;  %v2041_v35 = vpop.f32.mrb[15].mxu1 }
0x29f6   :  { %1787 = vrot.lane.b32.xlu1 %v1774_v34, %s2197_s17  ;;  %v1779_v37 = vadd.f32 %v1879_v36, %v1774_v34 }
0x29f8   :  { %v1880_v38 = vmul.f32 -1.442695, %v1779_v37 }
0x29fa   :  { %2187 = vpow2.f32 %v1880_v38 }
0x2a04   :  { %v2188_v39 = vpop.eup %2187 }
0x2a05   :  { %v1783_v40 = vadd.f32 1.0, %v2188_v39 }
0x2a07   :  { %2189 = vrcp.f32 %v1783_v40 }
0x2a11   :  { %v2190_v41 = vpop.eup %2189 }
0x2a12   :  { %v1797_v48 = vsub.f32 1.0, %v2190_v41 }
0x2a68   :  { %v1788_v42 = vpop.permute.xlu1 %1787 }
0x2a69   :  { %v1790_v43 = vmul.f32 %v2190_v41, %v1788_v42 }
0x2a6b   :  { %1792 = vrot.lane.b32.xlu0 %v1790_v43, %s2198_s20 }
0x2a6f   :  { %1803 = vrot.lane.b32.xlu0 %v1703_v31, %s2200_s22 }
0x2add   :  { %v1793_v44 = vpop.permute.xlu0 %1792 }
0x2ade   :  { %v1795_v45 = vadd.f32 %v1879_v36, %v1793_v44 }
0x2ae0   :  { %2191 = vtanh.f32 %v1795_v45 }
0x2ae1   :  { %v1804_v47 = vpop.permute.xlu0 %1803 }
0x2ae2   :  { %v1806_v50 = vmul.f32 %v2190_v41, %v1804_v47 }
0x2aea   :  { %v2192_v46 = vpop.eup %2191 }
0x2aeb   :  { %1799 = vrot.lane.b32.xlu1 %v2192_v46, %s2199_s21 }
0x2b5d   :  { %v1800_v49 = vpop.permute.xlu1 %1799 }
0x2b5e   :  { %v1802_v51 = vmul.f32 %v1800_v49, %v1797_v48 }
0x2b60   :  { %v1807_v52 = vadd.f32 %v1806_v50, %v1802_v51 }
0x2b62   :  { %1809 = vrot.lane.b32.xlu1 %v1807_v52, %s2199_s21 }
0x2bd4   :  { %v1810_v53 = vpop.permute.xlu1 %1809 }
0x2bd5   :  { %1812 = vst.msk [vmem:[#allocation2] sm:$0xff] %vm14_vm0, %v1810_v53  ;;  %1881 = vst.msk [vmem:[%s2545_s3 + $0x78] sm:$0xff] %vm14_vm0, %v1810_v53 }

// kernel: net_forward.10
= control target key start
LH: loop header
LB: loop body
LE: loop exit
PB: predicated region body
PF: predicated region fallthrough
CT: control target
= control target key end

     0   :  { %vm42_vm0 = vcmask 130048   ;;  %vm323_vm1 = vcmask 7168   ;;  %s663_s1 = inlined_call_operand.vmem [shape: f32[16,16], index: 1, kind: input, shape index: {}]   ;;  %s664_s0 = inlined_call_operand.vmem [shape: f32[128,16], index: 0, kind: input, shape index: {}]   ;;  %s665_s2 = inlined_call_operand.vmem [shape: f32[1,16], index: 2, kind: input, shape index: {}]   ;;  %s666_s3 = inlined_call_operand.vmem [shape: f32[1,16], index: 3, kind: input, shape index: {}]   ;;  %s667_s4 = inlined_call_operand.vmem [shape: f32[128,1], index: 4, kind: output, shape index: {}]  }
   0x1   :  { %v33_v0 = vld [vmem:[%s663_s1] sm:$0xff]  ;;  %v34_v1 = vld [vmem:[%s663_s1 + $0x8] sm:$0xff]  ;;  %v19_v7 = vld [vmem:[%s664_s0 + $0x10] sm:$0xff] }
   0x2   :  { %v17_v2 = vld [vmem:[%s664_s0] sm:$0xff]  ;;  %v408_v3 = vpack.c.bf16 %v34_v1, %v33_v0  ;;  %v18_v5 = vld [vmem:[%s664_s0 + $0x8] sm:$0xff]  ;;  %v27_v8 = vld [vmem:[%s664_s0 + $0x50] sm:$0xff] }
   0x3   :  { %384 = vmatprep.mubr.msk.f32.mxu0 %vm42_vm0, %v17_v2  ;;  %v25_v4 = vld [vmem:[%s664_s0 + $0x40] sm:$0xff]  ;;  %v26_v6 = vld [vmem:[%s664_s0 + $0x48] sm:$0xff]  ;;  %v20_v9 = vld [vmem:[%s664_s0 + $0x18] sm:$0xff] }
   0x4   :  { %396 = vmatprep.mubr.msk.f32.mxu1 %vm42_vm0, %v25_v4  ;;  %409 = vmatprep.subr.bf16.mxu0 %v408_v3  ;;  %v28_v10 = vld [vmem:[%s664_s0 + $0x58] sm:$0xff]  ;;  %v21_v11 = vld [vmem:[%s664_s0 + $0x20] sm:$0xff]  ;;  %v22_v13 = vld [vmem:[%s664_s0 + $0x28] sm:$0xff] }
   0x5   :  { %412 = vmatprep.subr.bf16.mxu1 %v408_v3  ;;  %411 = vmatpush3.bf16.msra.mxu0 %v408_v3  ;;  %v29_v12 = vld [vmem:[%s664_s0 + $0x60] sm:$0xff]  ;;  %v30_v14 = vld [vmem:[%s664_s0 + $0x68] sm:$0xff]  ;;  %v23_v15 = vld [vmem:[%s664_s0 + $0x30] sm:$0xff] }
   0x6   :  { %413 = vmatpush3.bf16.msra.mxu1 %v408_v3  ;;  %v31_v16 = vld [vmem:[%s664_s0 + $0x70] sm:$0xff]  ;;  %v24_v17 = vld [vmem:[%s664_s0 + $0x38] sm:$0xff]  ;;  %v544_v19 = vld [vmem:[%s665_s2] ss:$0 sm:$0xff] }
   0x7   :  { %v32_v18 = vld [vmem:[%s664_s0 + $0x78] sm:$0xff]  ;;  %v559_v42 = vld [vmem:[%s666_s3] ss:$0 sm:$0xff] }
   0x8   :  { %385 = vmatmul.mubr.msk.f32.vlgmr.msra.gmra.mrb[0].mxu0 %vm42_vm0, %v18_v5 }
   0x9   :  { %397 = vmatmul.mubr.msk.f32.vlgmr.msra.gmra.mrb[0].mxu1 %vm42_vm0, %v26_v6  ;;  %387 = vmatprep.mubr.msk.f32.mxu0 %vm42_vm0, %v19_v7 }
   0xa   :  { %399 = vmatprep.mubr.msk.f32.mxu1 %vm42_vm0, %v27_v8 }
   0xc   :  { %388 = vmatmul.mubr.msk.f32.gmra.mrb[2].mxu0 %vm42_vm0, %v20_v9 }
   0xd   :  { %400 = vmatmul.mubr.msk.f32.gmra.mrb[2].mxu1 %vm42_vm0, %v28_v10  ;;  %390 = vmatprep.mubr.msk.f32.mxu0 %vm42_vm0, %v21_v11 }
   0xe   :  { %402 = vmatprep.mubr.msk.f32.mxu1 %vm42_vm0, %v29_v12 }
  0x10   :  { %391 = vmatmul.mubr.msk.f32.gmra.mrb[4].mxu0 %vm42_vm0, %v22_v13 }
  0x11   :  { %403 = vmatmul.mubr.msk.f32.gmra.mrb[4].mxu1 %vm42_vm0, %v30_v14  ;;  %393 = vmatprep.mubr.msk.f32.mxu0 %vm42_vm0, %v23_v15 }
  0x12   :  { %405 = vmatprep.mubr.msk.f32.mxu1 %vm42_vm0, %v31_v16 }
  0x14   :  { %394 = vmatmul.mubr.msk.f32.gmra.mrb[6].mxu0 %vm42_vm0, %v24_v17 }
  0x15   :  { %406 = vmatmul.mubr.msk.f32.gmra.mrb[6].mxu1 %vm42_vm0, %v32_v18 }
  0xdb   :  { %v386_v20 = vpop.f32.mrb[0].mxu0 }
  0xdc   :  { %v398_v21 = vpop.f32.mrb[0].mxu1  ;;  %v163_v22 = vadd.f32 %v386_v20, %v544_v19  ;;  %v157_v24 = vpop.f32.mrb[1].mxu0 }
  0xdd   :  { %v203_v23 = vadd.f32 %v398_v21, %v544_v19  ;;  %v197_v25 = vpop.f32.mrb[1].mxu1  ;;  %v158_v26 = vadd.f32 %v544_v19, %v157_v24 }
  0xde   :  { %v198_v27 = vadd.f32 %v544_v19, %v197_v25  ;;  %414 = vtanh.f32 %v163_v22 }
  0xdf   :  { %416 = vtanh.f32 %v203_v23  ;;  %v389_v28 = vpop.f32.mrb[2].mxu0 }
  0xe0   :  { %v401_v29 = vpop.f32.mrb[2].mxu1  ;;  %418 = vtanh.f32 %v158_v26  ;;  %v173_v30 = vadd.f32 %v389_v28, %v544_v19  ;;  %v167_v31 = vpop.f32.mrb[3].mxu0 }
  0xe1   :  { %v213_v32 = vadd.f32 %v401_v29, %v544_v19  ;;  %v207_v33 = vpop.f32.mrb[3].mxu1  ;;  %420 = vtanh.f32 %v198_v27  ;;  %v168_v35 = vadd.f32 %v544_v19, %v167_v31 }
  0xe2   :  { %422 = vtanh.f32 %v173_v30  ;;  %v208_v34 = vadd.f32 %v544_v19, %v207_v33 }
  0xe3   :  { %v392_v36 = vpop.f32.mrb[4].mxu0  ;;  %424 = vtanh.f32 %v213_v32 }
  0xe4   :  { %v404_v37 = vpop.f32.mrb[4].mxu1  ;;  %v177_v38 = vpop.f32.mrb[5].mxu0  ;;  %v183_v40 = vadd.f32 %v392_v36, %v544_v19  ;;  %426 = vtanh.f32 %v208_v34 }
  0xe5   :  { %v217_v39 = vpop.f32.mrb[5].mxu1  ;;  %v178_v41 = vadd.f32 %v544_v19, %v177_v38  ;;  %428 = vtanh.f32 %v168_v35  ;;  %v223_v51 = vadd.f32 %v404_v37, %v544_v19 }
  0xe6   :  { %v218_v46 = vadd.f32 %v544_v19, %v217_v39 }
  0xe7   :  { %v395_v43 = vpop.f32.mrb[6].mxu0  ;;  %430 = vtanh.f32 %v178_v41 }
  0xe8   :  { %v407_v44 = vpop.f32.mrb[6].mxu1  ;;  %v415_v45 = vpop.eup %414  ;;  %432 = vtanh.f32 %v183_v40  ;;  %v193_v61 = vadd.f32 %v395_v43, %v544_v19 }
  0xe9   :  { %v187_v47 = vpop.f32.mrb[7].mxu0  ;;  %v227_v48 = vpop.f32.mrb[7].mxu1  ;;  %v260_v50 = vmul.f32 %v415_v45, %v559_v42  ;;  %434 = vtanh.f32 %v218_v46  ;;  %v233_v6 = vadd.f32 %v407_v44, %v544_v19 }
  0xea   :  { %v417_v49 = vpop.eup %416  ;;  %v188_v59 = vadd.f32 %v544_v19, %v187_v47  ;;  %436 = vtanh.f32 %v223_v51  ;;  %v228_v4 = vadd.f32 %v544_v19, %v227_v48 }
  0xeb   :  { %v419_v52 = vpop.eup %418  ;;  %v268_v53 = vmul.f32 %v417_v49, %v559_v42  ;;  %v278_v55 = vsel %vm42_vm0, %v260_v50, 0.0 }
  0xec   :  { %v421_v54 = vpop.eup %420  ;;  %v259_v56 = vmul.f32 %v419_v52, %v559_v42  ;;  %279 = vadd.xlane.f32.xlu0 %v278_v55  ;;  %438 = vtanh.f32 %v188_v59 }
  0xed   :  { %v423_v57 = vpop.eup %422  ;;  %v302_v58 = vsel %vm42_vm0, %v268_v53, 0.0  ;;  %v267_v2 = vmul.f32 %v421_v54, %v559_v42  ;;  %440 = vtanh.f32 %v193_v61 }
  0xee   :  { %303 = vadd.xlane.f32.xlu1 %v302_v58  ;;  %v262_v60 = vmul.f32 %v423_v57, %v559_v42  ;;  %v425_v62 = vpop.eup %424  ;;  %v275_v0 = vsel %vm42_vm0, %v259_v56, 0.0  ;;  %442 = vtanh.f32 %v228_v4 }
  0xef   :  { %v270_v1 = vmul.f32 %v425_v62, %v559_v42  ;;  %v427_v3 = vpop.eup %426  ;;  %v299_v10 = vsel %vm42_vm0, %v267_v2, 0.0  ;;  %444 = vtanh.f32 %v233_v6 }
  0xf0   :  { %v284_v63 = vsel %vm42_vm0, %v262_v60, 0.0  ;;  %276 = vadd.xlane.f32.xlu0 %v275_v0  ;;  %v429_v5 = vpop.eup %428  ;;  %v269_v11 = vmul.f32 %v427_v3, %v559_v42 }
  0xf1   :  { %v431_v7 = vpop.eup %430  ;;  %v308_v8 = vsel %vm42_vm0, %v270_v1, 0.0  ;;  %v261_v12 = vmul.f32 %v429_v5, %v559_v42 }
  0xf2   :  { %285 = vadd.xlane.f32.xlu1 %v284_v63  ;;  %v433_v9 = vpop.eup %432  ;;  %v263_v13 = vmul.f32 %v431_v7, %v559_v42  ;;  %v305_v17 = vsel %vm42_vm0, %v269_v11, 0.0 }
  0xf3   :  { %v435_v14 = vpop.eup %434  ;;  %v264_v15 = vmul.f32 %v433_v9, %v559_v42  ;;  %v281_v18 = vsel %vm42_vm0, %v261_v12, 0.0 }
  0xf4   :  { %300 = vadd.xlane.f32.xlu0 %v299_v10  ;;  %v437_v16 = vpop.eup %436  ;;  %v287_v19 = vsel %vm42_vm0, %v263_v13, 0.0  ;;  %v271_v20 = vmul.f32 %v435_v14, %v559_v42 }
  0xf5   :  { %v290_v22 = vsel %vm42_vm0, %v264_v15, 0.0  ;;  %v272_v23 = vmul.f32 %v437_v16, %v559_v42 }
  0xf6   :  { %309 = vadd.xlane.f32.xlu1 %v308_v8  ;;  %v439_v21 = vpop.eup %438  ;;  %v311_v25 = vsel %vm42_vm0, %v271_v20, 0.0 }
  0xf7   :  { %v441_v24 = vpop.eup %440  ;;  %v265_v26 = vmul.f32 %v439_v21, %v559_v42  ;;  %v314_v28 = vsel %vm42_vm0, %v272_v23, 0.0 }
  0xf8   :  { %306 = vadd.xlane.f32.xlu0 %v305_v17  ;;  %v443_v27 = vpop.eup %442  ;;  %v266_v29 = vmul.f32 %v441_v24, %v559_v42 }
  0xf9   :  { %v445_v30 = vpop.eup %444  ;;  %v293_v31 = vsel %vm42_vm0, %v265_v26, 0.0  ;;  %v273_v32 = vmul.f32 %v443_v27, %v559_v42 }
  0xfa   :  { %282 = vadd.xlane.f32.xlu1 %v281_v18  ;;  %v296_v33 = vsel %vm42_vm0, %v266_v29, 0.0  ;;  %v274_v34 = vmul.f32 %v445_v30, %v559_v42 }
  0xfb   :  { %v317_v35 = vsel %vm42_vm0, %v273_v32, 0.0 }
  0xfc   :  { %288 = vadd.xlane.f32.xlu0 %v287_v19  ;;  %v320_v36 = vsel %vm42_vm0, %v274_v34, 0.0 }
  0xfe   :  { %291 = vadd.xlane.f32.xlu1 %v290_v22 }
 0x100   :  { %312 = vadd.xlane.f32.xlu0 %v311_v25 }
 0x102   :  { %315 = vadd.xlane.f32.xlu1 %v314_v28 }
 0x104   :  { %294 = vadd.xlane.f32.xlu0 %v293_v31 }
 0x106   :  { %297 = vadd.xlane.f32.xlu1 %v296_v33 }
 0x108   :  { %318 = vadd.xlane.f32.xlu0 %v317_v35 }
 0x10a   :  { %321 = vadd.xlane.f32.xlu1 %v320_v36 }
 0x179   :  { %v280_v37 = vpop.xlane.xlu0 %279 }
 0x17a   :  { %325 = vst.msk [vmem:[%s667_s4 + $0x8] sm:$0xff] %vm323_vm1, %v280_v37 }
 0x17b   :  { %v304_v38 = vpop.xlane.xlu1 %303 }
 0x17c   :  { %333 = vst.msk [vmem:[%s667_s4 + $0x48] sm:$0xff] %vm323_vm1, %v304_v38 }
 0x17d   :  { %v277_v39 = vpop.xlane.xlu0 %276 }
 0x17e   :  { %324 = vst.msk [vmem:[%s667_s4] sm:$0xff] %vm323_vm1, %v277_v39 }
 0x17f   :  { %v286_v40 = vpop.xlane.xlu1 %285 }
 0x180   :  { %327 = vst.msk [vmem:[%s667_s4 + $0x18] sm:$0xff] %vm323_vm1, %v286_v40 }
 0x181   :  { %v301_v41 = vpop.xlane.xlu0 %300 }
 0x182   :  { %332 = vst.msk [vmem:[%s667_s4 + $0x40] sm:$0xff] %vm323_vm1, %v301_v41 }
 0x183   :  { %v310_v42 = vpop.xlane.xlu1 %309 }
 0x184   :  { %335 = vst.msk [vmem:[%s667_s4 + $0x58] sm:$0xff] %vm323_vm1, %v310_v42 }
 0x185   :  { %v307_v43 = vpop.xlane.xlu0 %306 }
 0x186   :  { %334 = vst.msk [vmem:[%s667_s4 + $0x50] sm:$0xff] %vm323_vm1, %v307_v43 }
 0x187   :  { %v283_v44 = vpop.xlane.xlu1 %282 }
 0x188   :  { %326 = vst.msk [vmem:[%s667_s4 + $0x10] sm:$0xff] %vm323_vm1, %v283_v44 }
 0x189   :  { %v289_v45 = vpop.xlane.xlu0 %288 }
 0x18a   :  { %328 = vst.msk [vmem:[%s667_s4 + $0x20] sm:$0xff] %vm323_vm1, %v289_v45 }
 0x18b   :  { %v292_v46 = vpop.xlane.xlu1 %291 }
 0x18c   :  { %329 = vst.msk [vmem:[%s667_s4 + $0x28] sm:$0xff] %vm323_vm1, %v292_v46 }
 0x18d   :  { %v313_v47 = vpop.xlane.xlu0 %312 }
 0x18e   :  { %336 = vst.msk [vmem:[%s667_s4 + $0x60] sm:$0xff] %vm323_vm1, %v313_v47 }
 0x18f   :  { %v316_v48 = vpop.xlane.xlu1 %315 }
 0x190   :  { %337 = vst.msk [vmem:[%s667_s4 + $0x68] sm:$0xff] %vm323_vm1, %v316_v48 }
 0x191   :  { %v295_v49 = vpop.xlane.xlu0 %294 }
 0x192   :  { %330 = vst.msk [vmem:[%s667_s4 + $0x30] sm:$0xff] %vm323_vm1, %v295_v49 }
 0x193   :  { %v298_v50 = vpop.xlane.xlu1 %297 }
 0x194   :  { %331 = vst.msk [vmem:[%s667_s4 + $0x38] sm:$0xff] %vm323_vm1, %v298_v50 }
 0x195   :  { %v319_v51 = vpop.xlane.xlu0 %318 }
 0x196   :  { %338 = vst.msk [vmem:[%s667_s4 + $0x70] sm:$0xff] %vm323_vm1, %v319_v51 }
 0x197   :  { %v322_v52 = vpop.xlane.xlu1 %321 }
 0x198   :  { %339 = vst.msk [vmem:[%s667_s4 + $0x78] sm:$0xff] %vm323_vm1, %v322_v52 }

// kernel: net_forward.11
= control target key start
LH: loop header
LB: loop body
LE: loop exit
PB: predicated region body
PF: predicated region fallthrough
CT: control target
= control target key end

     0   :  { %v122_v0 = vmov 0.0|0.0   ;;  %vm123_vm0 = vmmov 0   ;;  %v124_v3 = vmov 0.0   ;;  %vm24_vm1 = vcmask 130048   ;;  %s160_s1 = inlined_call_operand.vmem [shape: f32[16,48], index: 1, kind: input, shape index: {}]   ;;  %s161_s0 = inlined_call_operand.vmem [shape: f32[8,16], index: 0, kind: input, shape index: {}]   ;;  %s162_s2 = inlined_call_operand.vmem [shape: f32[1,48], index: 2, kind: input, shape index: {}]   ;;  %s163_s3 = inlined_call_operand.vmem [shape: f32[8,48], index: 3, kind: output, shape index: {}]  }
   0x1   :  { %116 = vmatprep.subr.bf16.mxu0 %v122_v0  ;;  %v15_v1 = vld [vmem:[%s160_s1] sm:$0xff]  ;;  %v16_v2 = vld [vmem:[%s160_s1 + $0x8] sm:$0xff]  ;;  %113 = vmatprep.mubr.msk.f32.mxu0 %vm123_vm0, %v124_v3  ;;  %vm98_vm2 = vcmask 392192  }
   0x2   :  { %v117_v4 = vpack.c.bf16 %v16_v2, %v15_v1  ;;  %v14_v5 = vld [vmem:[%s161_s0] sm:$0xff] }
   0x3   :  { %v104_v6 = vld [vmem:[%s162_s2] ss:$0 sm:$0xff] }
   0x4   :  { %118 = vmatpush3.bf16.msra.mxu0 %v117_v4 }
   0x7   :  { %114 = vmatmul.mubr.msk.f32.vlgmr.msra.gmra.mrb[0].mxu0 %vm24_vm1, %v14_v5 }
  0xda   :  { %v94_v7 = vpop.f32.mrb[0].mxu0 }
  0xdb   :  { %v95_v8 = vadd.f32 %v104_v6, %v94_v7  ;;  %v115_v9 = vpop.f32.mrb[1].mxu0 }
  0xdd   :  { %99 = vst.msk [vmem:[%s163_s3] sm:$0xff] %vm98_vm2, %v95_v8 }

// kernel: net_forward.12
= control target key start
LH: loop header
LB: loop body
LE: loop exit
PB: predicated region body
PF: predicated region fallthrough
CT: control target
= control target key end

     0   :  { %vm14_vm0 = vcmask 123904   ;;  %v574_v0 = vmov 0.0|0.0   ;;  %v575_v3 = vmov 0.0   ;;  %vm576_vm1 = vmmov 0   ;;  %s577_s17 = smov 96   ;;  %s579_s20 = smov 112   ;;  %s677_s1 = inlined_call_operand.vmem [shape: f32[16,48], index: 1, kind: input, shape index: {}]   ;;  %s678_s2 = inlined_call_operand.vmem [shape: f32[1,48], index: 2, kind: input, shape index: {}]   ;;  %s679_s0 = inlined_call_operand.vmem [shape: f32[4,2,48], index: 0, kind: input, shape index: {}]   ;;  %s680_s3 = inlined_call_operand.vmem [shape: f32[4,2,16], index: 3, kind: output, shape index: {}]  }
   0x1   :  { %531 = vmatprep.subr.bf16.mxu0 %v574_v0  ;;  %v16_v1 = vld [vmem:[%s677_s1] sm:$0xff]  ;;  %v17_v2 = vld [vmem:[%s677_s1 + $0x8] sm:$0xff]  ;;  %15 = vst.msk [vmem:[#allocation2] sm:$0x3] %vm14_vm0, %v575_v3  ;;  %507 = vmatprep.mubr.msk.f32.mxu0 %vm576_vm1, %v575_v3  ;;  %vm26_vm2 = vcmask 130048   ;;  %s580_s21 = smov 16  }
   0x2   :  { %v532_v4 = vpack.c.bf16 %v17_v2, %v16_v1  ;;  %534 = vmatprep.subr.bf16.mxu1 %v574_v0  ;;  %514 = vmatprep.mubr.msk.f32.mxu1 %vm576_vm1, %v575_v3  ;;  %v615_v6 = vld [vmem:[%s678_s2] ss:$0 sm:$0xff]  ;;  %s578_s2 = smov 32   ;;  %v480_v32 = vld [vmem:[%s679_s0 + $0x2] sm:$0x3] }
   0x3   :  { %v100_v10 = vld [vmem:[%s679_s0] sm:$0x3]  ;;  %v484_v54 = vld [vmem:[%s679_s0 + $0x4] sm:$0x3] }
   0x4   :  { %533 = vmatpush3.bf16.msra.mxu0 %v532_v4  ;;  %536 = vmatpush3.bf16.msra.mxu1 %v532_v4 }
   0x5   :  { %537 = vmatprep.subr.bf16.mxu0 %v574_v0  ;;  %540 = vmatprep.subr.bf16.mxu1 %v574_v0 }
   0x8   :  { %v19_v5 = vld [vmem:[#allocation2] sm:$0x3] }
   0x9   :  { %508 = vmatmul.mubr.msk.f32.vlgmr.msra.gmra.mrb[0].mxu0 %vm26_vm2, %v19_v5 }
   0xa   :  { %539 = vmatpush3.bf16.msra.mxu0 %v532_v4  ;;  %521 = vmatprep.mubr.msk.f32.mxu0 %vm576_vm1, %v575_v3 }
  0xdc   :  { %v96_v7 = vpop.f32.mrb[0].mxu0 }
  0xdd   :  { %v97_v8 = vadd.f32 %v615_v6, %v96_v7  ;;  %v509_v9 = vpop.f32.mrb[1].mxu0 }
  0xdf   :  { %109 = vrot.lane.b32.xlu0 %v97_v8, %s577_s17  ;;  %v101_v11 = vadd.f32 %v100_v10, %v97_v8 }
  0xe1   :  { %v478_v12 = vmul.f32 -1.442695, %v101_v11 }
  0xe3   :  { %550 = vpow2.f32 %v478_v12 }
  0xed   :  { %v551_v13 = vpop.eup %550 }
  0xee   :  { %v105_v14 = vadd.f32 1.0, %v551_v13  ;;  %v488_v13 = vld [vmem:[%s679_s0 + $0x6] sm:$0x3] }
  0xf0   :  { %552 = vrcp.f32 %v105_v14 }
  0xfa   :  { %v553_v15 = vpop.eup %552 }
  0xfb   :  { %v119_v22 = vsub.f32 1.0, %v553_v15 }
 0x151   :  { %v110_v16 = vpop.permute.xlu0 %109 }
 0x152   :  { %v112_v17 = vmul.f32 %v553_v15, %v110_v16 }
 0x154   :  { %114 = vrot.lane.b32.xlu0 %v112_v17, %s578_s2 }
 0x1c6   :  { %v115_v18 = vpop.permute.xlu0 %114 }
 0x1c7   :  { %v117_v19 = vadd.f32 %v115_v18, %v100_v10 }
 0x1c9   :  { %554 = vtanh.f32 %v117_v19 }
 0x1d3   :  { %v555_v20 = vpop.eup %554 }
 0x1d4   :  { %121 = vrot.lane.b32.xlu1 %v555_v20, %s579_s20 }
 0x1d8   :  { %125 = vrot.lane.b32.xlu1 %v19_v5, %s580_s21 }
 0x246   :  { %v122_v21 = vpop.permute.xlu1 %121 }
 0x247   :  { %v124_v24 = vmul.f32 %v122_v21, %v119_v22 }
 0x24a   :  { %v126_v23 = vpop.permute.xlu1 %125 }
 0x24b   :  { %v128_v25 = vmul.f32 %v553_v15, %v126_v23 }
 0x24d   :  { %v129_v26 = vadd.f32 %v128_v25, %v124_v24 }
 0x24f   :  { %131 = vrot.lane.b32.xlu0 %v129_v26, %s579_s20 }
 0x2c1   :  { %v132_v27 = vpop.permute.xlu0 %131 }
 0x2c2   :  { %134 = vst.msk [vmem:[#allocation2] sm:$0x3] %vm14_vm0, %v132_v27  ;;  %135 = vst.msk [vmem:[%s680_s3] sm:$0x3] %vm14_vm0, %v132_v27 }
 0x2c9   :  { %v136_v28 = vld [vmem:[#allocation2] sm:$0x3] }
 0x2ca   :  { %515 = vmatmul.mubr.msk.f32.vlgmr.msra.gmra.mrb[0].mxu1 %vm26_vm2, %v136_v28 }
 0x2cb   :  { %542 = vmatpush3.bf16.msra.mxu1 %v532_v4  ;;  %528 = vmatprep.mubr.msk.f32.mxu1 %vm576_vm1, %v575_v3 }
 0x39d   :  { %v206_v29 = vpop.f32.mrb[0].mxu1 }
 0x39e   :  { %v207_v30 = vadd.f32 %v615_v6, %v206_v29  ;;  %v516_v31 = vpop.f32.mrb[1].mxu1 }
 0x3a0   :  { %220 = vrot.lane.b32.xlu1 %v207_v30, %s577_s17  ;;  %v212_v33 = vadd.f32 %v480_v32, %v207_v30 }
 0x3a2   :  { %v481_v34 = vmul.f32 -1.442695, %v212_v33 }
 0x3a4   :  { %556 = vpow2.f32 %v481_v34 }
 0x3ae   :  { %v557_v35 = vpop.eup %556 }
 0x3af   :  { %v216_v36 = vadd.f32 1.0, %v557_v35 }
 0x3b1   :  { %558 = vrcp.f32 %v216_v36 }
 0x3bb   :  { %v559_v37 = vpop.eup %558 }
 0x3bc   :  { %v230_v44 = vsub.f32 1.0, %v559_v37 }
 0x412   :  { %v221_v38 = vpop.permute.xlu1 %220 }
 0x413   :  { %v223_v39 = vmul.f32 %v559_v37, %v221_v38 }
 0x415   :  { %225 = vrot.lane.b32.xlu0 %v223_v39, %s578_s2 }
 0x419   :  { %236 = vrot.lane.b32.xlu0 %v136_v28, %s580_s21 }
 0x487   :  { %v226_v40 = vpop.permute.xlu0 %225 }
 0x488   :  { %v228_v41 = vadd.f32 %v480_v32, %v226_v40 }
 0x48a   :  { %560 = vtanh.f32 %v228_v41 }
 0x48b   :  { %v237_v43 = vpop.permute.xlu0 %236 }
 0x48c   :  { %v239_v46 = vmul.f32 %v559_v37, %v237_v43 }
 0x494   :  { %v561_v42 = vpop.eup %560 }
 0x495   :  { %232 = vrot.lane.b32.xlu1 %v561_v42, %s579_s20 }
 0x507   :  { %v233_v45 = vpop.permute.xlu1 %232 }
 0x508   :  { %v235_v47 = vmul.f32 %v233_v45, %v230_v44 }
 0x50a   :  { %v240_v48 = vadd.f32 %v239_v46, %v235_v47 }
 0x50c   :  { %242 = vrot.lane.b32.xlu1 %v240_v48, %s579_s20 }
 0x57e   :  { %v243_v49 = vpop.permute.xlu1 %242 }
 0x57f   :  { %245 = vst.msk [vmem:[#allocation2] sm:$0x3] %vm14_vm0, %v243_v49  ;;  %482 = vst.msk [vmem:[%s680_s3 + $0x2] sm:$0x3] %vm14_vm0, %v243_v49 }
 0x586   :  { %v248_v50 = vld [vmem:[#allocation2] sm:$0x3] }
 0x587   :  { %522 = vmatmul.mubr.msk.f32.vlgmr.msra.gmra.mrb[2].mxu0 %vm26_vm2, %v248_v50 }
 0x65a   :  { %v318_v51 = vpop.f32.mrb[2].mxu0 }
 0x65b   :  { %v319_v52 = vadd.f32 %v615_v6, %v318_v51  ;;  %v523_v53 = vpop.f32.mrb[3].mxu0 }
 0x65d   :  { %332 = vrot.lane.b32.xlu0 %v319_v52, %s577_s17  ;;  %v324_v55 = vadd.f32 %v484_v54, %v319_v52 }
 0x65f   :  { %v485_v56 = vmul.f32 -1.442695, %v324_v55 }
 0x661   :  { %562 = vpow2.f32 %v485_v56 }
 0x66b   :  { %v563_v57 = vpop.eup %562 }
 0x66c   :  { %v328_v58 = vadd.f32 1.0, %v563_v57 }
 0x66e   :  { %564 = vrcp.f32 %v328_v58 }
 0x678   :  { %v565_v59 = vpop.eup %564 }
 0x679   :  { %v342_v2 = vsub.f32 1.0, %v565_v59 }
 0x6cf   :  { %v333_v60 = vpop.permute.xlu0 %332 }
 0x6d0   :  { %v335_v61 = vmul.f32 %v565_v59, %v333_v60 }
 0x6d2   :  { %337 = vrot.lane.b32.xlu1 %v335_v61, %s578_s2 }
 0x6d6   :  { %348 = vrot.lane.b32.xlu1 %v248_v50, %s580_s21 }
 0x744   :  { %v338_v62 = vpop.permute.xlu1 %337 }
 0x745   :  { %v340_v63 = vadd.f32 %v484_v54, %v338_v62 }
 0x747   :  { %566 = vtanh.f32 %v340_v63 }
 0x748   :  { %v349_v1 = vpop.permute.xlu1 %348 }
 0x749   :  { %v351_v4 = vmul.f32 %v565_v59, %v349_v1 }
 0x751   :  { %v567_v0 = vpop.eup %566 }
 0x752   :  { %344 = vrot.lane.b32.xlu0 %v567_v0, %s579_s20 }
 0x7c4   :  { %v345_v3 = vpop.permute.xlu0 %344 }
 0x7c5   :  { %v347_v5 = vmul.f32 %v345_v3, %v342_v2 }
 0x7c7   :  { %v352_v7 = vadd.f32 %v351_v4, %v347_v5 }
 0x7c9   :  { %354 = vrot.lane.b32.xlu0 %v352_v7, %s579_s20 }
 0x83b   :  { %v355_v8 = vpop.permute.xlu0 %354 }
 0x83c   :  { %357 = vst.msk [vmem:[#allocation2] sm:$0x3] %vm14_vm0, %v355_v8  ;;  %486 = vst.msk [vmem:[%s680_s3 + $0x4] sm:$0x3] %vm14_vm0, %v355_v8 }
 0x843   :  { %v360_v9 = vld [vmem:[#allocation2] sm:$0x3] }
 0x844   :  { %529 = vmatmul.mubr.msk.f32.vlgmr.msra.gmra.mrb[2].mxu1 %vm26_vm2, %v360_v9 }
 0x917   :  { %v430_v10 = vpop.f32.mrb[2].mxu1 }
 0x918   :  { %v431_v11 = vadd.f32 %v615_v6, %v430_v10  ;;  %v530_v12 = vpop.f32.mrb[3].mxu1 }
 0x91a   :  { %444 = vrot.lane.b32.xlu1 %v431_v11, %s577_s17  ;;  %v436_v14 = vadd.f32 %v488_v13, %v431_v11 }
 0x91c   :  { %v489_v15 = vmul.f32 -1.442695, %v436_v14 }
 0x91e   :  { %568 = vpow2.f32 %v489_v15 }
 0x928   :  { %v569_v16 = vpop.eup %568 }
 0x929   :  { %v440_v17 = vadd.f32 1.0, %v569_v16 }
 0x92b   :  { %570 = vrcp.f32 %v440_v17 }
 0x935   :  { %v571_v18 = vpop.eup %570 }
 0x936   :  { %v454_v24 = vsub.f32 1.0, %v571_v18 }
 0x98c   :  { %v445_v19 = vpop.permute.xlu1 %444 }
 0x98d   :  { %v447_v20 = vmul.f32 %v571_v18, %v445_v19 }
 0x98f   :  { %449 = vrot.lane.b32.xlu0 %v447_v20, %s578_s2 }
 0x993   :  { %460 = vrot.lane.b32.xlu0 %v360_v9, %s580_s21 }
 0xa01   :  { %v450_v6 = vpop.permute.xlu0 %449 }
 0xa02   :  { %v452_v21 = vadd.f32 %v488_v13, %v450_v6 }
 0xa04   :  { %572 = vtanh.f32 %v452_v21 }
 0xa05   :  { %v461_v23 = vpop.permute.xlu0 %460 }
 0xa06   :  { %v463_v26 = vmul.f32 %v571_v18, %v461_v23 }
 0xa0e   :  { %v573_v22 = vpop.eup %572 }
 0xa0f   :  { %456 = vrot.lane.b32.xlu1 %v573_v22, %s579_s20 }
 0xa81   :  { %v457_v25 = vpop.permute.xlu1 %456 }
 0xa82   :  { %v459_v27 = vmul.f32 %v457_v25, %v454_v24 }
 0xa84   :  { %v464_v28 = vadd.f32 %v463_v26, %v459_v27 }
 0xa86   :  { %466 = vrot.lane.b32.xlu1 %v464_v28, %s579_s20 }
 0xaf8   :  { %v467_v29 = vpop.permute.xlu1 %466 }
 0xaf9   :  { %469 = vst.msk [vmem:[#allocation2] sm:$0x3] %vm14_vm0, %v467_v29  ;;  %490 = vst.msk [vmem:[%s680_s3 + $0x6] sm:$0x3] %vm14_vm0, %v467_v29 }

// kernel: net_forward.13
= control target key start
LH: loop header
LB: loop body
LE: loop exit
PB: predicated region body
PF: predicated region fallthrough
CT: control target
= control target key end

     0   :  { %s804_s0 = inlined_call_operand.vmem [shape: f32[8,16], index: 0, kind: input, shape index: {}]   ;;  %s805_s1 = inlined_call_operand.vmem [shape: f32[16,40], index: 1, kind: input, shape index: {}]   ;;  %s806_s2 = inlined_call_operand.vmem [shape: f32[1,40], index: 2, kind: input, shape index: {}]   ;;  %s807_s3 = inlined_call_operand.vmem [shape: f32[1,8], index: 3, kind: input, shape index: {}]   ;;  %s808_s4 = inlined_call_operand.vmem [shape: f32[1,8], index: 4, kind: input, shape index: {}]   ;;  %s809_s5 = inlined_call_operand.<no memory space> [shape: f32[1,1], index: 5, kind: input, shape index: {}]   ;;  %s810_s6 = inlined_call_operand.vmem [shape: f32[32,5], index: 6, kind: input, shape index: {}]   ;;  %s811_s7 = inlined_call_operand.vmem [shape: f32[1,5], index: 7, kind: input, shape index: {}]   ;;  %s812_s8 = inlined_call_operand.hbm [shape: f32[8,32], index: 8, kind: output, shape index: {0}]   ;;  %s813_s9 = inlined_call_operand.hbm [shape: f32[8,4], index: 9, kind: output, shape index: {1}]   ;;  %s814_s10 = inlined_call_operand.hbm [shape: f32[8,5], index: 10, kind: output, shape index: {2}]  }
   0x1   :  { %v16_v0 = vstv %s809_s5 }
   0x2   :  { %17 = vst [vmem:[#allocation2] sm:$0x1] %v16_v0 }
   0x3   :  { %18 = vsyncpa [#allocation4], 0  ;;  %v37_v1 = vld [vmem:[%s805_s1] sm:$0xff]  ;;  %v38_v2 = vld [vmem:[%s805_s1 + $0x8] sm:$0xff]  ;;  %v618_v3 = vmov 0.0|0.0   ;;  %vm619_vm0 = vmmov 0  }
   0x4   :  { %504 = vmatprep.subr.bf16.mxu0 %v618_v3  ;;  %v505_v4 = vpack.c.bf16 %v38_v2, %v37_v1  ;;  %v620_v5 = vmov 0.0   ;;  %v470_v6 = vld [vmem:[%s808_s4] ss:$0 sm:$0xff]  ;;  %s621_s5 = smov 32   ;;  %507 = vmatprep.subr.bf16.mxu1 %v618_v3  ;;  %vm46_vm1 = vcmask 130048   ;;  %s622_s1 = smov 16  }
   0x5   :  { %490 = vmatprep.mubr.msk.f32.mxu0 %vm619_vm0, %v620_v5  ;;  %276 = vrot.lane.b32.xlu1 %v470_v6, %s621_s5  ;;  %v36_v7 = vld [vmem:[%s804_s0] sm:$0xff] }
   0x6   :  { %506 = vmatpush3.bf16.msra.mxu0 %v505_v4  ;;  %186 = vrot.lane.b32.xlu0 %v470_v6, %s622_s1 }
   0x7   :  { %19 = vsyncpa [#allocation6], 0  ;;  %501 = vmatprep.mubr.msk.f32.mxu1 %vm619_vm0, %v620_v5  ;;  %s623_s23 = smov 8   ;;  %s624_s24 = smov 24   ;;  %v469_v8 = vld [vmem:[%s807_s3] ss:$0 sm:$0xff] }
   0x8   :  { %v467_v9 = vld [vmem:[%s806_s2] ss:$0 sm:$0xff]  ;;  %s625_s3 = smov 120   ;;  %s626_s2 = smov 104   ;;  %vm147_vm3 = vcmask 64512   ;;  %v628_v39 = vmov 0  }
   0x9   :  { %491 = vmatmul.mubr.msk.f32.vlgmr.msra.gmra.mrb[0].mxu0 %vm46_vm1, %v36_v7  ;;  %138 = vrot.lane.b32.xlu1 %v470_v6, %s623_s23  ;;  %s627_s27 = smov 112   ;;  %v471_v46 = vld [vmem:[#allocation2] ss:$0 sm:$0xff]  ;;  %s629_s16 = smov 1   ;;  %vm319_vm4 = vcmask 195584   ;;  %vm330_vm5 = vcmask 7168  }
   0xa   :  { %231 = vrot.lane.b32.xlu0 %v470_v6, %s624_s24  ;;  %530 = vset.pattern.permute.xlu1 %v628_v39  ;;  %s631_s17 = smov 2   ;;  %vm336_vm6 = vcmask 261120   ;;  %vm332_vm7 = vcmask 15360   ;;  %vm334_vm8 = vcmask 23552   ;;  %vm338_vm9 = vcmask 31744   ;;  %s632_s18 = smov [#allocation5]  }
   0xb   :  { %531 = vset.pattern.permute.xlu0 %v628_v39  ;;  %s442_s19 = sshll.u32 %s632_s18, 4  ;;  %s633_s20 = smov [#allocation3]   ;;  %s443_s19 = int_to_ptr.vmem [resolvable:$true] %s442_s19 }
   0xc   :  { %s432_s5 = sshll.u32 %s633_s20, 4  ;;  %s548_s21 = scalar_lea.vmem %s443_s19, 128  ;;  %s433_s5 = int_to_ptr.vmem [resolvable:$true] %s432_s5 }
   0xd   :  { %227 = vrot.lane.b32.xlu1 %v469_v8, %s622_s1  ;;  %p549_p0 = scmp.ne.s32.totalorder %s443_s19, %s548_s21  ;;  %p553_p1 = scmp.lt.s32.totalorder %s443_s19, %s443_s19 }
   0xe   :  { %182 = vrot.lane.b32.xlu0 %v469_v8, %s623_s23  ;;  %p554_p2 = scmp.lt.s32.totalorder %s548_s21, %s548_s21 }
  0x10   :  { %p555_p3 = por %p554_p2, %p553_p1 }
  0x11   :  { %272 = vrot.lane.b32.xlu1 %v469_v8, %s624_s24 }
  0x12   :  { %p556_p4 = pnand %p555_p3, %p549_p0 }
  0x77   :  { %v277_v16 = vpop.permute.xlu1 %276 }
  0x78   :  { %v187_v14 = vpop.permute.xlu0 %186 }
  0x7b   :  { %v139_v21 = vpop.permute.xlu1 %138 }
  0x7c   :  { %v232_v19 = vpop.permute.xlu0 %231 }
  0x7f   :  { %v228_v23 = vpop.permute.xlu1 %227 }
  0x80   :  { %v183_v24 = vpop.permute.xlu0 %182 }
  0x83   :  { %v273_v25 = vpop.permute.xlu1 %272 }
  0xdc   :  { %v116_v10 = vpop.f32.mrb[0].mxu0 }
  0xdd   :  { %v117_v11 = vadd.f32 %v467_v9, %v116_v10  ;;  %v492_v12 = vpop.f32.mrb[1].mxu0 }
  0xdf   :  { %vm120_vm2 = vcmp.ge.f32.partialorder %v117_v11, 0.0  ;;  %v121_v13 = vmul.f32 0.01, %v117_v11 }
  0xe1   :  { %v714_v15 = vsel %vm120_vm2, %v117_v11, %v121_v13 }
  0xe2   :  { %v279_v17 = vmul.f32 %v277_v16, %v714_v15  ;;  %v189_v18 = vmul.f32 %v187_v14, %v714_v15  ;;  %v234_v20 = vmul.f32 %v232_v19, %v714_v15  ;;  %v141_v22 = vmul.f32 %v139_v21, %v714_v15  ;;  %v340_v14 = vld [vmem:[%s810_s6] sm:$0xff]  ;;  %v341_v16 = vld [vmem:[%s810_s6 + $0x8] sm:$0xff]  ;;  %v343_v19 = vld [vmem:[%s810_s6 + $0x18] sm:$0xff] }
  0xe3   :  { %v185_v26 = vmul.f32 %v183_v24, %v714_v15  ;;  %v230_v30 = vmul.f32 %v228_v23, %v714_v15  ;;  %v275_v31 = vmul.f32 %v273_v25, %v714_v15  ;;  %v132_v36 = vmul.f32 %v469_v8, %v714_v15 }
  0xe4   :  { %281 = vrot.lane.b32.xlu1 %v279_v17, %s625_s3  ;;  %191 = vrot.lane.b32.xlu0 %v189_v18, %s625_s3  ;;  %v508_v17 = vpack.c.bf16 %v341_v16, %v340_v14  ;;  %v342_v18 = vld [vmem:[%s810_s6 + $0x10] sm:$0xff]  ;;  %s630_s6 = smov 3  }
  0xe6   :  { %509 = vmatpush3.bf16.msra.mxu1 %v508_v17 }
  0xe7   :  { %510 = vmatprep.subr.bf16.mxu1 %v618_v3 }
  0xe8   :  { %236 = vrot.lane.b32.xlu0 %v234_v20, %s625_s3  ;;  %v511_v20 = vpack.c.bf16 %v343_v19, %v342_v18 }
  0xea   :  { %512 = vmatpush3.bf16.msra.mxu1 %v511_v20 }
  0xec   :  { %143 = vrot.lane.b32.xlu0 %v141_v22, %s625_s3 }
 0x156   :  { %v192_v27 = vpop.permute.xlu0 %191  ;;  %v282_v29 = vpop.permute.xlu1 %281 }
 0x157   :  { %v194_v28 = vadd.f32 %v192_v27, %v185_v26  ;;  %v284_v33 = vadd.f32 %v282_v29, %v275_v31 }
 0x159   :  { %196 = vrot.lane.b32.xlu1 %v194_v28, %s625_s3 }
 0x15a   :  { %v237_v32 = vpop.permute.xlu0 %236 }
 0x15b   :  { %v239_v34 = vadd.f32 %v237_v32, %v230_v30 }
 0x15d   :  { %286 = vrot.lane.b32.xlu1 %v284_v33, %s626_s2  ;;  %241 = vrot.lane.b32.xlu0 %v239_v34, %s627_s27 }
 0x15e   :  { %v144_v35 = vpop.permute.xlu0 %143 }
 0x15f   :  { %v146_v37 = vadd.f32 %v144_v35, %v132_v36 }
 0x161   :  { %v148_v38 = vsel %vm147_vm3, %v146_v37, 0.0 }
 0x17c   :  { %149 = vadd.xlane.f32.xlu0 %v148_v38 }
 0x1cb   :  { %v197_v40 = vpop.permute.xlu1 %196 }
 0x1cc   :  { %v199_v41 = vsel %vm147_vm3, %v197_v40, 0.0 }
 0x1cd   :  { %200 = vadd.xlane.f32.xlu1 %v199_v41 }
 0x1cf   :  { %v242_v42 = vpop.permute.xlu0 %241  ;;  %v287_v44 = vpop.permute.xlu1 %286 }
 0x1d0   :  { %v244_v43 = vsel %vm147_vm3, %v242_v42, 0.0  ;;  %v289_v45 = vsel %vm147_vm3, %v287_v44, 0.0 }
 0x1d1   :  { %245 = vadd.xlane.f32.xlu0 %v244_v43 }
 0x1d5   :  { %290 = vadd.xlane.f32.xlu0 %v289_v45 }
 0x209   :  { %v150_v47 = vpop.xlane.xlu0 %149 }
 0x20a   :  { %v157_v48 = vadd.f32 %v471_v46, %v150_v47 }
 0x20c   :  { %v472_v49 = vmul.f32 -1.442695, %v157_v48 }
 0x20e   :  { %532 = vpow2.f32 %v472_v49 }
 0x218   :  { %v533_v50 = vpop.eup %532 }
 0x219   :  { %v161_v51 = vadd.f32 1.0, %v533_v50 }
 0x21b   :  { %534 = vrcp.f32 %v161_v51 }
 0x225   :  { %v733_v52 = vpop.eup %534 }
 0x226   :  { %v170_v53 = vsub.f32 1.0, %v733_v52 }
 0x228   :  { %173 = vperm.xlu1 %530, %v170_v53  }
 0x25a   :  { %v201_v54 = vpop.xlane.xlu1 %200 }
 0x25b   :  { %v202_v55 = vadd.f32 %v471_v46, %v201_v54 }
 0x25d   :  { %v473_v56 = vmul.f32 -1.442695, %v202_v55 }
 0x25e   :  { %v246_v57 = vpop.xlane.xlu0 %245 }
 0x25f   :  { %536 = vpow2.f32 %v473_v56  ;;  %v247_v58 = vadd.f32 %v471_v46, %v246_v57 }
 0x261   :  { %v474_v59 = vmul.f32 -1.442695, %v247_v58 }
 0x262   :  { %v291_v60 = vpop.xlane.xlu0 %290 }
 0x263   :  { %538 = vpow2.f32 %v474_v59  ;;  %v292_v61 = vadd.f32 %v471_v46, %v291_v60 }
 0x265   :  { %v475_v62 = vmul.f32 -1.442695, %v292_v61 }
 0x267   :  { %540 = vpow2.f32 %v475_v62 }
 0x269   :  { %v537_v63 = vpop.eup %536 }
 0x26a   :  { %v206_v0 = vadd.f32 1.0, %v537_v63 }
 0x26c   :  { %542 = vrcp.f32 %v206_v0 }
 0x26d   :  { %v539_v1 = vpop.eup %538 }
 0x26e   :  { %v251_v2 = vadd.f32 1.0, %v539_v1 }
 0x270   :  { %544 = vrcp.f32 %v251_v2 }
 0x271   :  { %v541_v4 = vpop.eup %540 }
 0x272   :  { %v296_v5 = vadd.f32 1.0, %v541_v4 }
 0x274   :  { %546 = vrcp.f32 %v296_v5 }
 0x276   :  { %v543_v6 = vpop.eup %542 }
 0x277   :  { %v215_v7 = vsub.f32 1.0, %v543_v6 }
 0x279   :  { %218 = vperm.xlu0 %531, %v215_v7  }
 0x27a   :  { %v545_v8 = vpop.eup %544 }
 0x27b   :  { %v260_v9 = vsub.f32 1.0, %v545_v8 }
 0x27d   :  { %263 = vperm.xlu1 %530, %v260_v9  }
 0x27e   :  { %v547_v10 = vpop.eup %546 }
 0x27f   :  { %v305_v11 = vsub.f32 1.0, %v547_v10 }
 0x281   :  { %308 = vperm.xlu1 %530, %v305_v11  }
 0x285   :  { %166 = vperm.xlu1 %530, %v733_v52  }
 0x289   :  { %211 = vperm.xlu1 %530, %v543_v6  }
 0x28d   :  { %256 = vperm.xlu1 %530, %v545_v8  }
 0x291   :  { %301 = vperm.xlu1 %530, %v547_v10  }
 0x2a7   :  { %v174_v12 = vpop.permute.xlu1 %173 }
 0x2a8   :  { %v176_v13 = vmul.f32 %v174_v12, %v714_v15 }
 0x2aa   :  { %178 = vrot.lane.b32.xlu1 %v176_v13, %s625_s3 }
 0x2f8   :  { %v219_v21 = vpop.permute.xlu0 %218 }
 0x2f9   :  { %v221_v22 = vmul.f32 %v219_v21, %v714_v15 }
 0x2fb   :  { %223 = vrot.lane.b32.xlu1 %v221_v22, %s625_s3 }
 0x2fc   :  { %v264_v23 = vpop.permute.xlu1 %263 }
 0x2fd   :  { %v266_v24 = vmul.f32 %v264_v23, %v714_v15 }
 0x2ff   :  { %268 = vrot.lane.b32.xlu0 %v266_v24, %s625_s3 }
 0x300   :  { %v309_v3 = vpop.permute.xlu1 %308 }
 0x301   :  { %v311_v25 = vmul.f32 %v309_v3, %v714_v15 }
 0x303   :  { %321 = vrot.lane.b32.xlu0 %v543_v6, %s629_s16  ;;  %313 = vrot.lane.b32.xlu1 %v311_v25, %s625_s3 }
 0x304   :  { %v167_v26 = vpop.permute.xlu1 %166 }
 0x305   :  { %v169_v35 = vmul.f32 %v167_v26, %v714_v15 }
 0x307   :  { %327 = vrot.lane.b32.xlu0 %v547_v10, %s630_s6  ;;  %324 = vrot.lane.b32.xlu1 %v545_v8, %s631_s17 }
 0x308   :  { %v212_v27 = vpop.permute.xlu1 %211 }
 0x309   :  { %v214_v32 = vmul.f32 %v212_v27, %v714_v15 }
 0x30c   :  { %v257_v28 = vpop.permute.xlu1 %256 }
 0x30d   :  { %v259_v33 = vmul.f32 %v257_v28, %v714_v15 }
 0x310   :  { %v302_v29 = vpop.permute.xlu1 %301 }
 0x311   :  { %v304_v38 = vmul.f32 %v302_v29, %v714_v15 }
 0x31c   :  { %v179_v30 = vpop.permute.xlu1 %178 }
 0x31d   :  { %v181_v39 = vadd.f32 %v179_v30, %v169_v35 }
 0x36d   :  { %v224_v31 = vpop.permute.xlu1 %223 }
 0x36e   :  { %v226_v36 = vadd.f32 %v224_v31, %v214_v32 }
 0x370   :  { %v317_v42 = vsel %vm147_vm3, %v181_v39, %v226_v36 }
 0x371   :  { %v269_v34 = vpop.permute.xlu0 %268 }
 0x372   :  { %v271_v37 = vadd.f32 %v269_v34, %v259_v33 }
 0x374   :  { %v318_v44 = vsel %vm46_vm1, %v317_v42, %v271_v37 }
 0x375   :  { %v314_v40 = vpop.permute.xlu1 %313  ;;  %v322_v41 = vpop.permute.xlu0 %321 }
 0x376   :  { %v316_v43 = vadd.f32 %v314_v40, %v304_v38  ;;  %v331_v46 = vsel %vm330_vm5, %v733_v52, %v322_v41 }
 0x378   :  { %v320_v45 = vsel %vm319_vm4, %v318_v44, %v316_v43 }
 0x379   :  { %v325_v47 = vpop.permute.xlu1 %324  ;;  %502 = vmatmul.mubr.msk.f32.vlgmr.msra.gmra.mrb[0].mxu1 %vm336_vm6, %v320_v45  ;;  %337 = vst.msk [vmem:[#allocation3] sm:$0xff] %vm336_vm6, %v320_v45  ;;  %v328_v15 = vpop.permute.xlu0 %327 }
 0x37a   :  { %v333_v48 = vsel %vm332_vm7, %v331_v46, %v325_v47 }
 0x37b   :  { %v335_v49 = vsel %vm334_vm8, %v333_v48, %v328_v15 }
 0x37c   :  { %339 = vst.msk [vmem:[#allocation5] sm:$0xff] %vm338_vm9, %v335_v49 }
 0x37d   :  { %559 = shalt.err (!%p556_p4)
}
 0x37e   :  { %s560_s23 = scalar_lea.hbm %s813_s9, 128 }
 0x37f   :  { %p561_p5 = scmp.ne.s32.totalorder %s813_s9, %s560_s23  ;;  %p564_p6 = scmp.lt.u32.totalorder %s560_s23, %s813_s9 }
 0x381   :  { %p566_p7 = pnand %p564_p6, %p561_p5 }
 0x383   :  { %569 = shalt.err (!%p566_p7)
}
 0x384   :  { %445 = dma.vmem_to_hbm [thread:$0]  %s443_s19, 128, %s813_s9, [#allocation6]  }
 0x385   :  { %s570_s2 = scalar_lea.vmem %s433_s5, 128  ;;  %p575_p9 = scmp.lt.s32.totalorder %s433_s5, %s433_s5 }
 0x386   :  { %p571_p8 = scmp.ne.s32.totalorder %s433_s5, %s570_s2  ;;  %p576_p10 = scmp.lt.s32.totalorder %s570_s2, %s570_s2 }
 0x388   :  { %p577_p11 = por %p576_p10, %p575_p9 }
 0x38a   :  { %p578_p12 = pnand %p577_p11, %p571_p8 }
 0x38c   :  { %581 = shalt.err (!%p578_p12)
}
 0x38d   :  { %s582_s29 = scalar_lea.hbm %s812_s8, 128 }
 0x38e   :  { %p583_p13 = scmp.ne.s32.totalorder %s812_s8, %s582_s29  ;;  %p586_p0 = scmp.lt.u32.totalorder %s582_s29, %s812_s8 }
 0x390   :  { %p588_p1 = pnand %p586_p0, %p583_p13 }
 0x392   :  { %591 = shalt.err (!%p588_p1)
}
 0x393   :  { %435 = dma.vmem_to_hbm [thread:$0]  %s433_s5, 128, %s812_s8, [#allocation4]   ;;  %v476_v50 = vld [vmem:[%s811_s7] ss:$0 sm:$0xff]  ;;  %vm424_vm10 = vcmask 39936  }
 0x394   :  { %s634_s6 = smov [#allocation7]  }
 0x395   :  { %s452_s17 = sshll.u32 %s634_s6, 4  ;;  %s453_s17 = int_to_ptr.vmem [resolvable:$true] %s452_s17 }
 0x396   :  { %s592_s18 = scalar_lea.vmem %s453_s17, 128  ;;  %p597_p3 = scmp.lt.s32.totalorder %s453_s17, %s453_s17 }
 0x397   :  { %p593_p2 = scmp.ne.s32.totalorder %s453_s17, %s592_s18  ;;  %p598_p4 = scmp.lt.s32.totalorder %s592_s18, %s592_s18 }
 0x399   :  { %p599_p5 = por %p598_p4, %p597_p3 }
 0x39b   :  { %p600_p6 = pnand %p599_p5, %p593_p2 }
 0x44c   :  { %v420_v51 = vpop.f32.mrb[0].mxu1 }
 0x44d   :  { %v421_v52 = vadd.f32 %v476_v50, %v420_v51  ;;  %v503_v53 = vpop.f32.mrb[1].mxu1 }
 0x44f   :  { %425 = vst.msk [vmem:[#allocation7] sm:$0xff] %vm424_vm10, %v421_v52 }
 0x450   :  { %603 = shalt.err (!%p600_p6)
}
 0x451   :  { %s604_s20 = scalar_lea.hbm %s814_s10, 128 }
 0x452   :  { %p605_p7 = scmp.ne.s32.totalorder %s814_s10, %s604_s20  ;;  %p608_p8 = scmp.lt.u32.totalorder %s604_s20, %s814_s10 }
 0x454   :  { %p610_p9 = pnand %p608_p8, %p605_p7 }
 0x456   :  { %613 = shalt.err (!%p610_p9)
}
 0x457   :  { %455 = dma.vmem_to_hbm [thread:$0]  %s453_s17, 128, %s814_s10, [#allocation6]  }
 0x458   :  { %614 = dma.done.wait [#allocation4], 128  }
 0x459   :  { %615 = vsyncadd [#allocation4], 4294967168 }
 0x45a   :  { %616 = dma.done.wait [#allocation6], 256  }
 0x45b   :  { %617 = vsyncadd [#allocation6], 4294967040 }
 0x45c   :  { %465 = vsyncpa [#allocation4], 1 }
 0x45d   :  { %466 = vsyncpa [#allocation6], 1 }

</bundles_post_ra>
